<compile_context>
chip_gen: v6e
topology: v6e:2x2x1
jax: 0.10.0
libtpu: 0.0.40
codegen_flags: <defaults>
</compile_context>

<pallas_src>
import math
import functools

import jax
import jax.numpy as jnp
from jax.experimental import pallas as pl
from jax.experimental.pallas import tpu as pltpu


def _layernorm(x, w, b, eps=1e-5):
    mu = jnp.mean(x, axis=-1, keepdims=True)
    xc = x - mu
    var = jnp.mean(xc * xc, axis=-1, keepdims=True)
    return xc * jax.lax.rsqrt(var + eps) * w + b


def dit_block_kernel(x_ref, cond_ref,
                     adaw_ref, adab_ref,
                     ln1w_ref, ln1b_ref, ln2w_ref, ln2b_ref,
                     qkvw_ref, qkvb_ref, lvw_ref, lvb_ref,
                     ff1w_ref, ff1b_ref, ff2w_ref, ff2b_ref,
                     out_ref, *, n_head, emb_size):
    E = emb_size
    H = n_head
    f32 = jnp.float32
    bf16 = jnp.bfloat16

    x = x_ref[...]                      # (Bt, L, E) f32
    cond = cond_ref[...][:, 0, :]       # (Bt, E)    f32
    Bt, L, _ = x.shape
    M = Bt * L

    # adaLN modulation for the whole batch tile: one (Bt,E)x(E,6E) MXU dot.
    mods = jnp.dot(cond.astype(bf16), adaw_ref[...],
                   preferred_element_type=f32) + adab_ref[...]       # (Bt, 6E)
    gamma1 = mods[:, None, 0 * E:1 * E]
    beta1  = mods[:, None, 1 * E:2 * E]
    alpha1 = mods[:, None, 2 * E:3 * E]
    gamma2 = mods[:, None, 3 * E:4 * E]
    beta2  = mods[:, None, 4 * E:5 * E]
    alpha2 = mods[:, None, 5 * E:6 * E]

    # --- attention branch ---
    y = _layernorm(x, ln1w_ref[...], ln1b_ref[...])                  # (Bt,L,E) f32
    y = y * (1.0 + gamma1) + beta1
    ym16 = y.reshape(M, E).astype(bf16)                              # flatten rows

    # Fused qkv projection: one (M, E) x (E, 3*H*E) matmul, f32 accumulate.
    qkv = jnp.dot(ym16, qkvw_ref[...],
                  preferred_element_type=f32) + qkvb_ref[...]        # (M, 3*H*E)

    # PyTorch reference scales by sqrt(q.size(2)) == sqrt(seq_len L). Folded into q.
    scale = 1.0 / math.sqrt(L)

    heads = []
    # H is small & static -> trace-time unroll.
    # TODO(synk): switch to lax.fori_loop(..., unroll=<small>) when H > ~4.
    for h in range(H):
        qh = qkv[:, (0 * H + h) * E:(0 * H + h + 1) * E]             # (M, E) f32
        kh = qkv[:, (1 * H + h) * E:(1 * H + h + 1) * E]
        vh = qkv[:, (2 * H + h) * E:(2 * H + h + 1) * E]
        q3 = (qh * scale).astype(bf16).reshape(Bt, L, E)             # fold 1/sqrt(L)
        k3 = kh.astype(bf16).reshape(Bt, L, E)
        v3 = vh.astype(bf16).reshape(Bt, L, E)
        # scores batched over the Bt rows: single-batch-dim dot_general
        s = jnp.einsum('bqe,bke->bqk', q3, k3,
                       preferred_element_type=f32)                   # (Bt, L, L) f32
        m = jnp.max(s, axis=-1, keepdims=True)
        p = jnp.exp(s - m)
        l = jnp.sum(p, axis=-1, keepdims=True)
        head = jnp.einsum('bqk,bke->bqe', p.astype(bf16), v3,
                          preferred_element_type=f32)                # (Bt, L, E) f32
        # normalize the (Bt,L,E) output instead of the (Bt,L,L) probs; EUP recip
        head = head * pl.reciprocal(l, approx=True)
        heads.append(head.reshape(M, E))

    # Fused output projection: one (M, H*E) x (H*E, E) matmul.
    o = jnp.concatenate(heads, axis=-1).astype(bf16)                 # (M, H*E) bf16
    o = jnp.dot(o, lvw_ref[...], preferred_element_type=f32) + lvb_ref[...]
    o = o.reshape(Bt, L, E) * alpha1
    y1 = x + o                                                       # f32 residual

    # --- feed-forward branch ---
    z = _layernorm(y1, ln2w_ref[...], ln2b_ref[...])
    z = z * (1.0 + gamma2) + beta2
    zm16 = z.reshape(M, E).astype(bf16)
    h1 = jnp.dot(zm16, ff1w_ref[...],
                 preferred_element_type=f32) + ff1b_ref[...]         # (M, 4E) f32
    h1 = jnp.maximum(h1, 0.0).astype(bf16)
    z2 = jnp.dot(h1, ff2w_ref[...],
                 preferred_element_type=f32) + ff2b_ref[...]         # (M, E) f32
    z2 = z2.reshape(Bt, L, E) * alpha2

    out_ref[...] = (y1 + z2).astype(out_ref.dtype)


def _pick_block_batch(B, L, max_rows=256):
    """Largest divisor Bt of B with Bt*L <= max_rows, preferring >=2 grid steps
    so both TensorCores get work on 2-TC parts (v7x)."""
    cands = [bt for bt in range(1, B + 1) if B % bt == 0 and bt * L <= max_rows]
    if not cands:
        return 1
    multi = [bt for bt in cands if B // bt >= 2]
    return max(multi) if multi else max(cands)


def _vmem_limit_bytes():
    """Generation-aware VMEM budget: ~3/4 of physical capacity, leaving headroom
    for double-buffered pipeline blocks + compiler internal scratch.
    (~96 MiB on v5e/v6e's 128 MiB, ~48 MiB on v7x's 64 MiB.)"""
    try:
        cap = int(pltpu.get_tpu_info().vmem_capacity_bytes)
    except Exception:
        cap = 64 * 1024 * 1024          # conservative fallback (v7x per-TC)
    return max(32 * 1024 * 1024, min(cap * 3 // 4, 112 * 1024 * 1024))


def dit_block(x, cond, params, n_head, block_batch=None):
    B, L, E = x.shape
    Bt = _pick_block_batch(B, L) if block_batch is None else block_batch
    assert B % Bt == 0, "batch must be divisible by the batch tile"
    cond3 = cond.reshape(B, 1, E)

    kernel = functools.partial(dit_block_kernel, n_head=n_head, emb_size=E)

    # Grid-invariant parameters: whole array resident in VMEM, single buffer
    # (no per-step re-description / double buffering).
    wspec = pl.BlockSpec(memory_space=pltpu.MemorySpace.VMEM)

    in_specs = [
        pl.BlockSpec((Bt, L, E), lambda b: (b, 0, 0)),   # x: Bt batch rows per step
        pl.BlockSpec((Bt, 1, E), lambda b: (b, 0, 0)),   # cond
    ] + [wspec] * 14                                     # weights / biases / LN params

    return pl.pallas_call(
        kernel,
        out_shape=jax.ShapeDtypeStruct((B, L, E), x.dtype),
        grid=(B // Bt,),
        in_specs=in_specs,
        out_specs=pl.BlockSpec((Bt, L, E), lambda b: (b, 0, 0)),
        compiler_params=pltpu.CompilerParams(
            dimension_semantics=("parallel",),
            vmem_limit_bytes=_vmem_limit_bytes()),
    )(x, cond3, *params)


def ref_forward(x, cond, params, n_head):
    """Pure-JAX reference mirroring the PyTorch forward, with the same
    bf16-at-the-MXU / f32-accumulate discipline as the kernel."""
    (adaw, adab, ln1w, ln1b, ln2w, ln2b, qkvw, qkvb,
     lvw, lvb, ff1w, ff1b, ff2w, ff2b) = params
    B, L, E = x.shape
    H = n_head
    bf16, f32 = jnp.bfloat16, jnp.float32

    def bdot(a, b):
        return jnp.einsum('...ik,...kj->...ij', a.astype(bf16), b.astype(bf16),
                          preferred_element_type=f32)

    mods = bdot(cond, adaw) + adab[0]
    g1, b1, a1, g2, b2, a2 = [mods[:, i * E:(i + 1) * E] for i in range(6)]

    def ln(t, w, b):
        mu = t.mean(-1, keepdims=True)
        var = ((t - mu) ** 2).mean(-1, keepdims=True)
        return (t - mu) / jnp.sqrt(var + 1e-5) * w[0] + b[0]

    y = ln(x, ln1w, ln1b)
    y = y * (1 + g1[:, None, :]) + b1[:, None, :]
    qkv = bdot(y, qkvw) + qkvb[0]
    q, k, v = jnp.split(qkv, 3, axis=-1)
    q = q.reshape(B, L, H, E).transpose(0, 2, 1, 3)
    k = k.reshape(B, L, H, E).transpose(0, 2, 1, 3)
    v = v.reshape(B, L, H, E).transpose(0, 2, 1, 3)
    s = jnp.einsum('bhqe,bhke->bhqk', q.astype(bf16), k.astype(bf16),
                   preferred_element_type=f32) / math.sqrt(L)   # sqrt(q.size(2)) == sqrt(L)
    attn = jax.nn.softmax(s, axis=-1)
    o = jnp.einsum('bhqk,bhke->bhqe', attn.astype(bf16), v.astype(bf16),
                   preferred_element_type=f32)
    o = o.transpose(0, 2, 1, 3).reshape(B, L, H * E)
    o = bdot(o, lvw) + lvb[0]
    o = o * a1[:, None, :]
    y1 = x + o
    z = ln(y1, ln2w, ln2b)
    z = z * (1 + g2[:, None, :]) + b2[:, None, :]
    z = jnp.maximum(bdot(z, ff1w) + ff1b[0], 0.0)
    z = bdot(z, ff2w) + ff2b[0]
    z = z * a2[:, None, :]
    return y1 + z


def init_params(key, emb_size, n_head):
    E, H = emb_size, n_head
    HE = H * E
    ks = jax.random.split(key, 8)

    def w(k, shape, fan_in):
        # matmul weights stored in bf16 (halves weight DMA / VMEM footprint)
        return (jax.random.normal(k, shape, jnp.float32)
                / math.sqrt(fan_in)).astype(jnp.bfloat16)

    adaw = w(ks[0], (E, 6 * E), E)
    adab = jax.random.normal(ks[1], (1, 6 * E), jnp.float32) * 0.02
    ln1w = jnp.ones((1, E), jnp.float32)
    ln1b = jnp.zeros((1, E), jnp.float32)
    ln2w = jnp.ones((1, E), jnp.float32)
    ln2b = jnp.zeros((1, E), jnp.float32)
    qkvw = w(ks[2], (E, 3 * HE), E)
    qkvb = jax.random.normal(ks[3], (1, 3 * HE), jnp.float32) * 0.02
    lvw = w(ks[4], (HE, E), HE)
    lvb = jnp.zeros((1, E), jnp.float32)
    ff1w = w(ks[5], (E, 4 * E), E)
    ff1b = jax.random.normal(ks[6], (1, 4 * E), jnp.float32) * 0.02
    ff2w = w(ks[7], (4 * E, E), 4 * E)
    ff2b = jnp.zeros((1, E), jnp.float32)
    return (adaw, adab, ln1w, ln1b, ln2w, ln2b, qkvw, qkvb,
            lvw, lvb, ff1w, ff1b, ff2w, ff2b)


if __name__ == "__main__":
    # L % 8 == 0, E % 128 == 0 (lane-dense); B chosen so the batch-tile picker
    # gives Bt=4 (M = Bt*L = 64 rows per matmul) and >=2 grid steps (both TCs
    # on v7x get work).
    B, L, E, H = 8, 16, 128, 4
    key = jax.random.PRNGKey(0)
    kx, kc, kp = jax.random.split(key, 3)

    x = jax.random.normal(kx, (B, L, E), jnp.float32)
    cond = jax.random.normal(kc, (B, E), jnp.float32)
    params = init_params(kp, E, H)

    out = dit_block(x, cond, params, n_head=H)
    out = jax.block_until_ready(out)

    ref = ref_forward(x, cond, params, n_head=H)
    assert out.shape == (B, L, E) and out.dtype == jnp.float32
    err = float(jnp.max(jnp.abs(out - ref)))
    ref_max = float(jnp.max(jnp.abs(ref)))
    assert err <= 2e-2 * max(1.0, ref_max), \
        f"max abs err {err} (ref max {ref_max})"

    print("KERNEL_OK")
</pallas_src>

<mosaic_0001>
module attributes {stable_mosaic.version = 11 : i64} {
  func.func @dit_block_kernel(%arg0: i32, %arg1: memref<4x16x128xf32, #tpu.memory_space<vmem>>, %arg2: memref<4x1x128xf32, #tpu.memory_space<vmem>>, %arg3: memref<128x768xbf16, #tpu.memory_space<vmem>>, %arg4: memref<1x768xf32, #tpu.memory_space<vmem>>, %arg5: memref<1x128xf32, #tpu.memory_space<vmem>>, %arg6: memref<1x128xf32, #tpu.memory_space<vmem>>, %arg7: memref<1x128xf32, #tpu.memory_space<vmem>>, %arg8: memref<1x128xf32, #tpu.memory_space<vmem>>, %arg9: memref<128x1536xbf16, #tpu.memory_space<vmem>>, %arg10: memref<1x1536xf32, #tpu.memory_space<vmem>>, %arg11: memref<512x128xbf16, #tpu.memory_space<vmem>>, %arg12: memref<1x128xf32, #tpu.memory_space<vmem>>, %arg13: memref<128x512xbf16, #tpu.memory_space<vmem>>, %arg14: memref<1x512xf32, #tpu.memory_space<vmem>>, %arg15: memref<512x128xbf16, #tpu.memory_space<vmem>>, %arg16: memref<1x128xf32, #tpu.memory_space<vmem>>, %arg17: memref<4x16x128xf32, #tpu.memory_space<vmem>>) attributes {dimension_semantics = [#tpu.dimension_semantics<parallel>], iteration_bounds = array<i64: 2>, scalar_prefetch = 0 : i64, scratch_operands = 0 : i64, tpu.core_type = #tpu.core_type<tc>, window_params = [{transform_indices = @transform_0, window_bounds = array<i64: 4, 16, 128>}, {transform_indices = @transform_1, window_bounds = array<i64: 4, 1, 128>}, {pipeline_mode = #tpu.pipeline_mode<synchronous>, transform_indices = @transform_2, window_bounds = array<i64: 128, 768>}, {pipeline_mode = #tpu.pipeline_mode<synchronous>, transform_indices = @transform_3, window_bounds = array<i64: 1, 768>}, {pipeline_mode = #tpu.pipeline_mode<synchronous>, transform_indices = @transform_4, window_bounds = array<i64: 1, 128>}, {pipeline_mode = #tpu.pipeline_mode<synchronous>, transform_indices = @transform_5, window_bounds = array<i64: 1, 128>}, {pipeline_mode = #tpu.pipeline_mode<synchronous>, transform_indices = @transform_6, window_bounds = array<i64: 1, 128>}, {pipeline_mode = #tpu.pipeline_mode<synchronous>, transform_indices = @transform_7, window_bounds = array<i64: 1, 128>}, {pipeline_mode = #tpu.pipeline_mode<synchronous>, transform_indices = @transform_8, window_bounds = array<i64: 128, 1536>}, {pipeline_mode = #tpu.pipeline_mode<synchronous>, transform_indices = @transform_9, window_bounds = array<i64: 1, 1536>}, {pipeline_mode = #tpu.pipeline_mode<synchronous>, transform_indices = @transform_10, window_bounds = array<i64: 512, 128>}, {pipeline_mode = #tpu.pipeline_mode<synchronous>, transform_indices = @transform_11, window_bounds = array<i64: 1, 128>}, {pipeline_mode = #tpu.pipeline_mode<synchronous>, transform_indices = @transform_12, window_bounds = array<i64: 128, 512>}, {pipeline_mode = #tpu.pipeline_mode<synchronous>, transform_indices = @transform_13, window_bounds = array<i64: 1, 512>}, {pipeline_mode = #tpu.pipeline_mode<synchronous>, transform_indices = @transform_14, window_bounds = array<i64: 512, 128>}, {pipeline_mode = #tpu.pipeline_mode<synchronous>, transform_indices = @transform_15, window_bounds = array<i64: 1, 128>}, {transform_indices = @transform_16, window_bounds = array<i64: 4, 16, 128>}]} {
    %c0 = arith.constant 0 : index
    %c0_0 = arith.constant 0 : index
    %c0_1 = arith.constant 0 : index
    %0 = vector.load %arg1[%c0, %c0_0, %c0_1] : memref<4x16x128xf32, #tpu.memory_space<vmem>>, vector<4x16x128xf32>
    %c0_2 = arith.constant 0 : index
    %c0_3 = arith.constant 0 : index
    %c0_4 = arith.constant 0 : index
    %1 = vector.load %arg2[%c0_2, %c0_3, %c0_4] : memref<4x1x128xf32, #tpu.memory_space<vmem>>, vector<4x1x128xf32>
    %2 = vector.shape_cast %1 : vector<4x1x128xf32> to vector<4x128xf32>
    %3 = arith.truncf %2 : vector<4x128xf32> to vector<4x128xbf16>
    %c0_5 = arith.constant 0 : index
    %c0_6 = arith.constant 0 : index
    %4 = vector.load %arg3[%c0_5, %c0_6] : memref<128x768xbf16, #tpu.memory_space<vmem>>, vector<128x768xbf16>
    %cst = arith.constant dense<0.000000e+00> : vector<4x768xf32>
    %5 = tpu.matmul %3, %4, %cst {dimension_numbers = #tpu.dot_dimension_numbers<[1], [0], [0], [1], [0, 0, 1, 1], [], []>} : vector<4x128xbf16>, vector<128x768xbf16>, vector<4x768xf32> -> vector<4x768xf32>
    %c0_7 = arith.constant 0 : index
    %c0_8 = arith.constant 0 : index
    %6 = vector.load %arg4[%c0_7, %c0_8] : memref<1x768xf32, #tpu.memory_space<vmem>>, vector<1x768xf32>
    %7 = vector.broadcast %6 : vector<1x768xf32> to vector<4x768xf32>
    %8 = arith.addf %5, %7 : vector<4x768xf32>
    %9 = vector.extract_strided_slice %8 {offsets = [0, 0], sizes = [4, 128], strides = [1, 1]} : vector<4x768xf32> to vector<4x128xf32>
    %10 = vector.shape_cast %9 : vector<4x128xf32> to vector<4x1x128xf32>
    %11 = vector.extract_strided_slice %8 {offsets = [0, 128], sizes = [4, 128], strides = [1, 1]} : vector<4x768xf32> to vector<4x128xf32>
    %12 = vector.shape_cast %11 : vector<4x128xf32> to vector<4x1x128xf32>
    %13 = vector.extract_strided_slice %8 {offsets = [0, 256], sizes = [4, 128], strides = [1, 1]} : vector<4x768xf32> to vector<4x128xf32>
    %14 = vector.shape_cast %13 : vector<4x128xf32> to vector<4x1x128xf32>
    %15 = vector.extract_strided_slice %8 {offsets = [0, 384], sizes = [4, 128], strides = [1, 1]} : vector<4x768xf32> to vector<4x128xf32>
    %16 = vector.shape_cast %15 : vector<4x128xf32> to vector<4x1x128xf32>
    %17 = vector.extract_strided_slice %8 {offsets = [0, 512], sizes = [4, 128], strides = [1, 1]} : vector<4x768xf32> to vector<4x128xf32>
    %18 = vector.shape_cast %17 : vector<4x128xf32> to vector<4x1x128xf32>
    %19 = vector.extract_strided_slice %8 {offsets = [0, 640], sizes = [4, 128], strides = [1, 1]} : vector<4x768xf32> to vector<4x128xf32>
    %20 = vector.shape_cast %19 : vector<4x128xf32> to vector<4x1x128xf32>
    %c0_9 = arith.constant 0 : index
    %c0_10 = arith.constant 0 : index
    %21 = vector.load %arg5[%c0_9, %c0_10] : memref<1x128xf32, #tpu.memory_space<vmem>>, vector<1x128xf32>
    %c0_11 = arith.constant 0 : index
    %c0_12 = arith.constant 0 : index
    %22 = vector.load %arg6[%c0_11, %c0_12] : memref<1x128xf32, #tpu.memory_space<vmem>>, vector<1x128xf32>
    %cst_13 = arith.constant dense<0.000000e+00> : vector<4x16xf32>
    %23 = vector.multi_reduction <add>, %0, %cst_13 [2] : vector<4x16x128xf32> to vector<4x16xf32>
    %24 = vector.shape_cast %23 : vector<4x16xf32> to vector<4x16x1xf32>
    %cst_14 = arith.constant 1.280000e+02 : f32
    %25 = vector.broadcast %cst_14 : f32 to vector<4x16x1xf32>
    %26 = arith.divf %24, %25 : vector<4x16x1xf32>
    %27 = vector.broadcast %26 : vector<4x16x1xf32> to vector<4x16x128xf32>
    %28 = arith.subf %0, %27 : vector<4x16x128xf32>
    %29 = arith.mulf %28, %28 : vector<4x16x128xf32>
    %cst_15 = arith.constant dense<0.000000e+00> : vector<4x16xf32>
    %30 = vector.multi_reduction <add>, %29, %cst_15 [2] : vector<4x16x128xf32> to vector<4x16xf32>
    %31 = vector.shape_cast %30 : vector<4x16xf32> to vector<4x16x1xf32>
    %cst_16 = arith.constant 1.280000e+02 : f32
    %32 = vector.broadcast %cst_16 : f32 to vector<4x16x1xf32>
    %33 = arith.divf %31, %32 : vector<4x16x1xf32>
    %cst_17 = arith.constant 9.99999974E-6 : f32
    %34 = vector.broadcast %cst_17 : f32 to vector<4x16x1xf32>
    %35 = arith.addf %33, %34 : vector<4x16x1xf32>
    %36 = math.rsqrt %35 : vector<4x16x1xf32>
    %37 = vector.broadcast %36 : vector<4x16x1xf32> to vector<4x16x128xf32>
    %38 = arith.mulf %28, %37 : vector<4x16x128xf32>
    %39 = vector.shape_cast %21 : vector<1x128xf32> to vector<1x1x128xf32>
    %40 = vector.broadcast %39 : vector<1x1x128xf32> to vector<4x16x128xf32>
    %41 = arith.mulf %38, %40 : vector<4x16x128xf32>
    %42 = vector.shape_cast %22 : vector<1x128xf32> to vector<1x1x128xf32>
    %43 = vector.broadcast %42 : vector<1x1x128xf32> to vector<4x16x128xf32>
    %44 = arith.addf %41, %43 : vector<4x16x128xf32>
    %cst_18 = arith.constant 1.000000e+00 : f32
    %45 = vector.broadcast %cst_18 : f32 to vector<4x1x128xf32>
    %46 = arith.addf %45, %10 : vector<4x1x128xf32>
    %47 = vector.broadcast %46 : vector<4x1x128xf32> to vector<4x16x128xf32>
    %48 = arith.mulf %44, %47 : vector<4x16x128xf32>
    %49 = vector.broadcast %12 : vector<4x1x128xf32> to vector<4x16x128xf32>
    %50 = arith.addf %48, %49 : vector<4x16x128xf32>
    %51 = vector.shape_cast %50 : vector<4x16x128xf32> to vector<64x128xf32>
    %52 = arith.truncf %51 : vector<64x128xf32> to vector<64x128xbf16>
    %c0_19 = arith.constant 0 : index
    %c0_20 = arith.constant 0 : index
    %53 = vector.load %arg9[%c0_19, %c0_20] : memref<128x1536xbf16, #tpu.memory_space<vmem>>, vector<128x1536xbf16>
    %cst_21 = arith.constant dense<0.000000e+00> : vector<64x1536xf32>
    %54 = tpu.matmul %52, %53, %cst_21 {dimension_numbers = #tpu.dot_dimension_numbers<[1], [0], [0], [1], [0, 0, 1, 1], [], []>} : vector<64x128xbf16>, vector<128x1536xbf16>, vector<64x1536xf32> -> vector<64x1536xf32>
    %c0_22 = arith.constant 0 : index
    %c0_23 = arith.constant 0 : index
    %55 = vector.load %arg10[%c0_22, %c0_23] : memref<1x1536xf32, #tpu.memory_space<vmem>>, vector<1x1536xf32>
    %56 = vector.broadcast %55 : vector<1x1536xf32> to vector<64x1536xf32>
    %57 = arith.addf %54, %56 : vector<64x1536xf32>
    %58 = vector.extract_strided_slice %57 {offsets = [0, 0], sizes = [64, 128], strides = [1, 1]} : vector<64x1536xf32> to vector<64x128xf32>
    %59 = vector.extract_strided_slice %57 {offsets = [0, 512], sizes = [64, 128], strides = [1, 1]} : vector<64x1536xf32> to vector<64x128xf32>
    %60 = vector.extract_strided_slice %57 {offsets = [0, 1024], sizes = [64, 128], strides = [1, 1]} : vector<64x1536xf32> to vector<64x128xf32>
    %cst_24 = arith.constant 2.500000e-01 : f32
    %61 = vector.broadcast %cst_24 : f32 to vector<64x128xf32>
    %62 = arith.mulf %58, %61 : vector<64x128xf32>
    %63 = arith.truncf %62 : vector<64x128xf32> to vector<64x128xbf16>
    %64 = vector.shape_cast %63 : vector<64x128xbf16> to vector<4x16x128xbf16>
    %65 = arith.truncf %59 : vector<64x128xf32> to vector<64x128xbf16>
    %66 = vector.shape_cast %65 : vector<64x128xbf16> to vector<4x16x128xbf16>
    %67 = arith.truncf %60 : vector<64x128xf32> to vector<64x128xbf16>
    %68 = vector.shape_cast %67 : vector<64x128xbf16> to vector<4x16x128xbf16>
    "tpu.trace_start"() <{level = 10 : i32, message = "bqe,bke->bqk"}> : () -> ()
    %cst_25 = arith.constant dense<0.000000e+00> : vector<4x16x16xf32>
    %69 = tpu.matmul %64, %66, %cst_25 {dimension_numbers = #tpu.dot_dimension_numbers<[2], [2], [1], [1], [0, 0, 0, 1, 1, 1], [0], [0]>} : vector<4x16x128xbf16>, vector<4x16x128xbf16>, vector<4x16x16xf32> -> vector<4x16x16xf32>
    "tpu.trace_stop"() : () -> ()
    %cst_26 = arith.constant dense<0xFF800000> : vector<4x16xf32>
    %70 = vector.multi_reduction <maximumf>, %69, %cst_26 [2] : vector<4x16x16xf32> to vector<4x16xf32>
    %71 = vector.shape_cast %70 : vector<4x16xf32> to vector<4x16x1xf32>
    %72 = vector.broadcast %71 : vector<4x16x1xf32> to vector<4x16x16xf32>
    %73 = arith.subf %69, %72 : vector<4x16x16xf32>
    %74 = math.exp %73 : vector<4x16x16xf32>
    %cst_27 = arith.constant dense<0.000000e+00> : vector<4x16xf32>
    %75 = vector.multi_reduction <add>, %74, %cst_27 [2] : vector<4x16x16xf32> to vector<4x16xf32>
    %76 = vector.shape_cast %75 : vector<4x16xf32> to vector<4x16x1xf32>
    %77 = arith.truncf %74 : vector<4x16x16xf32> to vector<4x16x16xbf16>
    "tpu.trace_start"() <{level = 10 : i32, message = "bqk,bke->bqe"}> : () -> ()
    %cst_28 = arith.constant dense<0.000000e+00> : vector<4x16x128xf32>
    %78 = tpu.matmul %77, %68, %cst_28 {dimension_numbers = #tpu.dot_dimension_numbers<[2], [1], [1], [2], [0, 0, 0, 1, 1, 2], [0], [0]>} : vector<4x16x16xbf16>, vector<4x16x128xbf16>, vector<4x16x128xf32> -> vector<4x16x128xf32>
    "tpu.trace_stop"() : () -> ()
    %79 = tpu.reciprocal %76 {approx = true} : vector<4x16x1xf32> -> vector<4x16x1xf32>
    %80 = vector.broadcast %79 : vector<4x16x1xf32> to vector<4x16x128xf32>
    %81 = arith.mulf %78, %80 : vector<4x16x128xf32>
    %82 = vector.shape_cast %81 : vector<4x16x128xf32> to vector<64x128xf32>
    %83 = vector.extract_strided_slice %57 {offsets = [0, 128], sizes = [64, 128], strides = [1, 1]} : vector<64x1536xf32> to vector<64x128xf32>
    %84 = vector.extract_strided_slice %57 {offsets = [0, 640], sizes = [64, 128], strides = [1, 1]} : vector<64x1536xf32> to vector<64x128xf32>
    %85 = vector.extract_strided_slice %57 {offsets = [0, 1152], sizes = [64, 128], strides = [1, 1]} : vector<64x1536xf32> to vector<64x128xf32>
    %cst_29 = arith.constant 2.500000e-01 : f32
    %86 = vector.broadcast %cst_29 : f32 to vector<64x128xf32>
    %87 = arith.mulf %83, %86 : vector<64x128xf32>
    %88 = arith.truncf %87 : vector<64x128xf32> to vector<64x128xbf16>
    %89 = vector.shape_cast %88 : vector<64x128xbf16> to vector<4x16x128xbf16>
    %90 = arith.truncf %84 : vector<64x128xf32> to vector<64x128xbf16>
    %91 = vector.shape_cast %90 : vector<64x128xbf16> to vector<4x16x128xbf16>
    %92 = arith.truncf %85 : vector<64x128xf32> to vector<64x128xbf16>
    %93 = vector.shape_cast %92 : vector<64x128xbf16> to vector<4x16x128xbf16>
    "tpu.trace_start"() <{level = 10 : i32, message = "bqe,bke->bqk"}> : () -> ()
    %cst_30 = arith.constant dense<0.000000e+00> : vector<4x16x16xf32>
    %94 = tpu.matmul %89, %91, %cst_30 {dimension_numbers = #tpu.dot_dimension_numbers<[2], [2], [1], [1], [0, 0, 0, 1, 1, 1], [0], [0]>} : vector<4x16x128xbf16>, vector<4x16x128xbf16>, vector<4x16x16xf32> -> vector<4x16x16xf32>
    "tpu.trace_stop"() : () -> ()
    %cst_31 = arith.constant dense<0xFF800000> : vector<4x16xf32>
    %95 = vector.multi_reduction <maximumf>, %94, %cst_31 [2] : vector<4x16x16xf32> to vector<4x16xf32>
    %96 = vector.shape_cast %95 : vector<4x16xf32> to vector<4x16x1xf32>
    %97 = vector.broadcast %96 : vector<4x16x1xf32> to vector<4x16x16xf32>
    %98 = arith.subf %94, %97 : vector<4x16x16xf32>
    %99 = math.exp %98 : vector<4x16x16xf32>
    %cst_32 = arith.constant dense<0.000000e+00> : vector<4x16xf32>
    %100 = vector.multi_reduction <add>, %99, %cst_32 [2] : vector<4x16x16xf32> to vector<4x16xf32>
    %101 = vector.shape_cast %100 : vector<4x16xf32> to vector<4x16x1xf32>
    %102 = arith.truncf %99 : vector<4x16x16xf32> to vector<4x16x16xbf16>
    "tpu.trace_start"() <{level = 10 : i32, message = "bqk,bke->bqe"}> : () -> ()
    %cst_33 = arith.constant dense<0.000000e+00> : vector<4x16x128xf32>
    %103 = tpu.matmul %102, %93, %cst_33 {dimension_numbers = #tpu.dot_dimension_numbers<[2], [1], [1], [2], [0, 0, 0, 1, 1, 2], [0], [0]>} : vector<4x16x16xbf16>, vector<4x16x128xbf16>, vector<4x16x128xf32> -> vector<4x16x128xf32>
    "tpu.trace_stop"() : () -> ()
    %104 = tpu.reciprocal %101 {approx = true} : vector<4x16x1xf32> -> vector<4x16x1xf32>
    %105 = vector.broadcast %104 : vector<4x16x1xf32> to vector<4x16x128xf32>
    %106 = arith.mulf %103, %105 : vector<4x16x128xf32>
    %107 = vector.shape_cast %106 : vector<4x16x128xf32> to vector<64x128xf32>
    %108 = vector.extract_strided_slice %57 {offsets = [0, 256], sizes = [64, 128], strides = [1, 1]} : vector<64x1536xf32> to vector<64x128xf32>
    %109 = vector.extract_strided_slice %57 {offsets = [0, 768], sizes = [64, 128], strides = [1, 1]} : vector<64x1536xf32> to vector<64x128xf32>
    %110 = vector.extract_strided_slice %57 {offsets = [0, 1280], sizes = [64, 128], strides = [1, 1]} : vector<64x1536xf32> to vector<64x128xf32>
    %cst_34 = arith.constant 2.500000e-01 : f32
    %111 = vector.broadcast %cst_34 : f32 to vector<64x128xf32>
    %112 = arith.mulf %108, %111 : vector<64x128xf32>
    %113 = arith.truncf %112 : vector<64x128xf32> to vector<64x128xbf16>
    %114 = vector.shape_cast %113 : vector<64x128xbf16> to vector<4x16x128xbf16>
    %115 = arith.truncf %109 : vector<64x128xf32> to vector<64x128xbf16>
    %116 = vector.shape_cast %115 : vector<64x128xbf16> to vector<4x16x128xbf16>
    %117 = arith.truncf %110 : vector<64x128xf32> to vector<64x128xbf16>
    %118 = vector.shape_cast %117 : vector<64x128xbf16> to vector<4x16x128xbf16>
    "tpu.trace_start"() <{level = 10 : i32, message = "bqe,bke->bqk"}> : () -> ()
    %cst_35 = arith.constant dense<0.000000e+00> : vector<4x16x16xf32>
    %119 = tpu.matmul %114, %116, %cst_35 {dimension_numbers = #tpu.dot_dimension_numbers<[2], [2], [1], [1], [0, 0, 0, 1, 1, 1], [0], [0]>} : vector<4x16x128xbf16>, vector<4x16x128xbf16>, vector<4x16x16xf32> -> vector<4x16x16xf32>
    "tpu.trace_stop"() : () -> ()
    %cst_36 = arith.constant dense<0xFF800000> : vector<4x16xf32>
    %120 = vector.multi_reduction <maximumf>, %119, %cst_36 [2] : vector<4x16x16xf32> to vector<4x16xf32>
    %121 = vector.shape_cast %120 : vector<4x16xf32> to vector<4x16x1xf32>
    %122 = vector.broadcast %121 : vector<4x16x1xf32> to vector<4x16x16xf32>
    %123 = arith.subf %119, %122 : vector<4x16x16xf32>
    %124 = math.exp %123 : vector<4x16x16xf32>
    %cst_37 = arith.constant dense<0.000000e+00> : vector<4x16xf32>
    %125 = vector.multi_reduction <add>, %124, %cst_37 [2] : vector<4x16x16xf32> to vector<4x16xf32>
    %126 = vector.shape_cast %125 : vector<4x16xf32> to vector<4x16x1xf32>
    %127 = arith.truncf %124 : vector<4x16x16xf32> to vector<4x16x16xbf16>
    "tpu.trace_start"() <{level = 10 : i32, message = "bqk,bke->bqe"}> : () -> ()
    %cst_38 = arith.constant dense<0.000000e+00> : vector<4x16x128xf32>
    %128 = tpu.matmul %127, %118, %cst_38 {dimension_numbers = #tpu.dot_dimension_numbers<[2], [1], [1], [2], [0, 0, 0, 1, 1, 2], [0], [0]>} : vector<4x16x16xbf16>, vector<4x16x128xbf16>, vector<4x16x128xf32> -> vector<4x16x128xf32>
    "tpu.trace_stop"() : () -> ()
    %129 = tpu.reciprocal %126 {approx = true} : vector<4x16x1xf32> -> vector<4x16x1xf32>
    %130 = vector.broadcast %129 : vector<4x16x1xf32> to vector<4x16x128xf32>
    %131 = arith.mulf %128, %130 : vector<4x16x128xf32>
    %132 = vector.shape_cast %131 : vector<4x16x128xf32> to vector<64x128xf32>
    %133 = vector.extract_strided_slice %57 {offsets = [0, 384], sizes = [64, 128], strides = [1, 1]} : vector<64x1536xf32> to vector<64x128xf32>
    %134 = vector.extract_strided_slice %57 {offsets = [0, 896], sizes = [64, 128], strides = [1, 1]} : vector<64x1536xf32> to vector<64x128xf32>
    %135 = vector.extract_strided_slice %57 {offsets = [0, 1408], sizes = [64, 128], strides = [1, 1]} : vector<64x1536xf32> to vector<64x128xf32>
    %cst_39 = arith.constant 2.500000e-01 : f32
    %136 = vector.broadcast %cst_39 : f32 to vector<64x128xf32>
    %137 = arith.mulf %133, %136 : vector<64x128xf32>
    %138 = arith.truncf %137 : vector<64x128xf32> to vector<64x128xbf16>
    %139 = vector.shape_cast %138 : vector<64x128xbf16> to vector<4x16x128xbf16>
    %140 = arith.truncf %134 : vector<64x128xf32> to vector<64x128xbf16>
    %141 = vector.shape_cast %140 : vector<64x128xbf16> to vector<4x16x128xbf16>
    %142 = arith.truncf %135 : vector<64x128xf32> to vector<64x128xbf16>
    %143 = vector.shape_cast %142 : vector<64x128xbf16> to vector<4x16x128xbf16>
    "tpu.trace_start"() <{level = 10 : i32, message = "bqe,bke->bqk"}> : () -> ()
    %cst_40 = arith.constant dense<0.000000e+00> : vector<4x16x16xf32>
    %144 = tpu.matmul %139, %141, %cst_40 {dimension_numbers = #tpu.dot_dimension_numbers<[2], [2], [1], [1], [0, 0, 0, 1, 1, 1], [0], [0]>} : vector<4x16x128xbf16>, vector<4x16x128xbf16>, vector<4x16x16xf32> -> vector<4x16x16xf32>
    "tpu.trace_stop"() : () -> ()
    %cst_41 = arith.constant dense<0xFF800000> : vector<4x16xf32>
    %145 = vector.multi_reduction <maximumf>, %144, %cst_41 [2] : vector<4x16x16xf32> to vector<4x16xf32>
    %146 = vector.shape_cast %145 : vector<4x16xf32> to vector<4x16x1xf32>
    %147 = vector.broadcast %146 : vector<4x16x1xf32> to vector<4x16x16xf32>
    %148 = arith.subf %144, %147 : vector<4x16x16xf32>
    %149 = math.exp %148 : vector<4x16x16xf32>
    %cst_42 = arith.constant dense<0.000000e+00> : vector<4x16xf32>
    %150 = vector.multi_reduction <add>, %149, %cst_42 [2] : vector<4x16x16xf32> to vector<4x16xf32>
    %151 = vector.shape_cast %150 : vector<4x16xf32> to vector<4x16x1xf32>
    %152 = arith.truncf %149 : vector<4x16x16xf32> to vector<4x16x16xbf16>
    "tpu.trace_start"() <{level = 10 : i32, message = "bqk,bke->bqe"}> : () -> ()
    %cst_43 = arith.constant dense<0.000000e+00> : vector<4x16x128xf32>
    %153 = tpu.matmul %152, %143, %cst_43 {dimension_numbers = #tpu.dot_dimension_numbers<[2], [1], [1], [2], [0, 0, 0, 1, 1, 2], [0], [0]>} : vector<4x16x16xbf16>, vector<4x16x128xbf16>, vector<4x16x128xf32> -> vector<4x16x128xf32>
    "tpu.trace_stop"() : () -> ()
    %154 = tpu.reciprocal %151 {approx = true} : vector<4x16x1xf32> -> vector<4x16x1xf32>
    %155 = vector.broadcast %154 : vector<4x16x1xf32> to vector<4x16x128xf32>
    %156 = arith.mulf %153, %155 : vector<4x16x128xf32>
    %157 = vector.shape_cast %156 : vector<4x16x128xf32> to vector<64x128xf32>
    %158 = tpu.concatenate %82, %107, %132, %157 in 1 : vector<64x128xf32>, vector<64x128xf32>, vector<64x128xf32>, vector<64x128xf32> -> vector<64x512xf32>
    %159 = arith.truncf %158 : vector<64x512xf32> to vector<64x512xbf16>
    %c0_44 = arith.constant 0 : index
    %c0_45 = arith.constant 0 : index
    %160 = vector.load %arg11[%c0_44, %c0_45] : memref<512x128xbf16, #tpu.memory_space<vmem>>, vector<512x128xbf16>
    %cst_46 = arith.constant dense<0.000000e+00> : vector<64x128xf32>
    %161 = tpu.matmul %159, %160, %cst_46 {dimension_numbers = #tpu.dot_dimension_numbers<[1], [0], [0], [1], [0, 0, 1, 1], [], []>} : vector<64x512xbf16>, vector<512x128xbf16>, vector<64x128xf32> -> vector<64x128xf32>
    %c0_47 = arith.constant 0 : index
    %c0_48 = arith.constant 0 : index
    %162 = vector.load %arg12[%c0_47, %c0_48] : memref<1x128xf32, #tpu.memory_space<vmem>>, vector<1x128xf32>
    %163 = vector.broadcast %162 : vector<1x128xf32> to vector<64x128xf32>
    %164 = arith.addf %161, %163 : vector<64x128xf32>
    %165 = vector.shape_cast %164 : vector<64x128xf32> to vector<4x16x128xf32>
    %166 = vector.broadcast %14 : vector<4x1x128xf32> to vector<4x16x128xf32>
    %167 = arith.mulf %165, %166 : vector<4x16x128xf32>
    %168 = arith.addf %0, %167 : vector<4x16x128xf32>
    %c0_49 = arith.constant 0 : index
    %c0_50 = arith.constant 0 : index
    %169 = vector.load %arg7[%c0_49, %c0_50] : memref<1x128xf32, #tpu.memory_space<vmem>>, vector<1x128xf32>
    %c0_51 = arith.constant 0 : index
    %c0_52 = arith.constant 0 : index
    %170 = vector.load %arg8[%c0_51, %c0_52] : memref<1x128xf32, #tpu.memory_space<vmem>>, vector<1x128xf32>
    %cst_53 = arith.constant dense<0.000000e+00> : vector<4x16xf32>
    %171 = vector.multi_reduction <add>, %168, %cst_53 [2] : vector<4x16x128xf32> to vector<4x16xf32>
    %172 = vector.shape_cast %171 : vector<4x16xf32> to vector<4x16x1xf32>
    %cst_54 = arith.constant 1.280000e+02 : f32
    %173 = vector.broadcast %cst_54 : f32 to vector<4x16x1xf32>
    %174 = arith.divf %172, %173 : vector<4x16x1xf32>
    %175 = vector.broadcast %174 : vector<4x16x1xf32> to vector<4x16x128xf32>
    %176 = arith.subf %168, %175 : vector<4x16x128xf32>
    %177 = arith.mulf %176, %176 : vector<4x16x128xf32>
    %cst_55 = arith.constant dense<0.000000e+00> : vector<4x16xf32>
    %178 = vector.multi_reduction <add>, %177, %cst_55 [2] : vector<4x16x128xf32> to vector<4x16xf32>
    %179 = vector.shape_cast %178 : vector<4x16xf32> to vector<4x16x1xf32>
    %cst_56 = arith.constant 1.280000e+02 : f32
    %180 = vector.broadcast %cst_56 : f32 to vector<4x16x1xf32>
    %181 = arith.divf %179, %180 : vector<4x16x1xf32>
    %cst_57 = arith.constant 9.99999974E-6 : f32
    %182 = vector.broadcast %cst_57 : f32 to vector<4x16x1xf32>
    %183 = arith.addf %181, %182 : vector<4x16x1xf32>
    %184 = math.rsqrt %183 : vector<4x16x1xf32>
    %185 = vector.broadcast %184 : vector<4x16x1xf32> to vector<4x16x128xf32>
    %186 = arith.mulf %176, %185 : vector<4x16x128xf32>
    %187 = vector.shape_cast %169 : vector<1x128xf32> to vector<1x1x128xf32>
    %188 = vector.broadcast %187 : vector<1x1x128xf32> to vector<4x16x128xf32>
    %189 = arith.mulf %186, %188 : vector<4x16x128xf32>
    %190 = vector.shape_cast %170 : vector<1x128xf32> to vector<1x1x128xf32>
    %191 = vector.broadcast %190 : vector<1x1x128xf32> to vector<4x16x128xf32>
    %192 = arith.addf %189, %191 : vector<4x16x128xf32>
    %cst_58 = arith.constant 1.000000e+00 : f32
    %193 = vector.broadcast %cst_58 : f32 to vector<4x1x128xf32>
    %194 = arith.addf %193, %16 : vector<4x1x128xf32>
    %195 = vector.broadcast %194 : vector<4x1x128xf32> to vector<4x16x128xf32>
    %196 = arith.mulf %192, %195 : vector<4x16x128xf32>
    %197 = vector.broadcast %18 : vector<4x1x128xf32> to vector<4x16x128xf32>
    %198 = arith.addf %196, %197 : vector<4x16x128xf32>
    %199 = vector.shape_cast %198 : vector<4x16x128xf32> to vector<64x128xf32>
    %200 = arith.truncf %199 : vector<64x128xf32> to vector<64x128xbf16>
    %c0_59 = arith.constant 0 : index
    %c0_60 = arith.constant 0 : index
    %201 = vector.load %arg13[%c0_59, %c0_60] : memref<128x512xbf16, #tpu.memory_space<vmem>>, vector<128x512xbf16>
    %cst_61 = arith.constant dense<0.000000e+00> : vector<64x512xf32>
    %202 = tpu.matmul %200, %201, %cst_61 {dimension_numbers = #tpu.dot_dimension_numbers<[1], [0], [0], [1], [0, 0, 1, 1], [], []>} : vector<64x128xbf16>, vector<128x512xbf16>, vector<64x512xf32> -> vector<64x512xf32>
    %c0_62 = arith.constant 0 : index
    %c0_63 = arith.constant 0 : index
    %203 = vector.load %arg14[%c0_62, %c0_63] : memref<1x512xf32, #tpu.memory_space<vmem>>, vector<1x512xf32>
    %204 = vector.broadcast %203 : vector<1x512xf32> to vector<64x512xf32>
    %205 = arith.addf %202, %204 : vector<64x512xf32>
    %cst_64 = arith.constant 0.000000e+00 : f32
    %206 = vector.broadcast %cst_64 : f32 to vector<64x512xf32>
    %207 = arith.maximumf %205, %206 : vector<64x512xf32>
    %208 = arith.truncf %207 : vector<64x512xf32> to vector<64x512xbf16>
    %c0_65 = arith.constant 0 : index
    %c0_66 = arith.constant 0 : index
    %209 = vector.load %arg15[%c0_65, %c0_66] : memref<512x128xbf16, #tpu.memory_space<vmem>>, vector<512x128xbf16>
    %cst_67 = arith.constant dense<0.000000e+00> : vector<64x128xf32>
    %210 = tpu.matmul %208, %209, %cst_67 {dimension_numbers = #tpu.dot_dimension_numbers<[1], [0], [0], [1], [0, 0, 1, 1], [], []>} : vector<64x512xbf16>, vector<512x128xbf16>, vector<64x128xf32> -> vector<64x128xf32>
    %c0_68 = arith.constant 0 : index
    %c0_69 = arith.constant 0 : index
    %211 = vector.load %arg16[%c0_68, %c0_69] : memref<1x128xf32, #tpu.memory_space<vmem>>, vector<1x128xf32>
    %212 = vector.broadcast %211 : vector<1x128xf32> to vector<64x128xf32>
    %213 = arith.addf %210, %212 : vector<64x128xf32>
    %214 = vector.shape_cast %213 : vector<64x128xf32> to vector<4x16x128xf32>
    %215 = vector.broadcast %20 : vector<4x1x128xf32> to vector<4x16x128xf32>
    %216 = arith.mulf %214, %215 : vector<4x16x128xf32>
    %217 = arith.addf %168, %216 : vector<4x16x128xf32>
    %c0_70 = arith.constant 0 : index
    %c0_71 = arith.constant 0 : index
    %c0_72 = arith.constant 0 : index
    %218 = vector.load %arg17[%c0_70, %c0_71, %c0_72] : memref<4x16x128xf32, #tpu.memory_space<vmem>>, vector<4x16x128xf32>
    tpu.vector_store %arg17[%c0_70, %c0_71, %c0_72], %217 {strides = array<i32>} : memref<4x16x128xf32, #tpu.memory_space<vmem>>, vector<4x16x128xf32>,
    return
  }
  func.func @transform_0(%arg0: i32) -> (i32, i32, i32) {
    %c0_i32 = arith.constant 0 : i32
    %c0_i32_0 = arith.constant 0 : i32
    %c0_i32_1 = arith.constant 0 : i32
    return %arg0, %c0_i32, %c0_i32_0 : i32, i32, i32
  }
  func.func @transform_1(%arg0: i32) -> (i32, i32, i32) {
    %c0_i32 = arith.constant 0 : i32
    %c0_i32_0 = arith.constant 0 : i32
    %c0_i32_1 = arith.constant 0 : i32
    return %arg0, %c0_i32, %c0_i32_0 : i32, i32, i32
  }
  func.func @transform_2(%arg0: i32) -> (i32, i32) {
    %c0_i32 = arith.constant 0 : i32
    %c0_i32_0 = arith.constant 0 : i32
    %c0_i32_1 = arith.constant 0 : i32
    return %c0_i32, %c0_i32_0 : i32, i32
  }
  func.func @transform_3(%arg0: i32) -> (i32, i32) {
    %c0_i32 = arith.constant 0 : i32
    %c0_i32_0 = arith.constant 0 : i32
    %c0_i32_1 = arith.constant 0 : i32
    return %c0_i32, %c0_i32_0 : i32, i32
  }
  func.func @transform_4(%arg0: i32) -> (i32, i32) {
    %c0_i32 = arith.constant 0 : i32
    %c0_i32_0 = arith.constant 0 : i32
    %c0_i32_1 = arith.constant 0 : i32
    return %c0_i32, %c0_i32_0 : i32, i32
  }
  func.func @transform_5(%arg0: i32) -> (i32, i32) {
    %c0_i32 = arith.constant 0 : i32
    %c0_i32_0 = arith.constant 0 : i32
    %c0_i32_1 = arith.constant 0 : i32
    return %c0_i32, %c0_i32_0 : i32, i32
  }
  func.func @transform_6(%arg0: i32) -> (i32, i32) {
    %c0_i32 = arith.constant 0 : i32
    %c0_i32_0 = arith.constant 0 : i32
    %c0_i32_1 = arith.constant 0 : i32
    return %c0_i32, %c0_i32_0 : i32, i32
  }
  func.func @transform_7(%arg0: i32) -> (i32, i32) {
    %c0_i32 = arith.constant 0 : i32
    %c0_i32_0 = arith.constant 0 : i32
    %c0_i32_1 = arith.constant 0 : i32
    return %c0_i32, %c0_i32_0 : i32, i32
  }
  func.func @transform_8(%arg0: i32) -> (i32, i32) {
    %c0_i32 = arith.constant 0 : i32
    %c0_i32_0 = arith.constant 0 : i32
    %c0_i32_1 = arith.constant 0 : i32
    return %c0_i32, %c0_i32_0 : i32, i32
  }
  func.func @transform_9(%arg0: i32) -> (i32, i32) {
    %c0_i32 = arith.constant 0 : i32
    %c0_i32_0 = arith.constant 0 : i32
    %c0_i32_1 = arith.constant 0 : i32
    return %c0_i32, %c0_i32_0 : i32, i32
  }
  func.func @transform_10(%arg0: i32) -> (i32, i32) {
    %c0_i32 = arith.constant 0 : i32
    %c0_i32_0 = arith.constant 0 : i32
    %c0_i32_1 = arith.constant 0 : i32
    return %c0_i32, %c0_i32_0 : i32, i32
  }
  func.func @transform_11(%arg0: i32) -> (i32, i32) {
    %c0_i32 = arith.constant 0 : i32
    %c0_i32_0 = arith.constant 0 : i32
    %c0_i32_1 = arith.constant 0 : i32
    return %c0_i32, %c0_i32_0 : i32, i32
  }
  func.func @transform_12(%arg0: i32) -> (i32, i32) {
    %c0_i32 = arith.constant 0 : i32
    %c0_i32_0 = arith.constant 0 : i32
    %c0_i32_1 = arith.constant 0 : i32
    return %c0_i32, %c0_i32_0 : i32, i32
  }
  func.func @transform_13(%arg0: i32) -> (i32, i32) {
    %c0_i32 = arith.constant 0 : i32
    %c0_i32_0 = arith.constant 0 : i32
    %c0_i32_1 = arith.constant 0 : i32
    return %c0_i32, %c0_i32_0 : i32, i32
  }
  func.func @transform_14(%arg0: i32) -> (i32, i32) {
    %c0_i32 = arith.constant 0 : i32
    %c0_i32_0 = arith.constant 0 : i32
    %c0_i32_1 = arith.constant 0 : i32
    return %c0_i32, %c0_i32_0 : i32, i32
  }
  func.func @transform_15(%arg0: i32) -> (i32, i32) {
    %c0_i32 = arith.constant 0 : i32
    %c0_i32_0 = arith.constant 0 : i32
    %c0_i32_1 = arith.constant 0 : i32
    return %c0_i32, %c0_i32_0 : i32, i32
  }
  func.func @transform_16(%arg0: i32) -> (i32, i32, i32) {
    %c0_i32 = arith.constant 0 : i32
    %c0_i32_0 = arith.constant 0 : i32
    %c0_i32_1 = arith.constant 0 : i32
    return %arg0, %c0_i32, %c0_i32_0 : i32, i32, i32
  }
}

</mosaic_0001>

<bundles_post_ra>
// kernel: tpu_custom_call.1
= control target key start
LH: loop header
LB: loop body
LE: loop exit
PB: predicated region body
PF: predicated region fallthrough
CT: control target
= control target key end

     0   :  { %s9704_s0 = inlined_call_operand.hbm [shape: f32[8,16,128], index: 0, kind: input, shape index: {}]   ;;  %s9705_s1 = inlined_call_operand.hbm [shape: f32[8,1,128], index: 1, kind: input, shape index: {}]   ;;  %s9706_s2 = inlined_call_operand.hbm [shape: bf16[128,768], index: 2, kind: input, shape index: {}]   ;;  %s9707_s3 = inlined_call_operand.hbm [shape: f32[1,768], index: 3, kind: input, shape index: {}]   ;;  %s9708_s4 = inlined_call_operand.hbm [shape: f32[1,128], index: 4, kind: input, shape index: {}]   ;;  %s9709_s5 = inlined_call_operand.hbm [shape: f32[1,128], index: 5, kind: input, shape index: {}]   ;;  %s9710_s6 = inlined_call_operand.hbm [shape: f32[1,128], index: 6, kind: input, shape index: {}]   ;;  %s9711_s7 = inlined_call_operand.hbm [shape: f32[1,128], index: 7, kind: input, shape index: {}]   ;;  %s9712_s8 = inlined_call_operand.hbm [shape: bf16[128,1536], index: 8, kind: input, shape index: {}]   ;;  %s9713_s9 = inlined_call_operand.vmem [shape: f32[1,1536], index: 9, kind: input, shape index: {}]   ;;  %s9714_s10 = inlined_call_operand.hbm [shape: bf16[512,128], index: 10, kind: input, shape index: {}]   ;;  %s9715_s11 = inlined_call_operand.vmem [shape: f32[1,128], index: 11, kind: input, shape index: {}]   ;;  %s9716_s12 = inlined_call_operand.hbm [shape: bf16[128,512], index: 12, kind: input, shape index: {}]   ;;  %s9717_s13 = inlined_call_operand.vmem [shape: f32[1,512], index: 13, kind: input, shape index: {}]   ;;  %s9718_s14 = inlined_call_operand.hbm [shape: bf16[512,128], index: 14, kind: input, shape index: {}]   ;;  %s9719_s15 = inlined_call_operand.vmem [shape: f32[1,128], index: 15, kind: input, shape index: {}]   ;;  %s9720_s16 = inlined_call_operand.hbm [shape: f32[8,16,128], index: 16, kind: output, shape index: {}]  }
   0x1   :  { %9770 = sst [smem:[#allocation85_spill]] %s9704_s0 }
   0x2   :  { %9771 = sst [smem:[#allocation86_spill]] %s9706_s2 }
   0x3   :  { %9772 = sst [smem:[#allocation87_spill]] %s9707_s3 }
   0x4   :  { %9773 = sst [smem:[#allocation88_spill]] %s9708_s4 }
   0x5   :  { %9774 = sst [smem:[#allocation89_spill]] %s9709_s5 }
   0x6   :  { %9775 = sst [smem:[#allocation90_spill]] %s9710_s6 }
   0x7   :  { %9776 = sst [smem:[#allocation91_spill]] %s9711_s7 }
   0x8   :  { %9777 = sst [smem:[#allocation92_spill]] %s9712_s8 }
   0x9   :  { %9778 = sst [smem:[#allocation93_spill]] %s9714_s10 }
   0xa   :  { %9779 = sst [smem:[#allocation94_spill]] %s9716_s12 }
   0xb   :  { %9780 = sst [smem:[#allocation95_spill]] %s9717_s13 }
   0xc   :  { %9781 = sst [smem:[#allocation96_spill]] %s9718_s14 }
   0xd   :  { %9782 = sst [smem:[#allocation97_spill]] %s9719_s15 }
   0xe   :  { %9783 = sst [smem:[#allocation98_spill]] %s9720_s16 }
   0xf   :  { %21 = vsyncpa [#allocation3], 0 }
  0x10   :  { %23 = vsyncpa [#allocation3 + $0x1], 0 }
  0x11   :  { %24 = vsyncpa [#allocation6], 0 }
  0x12   :  { %26 = vsyncpa [#allocation6 + $0x1], 0 }
  0x13   :  { %27 = vsyncpa [#allocation9], 0 }
  0x14   :  { %28 = vsyncpa [#allocation12], 0 }
  0x15   :  { %29 = vsyncpa [#allocation15], 0 }
  0x16   :  { %30 = vsyncpa [#allocation18], 0 }
  0x17   :  { %31 = vsyncpa [#allocation21], 0 }
  0x18   :  { %32 = vsyncpa [#allocation4], 0 }
  0x19   :  { %34 = vsyncpa [#allocation4 + $0x1], 0  ;;  %s8026_s21 = smov 0   ;;  %s8028_s22 = smov 0  }
  0x1a   :  { %s8030_s23 = smov 0   ;;  %s8032_s24 = smov 0  }
  0x1b LB: > { %s7911_s25 = smov [#allocation7]   ;;  %s8047_s27 = sadd.s32 4294967295, %s7909_s24   ;;  %s7909_s24 = sphi %s8032_s24, %s9965_s24   ;;  %s7905_s23 = sphi %s8030_s23, %s9964_s23   ;;  %s7901_s22 = sphi %s8028_s22, %s9963_s22   ;;  %s7897_s21 = sphi %s8026_s21, %s9962_s21  }
  0x1c   : > { %s429_s26 = sshll.u32 %s7911_s25, 4  ;;  %p6113_p0 = scmp.ge.s32.totalorder %s7909_s24, 1  ;;  %s430_s26 = int_to_ptr.vmem [resolvable:$true] %s429_s26 }
  0x1d   : > { %p9723_p1 = scmp.eq.s32.totalorder %s8047_s27, 0  ;;  %p417_p2 = scmp.lt.s32.totalorder %s7909_s24, 3 }
  0x1e   : > { %s7912_s29 = smov [#allocation8]   ;;  %s7913_s17 = smov [#allocation11]  }
  0x1f   : > { %p8052_p3 = pnand %p6113_p0, %p417_p2  ;;  %s443_s30 = sshll.u32 %s7912_s29, 4  ;;  %s444_s30 = int_to_ptr.vmem [resolvable:$true] %s443_s30 }
  0x20   : > { %s465_s18 = sshll.u32 %s7913_s17, 4  ;;  %s7512_s20 = scalar_lea.vmem %s430_s26, 6144  ;;  %s8065_s18 = int_to_ptr.vmem [resolvable:$true] %s465_s18 }
  0x21   : > { %s9784_s28 = scalar_select %p8052_p3, 1, 0 }
  0x22   : > { %p6881_p5 = pneg %p8052_p3  ;;  %p7513_p8 = scmp.ne.s32.totalorder %s430_s26, %s7512_s20 }
  0x23   : > { %p7520_p11 = scmp.lt.s32.totalorder %s430_s26, %s430_s26  ;;  %p7521_p12 = scmp.lt.s32.totalorder %s7512_s20, %s7512_s20 }
  0x24   : > { %p8061_p6 = pnand %p6881_p5, %p9723_p1 }
  0x25   : > { %p7522_p13 = por %p7521_p12, %p7520_p11 }
  0x26   : > { %p8069_p7 = pneg %p8061_p6 }
  0x28   : > { %p7515_p9 = pnand %p7513_p8, %p8069_p7 }
  0x2a   : > { %p7516_p10 = pneg %p7515_p9 }
  0x2c   : > { %p7523_p0 = pnand %p7522_p13, %p7516_p10 }
  0x2e   : > { %7526 = shalt.err (!%p7523_p0)
}
  0x2f   : > { %s7914_s25 = smov 384   ;;  %s7915_s29 = smov 24  }
  0x30   : > { %s9787_s2 = sld [smem:[#allocation86_spill]]  ;;  %s7538_s15 = scalar_lea.vmem %s444_s30, 96 }
  0x31   : > { %p7539_p2 = scmp.ne.s32.totalorder %s444_s30, %s7538_s15  ;;  %p7546_p9 = scmp.lt.s32.totalorder %s444_s30, %s444_s30 }
  0x32   : > { %p7547_p4 = scmp.lt.s32.totalorder %s7538_s15, %s7538_s15 }
  0x33   : > { %p7541_p5 = pnand %p7539_p2, %p8069_p7 }
  0x34   : > { %p7548_p1 = por %p7547_p4, %p7546_p9 }
  0x35   : > { %p7542_p8 = pneg %p7541_p5 }
  0x36   : > { %6884 = dma.hbm_to_vmem [thread:$0]  (!%p8061_p6), %s9787_s2, 6144, %s430_s26, [#allocation6], %s7914_s25, %s7914_s25, %s7915_s29  }
  0x37   : > { %p7549_p11 = pnand %p7548_p1, %p7542_p8 }
  0x39   : > { %7552 = shalt.err (!%p7549_p11)
}
  0x3a   : > { %s9788_s3 = sld [smem:[#allocation87_spill]]  ;;  %s7564_s16 = scalar_lea.vmem %s8065_s18, 16 }
  0x3b   : > { %p7565_p10 = scmp.ne.s32.totalorder %s8065_s18, %s7564_s16  ;;  %s7571_s15 = scalar_lea.vmem %s8065_s18, 32 }
  0x3c   : > { %p7572_p1 = scmp.lt.s32.totalorder %s8065_s18, %s8065_s18  ;;  %p7573_p4 = scmp.lt.s32.totalorder %s7571_s15, %s7564_s16 }
  0x3d   : > { %p7567_p12 = pnand %p7565_p10, %p8069_p7 }
  0x3e   : > { %p7574_p0 = por %p7573_p4, %p7572_p1 }
  0x3f   : > { %p7568_p13 = pneg %p7567_p12 }
  0x40   : > { %6887 = dma.hbm_to_vmem [thread:$0]  (!%p8061_p6), %s9788_s3, 96, %s444_s30, [#allocation9]  }
  0x41   : > { %p7575_p2 = pnand %p7574_p0, %p7568_p13 }
  0x43   : > { %7578 = shalt.err (!%p7575_p2)
}
  0x44   : > { %s9789_s5 = sld [smem:[#allocation89_spill]]  ;;  %s7916_s30 = smov [#allocation14]  }
  0x45   : > { %s487_s25 = sshll.u32 %s7916_s30, 4  ;;  %s7917_s29 = smov [#allocation17]   ;;  %s488_s25 = int_to_ptr.vmem [resolvable:$true] %s487_s25 }
  0x46   : > { %s513_s17 = sshll.u32 %s7917_s29, 4  ;;  %s7590_s20 = scalar_lea.vmem %s488_s25, 16  ;;  %s514_s17 = int_to_ptr.vmem [resolvable:$true] %s513_s17 }
  0x47   : > { %p7591_p5 = scmp.ne.s32.totalorder %s488_s25, %s7590_s20  ;;  %s7597_s16 = scalar_lea.vmem %s488_s25, 32 }
  0x48   : > { %p7598_p11 = scmp.lt.s32.totalorder %s488_s25, %s488_s25  ;;  %p7599_p10 = scmp.lt.s32.totalorder %s7597_s16, %s7590_s20 }
  0x49   : > { %p7593_p8 = pnand %p7591_p5, %p8069_p7 }
  0x4a   : > { %6893 = dma.hbm_to_vmem [thread:$0]  (!%p8061_p6), %s9789_s5, 16, %s8065_s18, [#allocation12]  }
  0x4b   : > { %p7594_p9 = pneg %p7593_p8  ;;  %p7600_p12 = por %p7599_p10, %p7598_p11 }
  0x4d   : > { %p7601_p13 = pnand %p7600_p12, %p7594_p9 }
  0x4f   : > { %7604 = shalt.err (!%p7601_p13)
}
  0x50   : > { %s9790_s7 = sld [smem:[#allocation91_spill]]  ;;  %s7616_s13 = scalar_lea.vmem %s514_s17, 4096 }
  0x51   : > { %p7617_p1 = scmp.ne.s32.totalorder %s514_s17, %s7616_s13  ;;  %p7624_p2 = scmp.lt.s32.totalorder %s514_s17, %s514_s17 }
  0x52   : > { %p7625_p5 = scmp.lt.s32.totalorder %s7616_s13, %s7616_s13 }
  0x53   : > { %p7619_p4 = pnand %p7617_p1, %p8069_p7 }
  0x54   : > { %p7626_p8 = por %p7625_p5, %p7624_p2 }
  0x55   : > { %p7620_p0 = pneg %p7619_p4 }
  0x56   : > { %6899 = dma.hbm_to_vmem [thread:$0]  (!%p8061_p6), %s9790_s7, 16, %s488_s25, [#allocation15]  }
  0x57   : > { %p7627_p3 = pnand %p7626_p8, %p7620_p0 }
  0x59   : > { %7630 = shalt.err (!%p7627_p3)
}
  0x5a   : > { %s9725_s26 = smov 64   ;;  %s7919_s30 = smov 4  }
  0x5b   : > { %s9791_s10 = sld [smem:[#allocation93_spill]]  ;;  %s7920_s20 = smov [#allocation10]  }
  0x5c   : > { %s454_s16 = sshll.u32 %s7920_s20, 4  ;;  %s7921_s15 = smov [#allocation13]   ;;  %s455_s16 = int_to_ptr.vmem [resolvable:$true] %s454_s16 }
  0x5d   : > { %s476_s18 = sshll.u32 %s7921_s15, 4  ;;  %s7642_s13 = scalar_lea.vmem %s455_s16, 16  ;;  %s477_s18 = int_to_ptr.vmem [resolvable:$true] %s476_s18 }
  0x5e   : > { %p7643_p9 = scmp.ne.s32.totalorder %s455_s16, %s7642_s13  ;;  %s7649_s2 = scalar_lea.vmem %s455_s16, 32 }
  0x5f   : > { %p7650_p10 = scmp.lt.s32.totalorder %s455_s16, %s455_s16  ;;  %p7651_p12 = scmp.lt.s32.totalorder %s7649_s2, %s7642_s13 }
  0x60   : > { %p7645_p3 = pnand %p7643_p9, %p8069_p7 }
  0x61   : > { %6905 = dma.hbm_to_vmem [thread:$0]  (!%p8061_p6), %s9791_s10, 4096, %s514_s17, [#allocation18], %s9725_s26, %s9725_s26, %s7919_s30  }
  0x62   : > { %p7646_p11 = pneg %p7645_p3  ;;  %p7652_p13 = por %p7651_p12, %p7650_p10 }
  0x64   : > { %p7653_p1 = pnand %p7652_p13, %p7646_p11 }
  0x66   : > { %7656 = shalt.err (!%p7653_p1)
}
  0x67   : > { %s9792_s4 = sld [smem:[#allocation88_spill]]  ;;  %s7668_s29 = scalar_lea.vmem %s477_s18, 16 }
  0x68   : > { %p7669_p4 = scmp.ne.s32.totalorder %s477_s18, %s7668_s29  ;;  %s7675_s20 = scalar_lea.vmem %s477_s18, 32 }
  0x69   : > { %p7676_p5 = scmp.lt.s32.totalorder %s477_s18, %s477_s18  ;;  %p7677_p8 = scmp.lt.s32.totalorder %s7675_s20, %s7668_s29 }
  0x6a   : > { %p7671_p0 = pnand %p7669_p4, %p8069_p7 }
  0x6b   : > { %p7678_p9 = por %p7677_p8, %p7676_p5 }
  0x6c   : > { %p7672_p2 = pneg %p7671_p0 }
  0x6d   : > { %6890 = dma.hbm_to_vmem [thread:$0]  (!%p8061_p6), %s9792_s4, 16, %s455_s16, [#allocation9]  }
  0x6e   : > { %p7679_p3 = pnand %p7678_p9, %p7672_p2 }
  0x70   : > { %7682 = shalt.err (!%p7679_p3)
}
  0x71   : > { %s9793_s6 = sld [smem:[#allocation90_spill]]  ;;  %s7922_s16 = smov [#allocation16]  }
  0x72   : > { %s497_s13 = sshll.u32 %s7922_s16, 4  ;;  %s498_s13 = int_to_ptr.vmem [resolvable:$true] %s497_s13 }
  0x73   : > { %s7694_s25 = scalar_lea.vmem %s498_s13, 12288  ;;  %p7702_p13 = scmp.lt.s32.totalorder %s498_s13, %s498_s13 }
  0x74   : > { %p7695_p11 = scmp.ne.s32.totalorder %s498_s13, %s7694_s25  ;;  %p7703_p1 = scmp.lt.s32.totalorder %s7694_s25, %s7694_s25 }
  0x76   : > { %p7697_p10 = pnand %p7695_p11, %p8069_p7  ;;  %p7704_p4 = por %p7703_p1, %p7702_p13 }
  0x77   : > { %6896 = dma.hbm_to_vmem [thread:$0]  (!%p8061_p6), %s9793_s6, 16, %s477_s18, [#allocation12]  }
  0x78   : > { %p7698_p12 = pneg %p7697_p10 }
  0x7a   : > { %p7705_p0 = pnand %p7704_p4, %p7698_p12 }
  0x7c   : > { %7708 = shalt.err (!%p7705_p0)
}
  0x7d   : > { %s7923_s17 = smov 768   ;;  %s7924_s29 = smov 48  }
  0x7e   : > { %s9794_s8 = sld [smem:[#allocation92_spill]]  ;;  %s7925_s2 = smov [#allocation19]  }
  0x7f   : > { %s529_s15 = sshll.u32 %s7925_s2, 4  ;;  %s530_s15 = int_to_ptr.vmem [resolvable:$true] %s529_s15 }
  0x80   : > { %s7720_s16 = scalar_lea.vmem %s530_s15, 4096  ;;  %p7728_p9 = scmp.lt.s32.totalorder %s530_s15, %s530_s15 }
  0x81   : > { %p7721_p2 = scmp.ne.s32.totalorder %s530_s15, %s7720_s16  ;;  %p7729_p3 = scmp.lt.s32.totalorder %s7720_s16, %s7720_s16 }
  0x83   : > { %p7723_p5 = pnand %p7721_p2, %p8069_p7  ;;  %p7730_p11 = por %p7729_p3, %p7728_p9 }
  0x84   : > { %6902 = dma.hbm_to_vmem [thread:$0]  (!%p8061_p6), %s9794_s8, 12288, %s498_s13, [#allocation15], %s7923_s17, %s7923_s17, %s7924_s29  }
  0x85   : > { %p7724_p8 = pneg %p7723_p5 }
  0x87   : > { %p7731_p10 = pnand %p7730_p11, %p7724_p8 }
  0x89   : > { %7734 = shalt.err (!%p7731_p10)
}
  0x8a   : > { %s7926_s25 = smov 256   ;;  %s9726_s26 = smov 16  }
  0x8b   : > { %s9795_s12 = sld [smem:[#allocation94_spill]]  ;;  %s7928_s29 = smov [#allocation20]  }
  0x8c   : > { %s545_s20 = sshll.u32 %s7928_s29, 4  ;;  %s546_s20 = int_to_ptr.vmem [resolvable:$true] %s545_s20 }
  0x8d   : > { %s7746_s18 = scalar_lea.vmem %s546_s20, 4096  ;;  %p7754_p4 = scmp.lt.s32.totalorder %s546_s20, %s546_s20 }
  0x8e   : > { %p7747_p12 = scmp.ne.s32.totalorder %s546_s20, %s7746_s18  ;;  %p7755_p0 = scmp.lt.s32.totalorder %s7746_s18, %s7746_s18 }
  0x90   : > { %p7749_p13 = pnand %p7747_p12, %p8069_p7  ;;  %p7756_p2 = por %p7755_p0, %p7754_p4 }
  0x91   : > { %6908 = dma.hbm_to_vmem [thread:$0]  (!%p8061_p6), %s9795_s12, 4096, %s530_s15, [#allocation18], %s7926_s25, %s7926_s25, %s9726_s26  }
  0x92   : > { %p7750_p1 = pneg %p7749_p13 }
  0x94   : > { %p7757_p5 = pnand %p7756_p2, %p7750_p1 }
  0x96   : > { %7760 = shalt.err (!%p7757_p5)
}
  0x97   : > { %s9796_s2 = smov 64   ;;  %s9797_s14 = sld [smem:[#allocation96_spill]] }
  0x98   : > { %s6112_s0 = sadd.s32 4294967294, %s7909_s24   ;;  %s8158_s19 = sadd.s32 1, %s7909_s24  }
  0x99   : > { %s44_s25 = ssub.s32 %s7909_s24, %s8158_s19  ;;  %s47_s13 = sadd.s32 1, %s7905_s23 }
  0x9a   : > { %p45_p7 = scmp.eq.s32.totalorder %s44_s25, 0  ;;  %p54_p8 = scmp.ne.s32.totalorder %s7905_s23, %s7901_s22 }
  0x9b   : > { %p55_p9 = scmp.eq.s32.totalorder %s7909_s24, 0  ;;  %p60_p3 = scmp.ne.s32.totalorder %s7901_s22, %s7897_s21 }
  0x9c   : > { %s8169_s17 = scalar_select %p45_p7, %s7905_s23, %s47_s13  }
  0x9d   : > { %6911 = dma.hbm_to_vmem [thread:$0]  (!%p8061_p6), %s9797_s14, 4096, %s546_s20, [#allocation21], %s9796_s2, %s9796_s2, %s7919_s30  }
  0x9e   : > { %p8171_p11 = por %p55_p9, %p54_p8  ;;  %p9799_p10 = scmp.eq.s32.totalorder %s8047_s27, 0 }
  0x9f   : > { %p404_p12 = scmp.eq.s32.totalorder %s8047_s27, 1  ;;  %p410_p13 = scmp.eq.s32.totalorder %s6112_s0, 1 }
  0xa0   : > { %p8177_p6 = por %p9799_p10, %p60_p3  ;;  %p6933_p1 = scmp.lt.s32.totalorder %s7909_s24, 2 }
  0xa1   : > { %s8184_s20 = sand.u32 1, %s7905_s23   ;;  %p8186_p4 = por %p404_p12, %p54_p8 }
  0xa2   : > { %p8190_p0 = por %p410_p13, %p60_p3  ;;  %s6125_s16 = sshll.u32 %s8184_s20, 6 }
  0xa3   : > { %s9801_s18 = scalar_select %p8186_p4, 1, 0 }
  0xa4   : > { %s9802_s2 = scalar_select %p8190_p0, 1, 0 }
  0xa5   : > { %s6415_s15 = sshll.u32 %s7909_s24, 10  ;;  %s9803_s26 = sld [smem:[#allocation85_spill]] }
  0xa6   : > { %s566_s0 = scalar_lea.vmem [#allocation2], %s6125_s16  ;;  %p8205_p2 = pnand %p6933_p1, %p8171_p11 }
  0xa7   : > { %s574_s4 = sshll.u32 %s566_s0, 4  ;;  %s563_s7 = scalar_lea.sflag [#allocation3], %s8184_s20  ;;  %s8201_s4 = int_to_ptr.vmem [resolvable:$true] %s574_s4 }
  0xa8   : > { %p7763_p7 = pneg %p8205_p2 }
  0xab   : > { %s8199_s3 = scalar_lea.hbm %s9803_s26, %s6415_s15  ;;  %s7766_s29 = scalar_lea.hbm %s9803_s26, 2048 }
  0xac   : > { %s7761_s8 = scalar_lea.hbm %s8199_s3, 1024  ;;  %p7767_p3 = scmp.lt.s32.totalorder %s8199_s3, %s9803_s26 }
  0xad   : > { %p7762_p5 = scmp.ne.s32.totalorder %s8199_s3, %s7761_s8  ;;  %p7768_p11 = scmp.lt.s32.totalorder %s7766_s29, %s7761_s8 }
  0xaf   : > { %p7764_p8 = pnand %p7763_p7, %p7762_p5  ;;  %p7769_p10 = por %p7768_p11, %p7767_p3 }
  0xb1   : > { %p7765_p9 = pneg %p7764_p8 }
  0xb3   : > { %p7770_p12 = pnand %p7769_p10, %p7765_p9 }
  0xb5   : > { %7773 = shalt.err (!%p7770_p12)
}
  0xb6   : > { %s7774_s0 = scalar_lea.vmem %s8201_s4, 1024  ;;  %s7929_s16 = smov [#allocation2]  }
  0xb7   : > { %p7775_p13 = scmp.ne.s32.totalorder %s8201_s4, %s7774_s0  ;;  %s7779_s15 = sshll.u32 %s7929_s16, 4  ;;  %s7780_s15 = int_to_ptr.vmem [resolvable:$false] %s7779_s15 }
  0xb8   : > { %s7781_s6 = scalar_lea.vmem %s7780_s15, 2048  ;;  %p7782_p8 = scmp.lt.s32.totalorder %s8201_s4, %s7780_s15 }
  0xb9   : > { %p7777_p1 = pnand %p7775_p13, %p7763_p7  ;;  %p7783_p0 = scmp.lt.s32.totalorder %s7781_s6, %s7774_s0 }
  0xbb   : > { %p7778_p5 = pneg %p7777_p1  ;;  %p7784_p4 = por %p7783_p0, %p7782_p8 }
  0xbd   : > { %p7785_p3 = pnand %p7784_p4, %p7778_p5 }
  0xbf   : > { %7788 = shalt.err (!%p7785_p3)
}
  0xc0   : > { %s7930_s8 = smov 128   ;;  %s7931_s29 = smov 8  }
  0xc1   : > { %6915 = dma.hbm_to_vmem [thread:$0]  (!%p8205_p2), %s8199_s3, 1024, %s8201_s4, %s563_s7, %s7930_s8, %s7930_s8, %s7931_s29  }
  0xc2   : > { %s6129_s25 = sshll.u32 %s8184_s20, 2  ;;  %s6416_s13 = sshll.u32 %s7909_s24, 6 }
  0xc3   : > { %s8242_s0 = scalar_lea.hbm %s9705_s1, %s6416_s13  ;;  %s588_s15 = scalar_lea.vmem [#allocation5], %s6129_s25 }
  0xc4   : > { %s595_s10 = sshll.u32 %s588_s15, 4  ;;  %s9805_s12 = sand.u32 1, %s7909_s24   ;;  %s8244_s10 = int_to_ptr.vmem [resolvable:$true] %s595_s10 }
  0xc5   : > { %s8248_s14 = scalar_lea.sflag [#allocation6], %s9805_s12  ;;  %s7789_s26 = scalar_lea.hbm %s8242_s0, 64 }
  0xc6   : > { %p7790_p4 = scmp.ne.s32.totalorder %s8242_s0, %s7789_s26  ;;  %s7794_s7 = scalar_lea.hbm %s9705_s1, 128 }
  0xc7   : > { %p7795_p11 = scmp.lt.s32.totalorder %s8242_s0, %s9705_s1  ;;  %p7796_p10 = scmp.lt.s32.totalorder %s7794_s7, %s7789_s26 }
  0xc8   : > { %p7792_p0 = pnand %p7790_p4, %p7763_p7 }
  0xc9   : > { %p7797_p12 = por %p7796_p10, %p7795_p11 }
  0xca   : > { %p7793_p9 = pneg %p7792_p0 }
  0xcc   : > { %p7798_p13 = pnand %p7797_p12, %p7793_p9 }
  0xce   : > { %7801 = shalt.err (!%p7798_p13)
}
  0xcf   : > { %s7802_s12 = scalar_lea.vmem %s8244_s10, 64  ;;  %s7932_s29 = smov [#allocation5]  }
  0xd0   : > { %p7803_p1 = scmp.ne.s32.totalorder %s8244_s10, %s7802_s12  ;;  %s7807_s25 = sshll.u32 %s7932_s29, 4  ;;  %s7808_s25 = int_to_ptr.vmem [resolvable:$false] %s7807_s25 }
  0xd1   : > { %s7809_s13 = scalar_lea.vmem %s7808_s25, 128  ;;  %p7810_p3 = scmp.lt.s32.totalorder %s8244_s10, %s7808_s25 }
  0xd2   : > { %p7805_p5 = pnand %p7803_p1, %p7763_p7  ;;  %p7811_p4 = scmp.lt.s32.totalorder %s7809_s13, %s7802_s12 }
  0xd4   : > { %p7806_p8 = pneg %p7805_p5  ;;  %p7812_p0 = por %p7811_p4, %p7810_p3 }
  0xd6   : > { %p7813_p11 = pnand %p7812_p0, %p7806_p8 }
  0xd8   : > { %7816 = shalt.err (!%p7813_p11)
}
  0xd9   : > { %s7933_s26 = smov 1   ;;  %s9806_s16 = smov 16  }
  0xda   : > { %6918 = dma.hbm_to_vmem [thread:$0]  (!%p8205_p2), %s8242_s0, 64, %s8244_s10, %s8248_s14, %s9806_s16, %s9806_s16, %s7933_s26  }
  0xdb   : > { %p9807_p7 = scmp.ne.s32.totalorder %s9784_s28, 0 }
  0xdd   : > { %607 = sbr.rel (%p9807_p7) target bundleno = 3468 (0xd8c), region = 84 }
  0xe2   : > { %s8278_s6 = sand.u32 1, %s7901_s22  }
  0xe3   : > { %s6133_s15 = sshll.u32 %s8278_s6, 6  ;;  %s610_s3 = scalar_lea.sflag [#allocation3], %s8278_s6 }
  0xe4   : > { %s8284_s5 = scalar_lea.vmem [#allocation2], %s6133_s15 }
  0xe5   : > { %7860 = dma.done.wait (%p8177_p6), %s610_s3, 1024  }
  0xe6   : > { %7862 = vsyncadd (%p8177_p6), %s610_s3, 4294966272  ;;  %s618_s10 = sand.u32 1, %s8047_s27   ;;  %s6134_s14 = sshll.u32 %s8278_s6, 2 }
  0xe7   : > { %s619_s28 = scalar_lea.sflag [#allocation6], %s618_s10  ;;  %s8292_s0 = scalar_lea.vmem [#allocation5], %s6134_s14 }
  0xe8   : > { %7864 = dma.done.wait (%p8177_p6), %s619_s28, 64  }
  0xe9   : > { %7866 = vsyncadd (%p8177_p6), %s619_s28, 4294967232  ;;  %p9808_p2 = scmp.eq.s32.totalorder %s8047_s27, 0 }
  0xeb   : > { %7868 = dma.done.wait (%p9808_p2), [#allocation6], 6144   ;;  %p9809_p9 = pmov %p9808_p2 }
  0xec   : > { %p9810_p10 = pmov %p9808_p2 }
  0xed   : > { %7870 = vsyncadd (%p9809_p9), [#allocation6], 4294961152 }
  0xee   : > { %7872 = dma.done.wait (%p9810_p10), [#allocation9], 112   ;;  %p9811_p12 = pmov %p9808_p2 }
  0xef   : > { %p9812_p13 = pmov %p9808_p2 }
  0xf0   : > { %7874 = vsyncadd (%p9811_p12), [#allocation9], 4294967184 }
  0xf1   : > { %7876 = dma.done.wait (%p9812_p13), [#allocation12], 32   ;;  %p9813_p1 = pmov %p9808_p2 }
  0xf3   : > { %7878 = vsyncadd (%p9813_p1), [#allocation12], 4294967264  ;;  %p9814_p6 = pmov %p9813_p1 }
  0xf4   : > { %p9815_p5 = pmov %p9813_p1 }
  0xf5   : > { %7880 = dma.done.wait (%p9814_p6), [#allocation15], 12304  }
  0xf6   : > { %7882 = vsyncadd (%p9815_p5), [#allocation15], 4294954992  ;;  %p9816_p8 = pmov %p9813_p1 }
  0xf7   : > { %p9817_p3 = pmov %p9813_p1 }
  0xf8   : > { %7884 = dma.done.wait (%p9816_p8), [#allocation18], 8192  }
  0xf9   : > { %7886 = vsyncadd (%p9817_p3), [#allocation18], 4294959104  ;;  %p9818_p4 = pmov %p9813_p1 }
  0xfa   : > { %p9819_p0 = pmov %p9813_p1 }
  0xfb   : > { %7888 = dma.done.wait (%p9818_p4), [#allocation21], 4096  }
  0xfc   : > { %7890 = vsyncadd (%p9819_p0), [#allocation21], 4294963200  ;;  %v9729_v0 = vmov 0   ;;  %v8325_v1 = vld [vmem:[%s8284_s5] sm:$0xff]  ;;  %v8328_v2 = vld [vmem:[%s8284_s5 + $0x10] sm:$0xff]  ;;  %vm825_vm0 = vcmask 1041409  }
  0xfd   : > { %1107 = vmatprep.mubr.bf16.mxu0 %v9729_v0  ;;  %1148 = vmatprep.mubr.bf16.mxu1 %v9729_v0  ;;  %v8333_v3 = vld [vmem:[%s8284_s5 + $0x8] sm:$0xff]  ;;  %v8336_v4 = vld [vmem:[%s8284_s5 + $0x18] sm:$0xff]  ;;  %v8341_v8 = vld [vmem:[%s8284_s5 + $0x20] sm:$0xff]  ;;  %vm828_vm1 = vcmask 1042434   ;;  %vm831_vm2 = vcmask 1043459   ;;  %vm7937_vm3 = vmmov 0  }
  0xfe   : > { %1358 = vadd.xlane.f32.xlu0 %v8325_v1  ;;  %1362 = vadd.xlane.f32.xlu1 %v8328_v2  ;;  %v7004_v5 = vld [vmem:[#allocation7 + $0x154] ss:$24 sps:$4 sm:$0xff]   ;;  %v7006_v6 = vld [vmem:[#allocation7 + $0x150] ss:$24 sps:$4 sm:$0xff]   ;;  %v7007_v7 = vld [vmem:[#allocation7 + $0x124] ss:$24 sps:$4 sm:$0xff]  }
  0xff   : > { %v8344_v9 = vld [vmem:[%s8284_s5 + $0x28] sm:$0xff]  ;;  %1075 = vmatprep.subr.bf16.mxu0 %v7004_v5  ;;  %v7010_v11 = vld [vmem:[#allocation7 + $0xf4] ss:$24 sps:$4 sm:$0xff]   ;;  %v7012_v14 = vld [vmem:[#allocation7 + $0xf0] ss:$24 sps:$4 sm:$0xff]   ;;  %vm2805_vm4 = vcmask 130048  }
 0x100   : > { %1076 = vmatpush1.bf16.msra.mxu0 %v7006_v6  ;;  %v7009_v10 = vld [vmem:[#allocation7 + $0x120] ss:$24 sps:$4 sm:$0xff]   ;;  %v8349_v12 = vld [vmem:[%s8284_s5 + $0x30] sm:$0xff]  ;;  %v8352_v13 = vld [vmem:[%s8284_s5 + $0x38] sm:$0xff]  ;;  %s9951_s16 = sld [smem:[#allocation95_spill]]  ;;  %s9623_s14 = scalar_lea.vmem [#allocation22], %s6133_s15 }
 0x101   : > { %1077 = vmatprep.subr.bf16.mxu0 %v7007_v7  ;;  %v7013_v15 = vld [vmem:[#allocation7 + $0xc4] ss:$24 sps:$4 sm:$0xff]   ;;  %v7015_v16 = vld [vmem:[#allocation7 + $0xc0] ss:$24 sps:$4 sm:$0xff]   ;;  %v7016_v19 = vld [vmem:[#allocation7 + $0x94] ss:$24 sps:$4 sm:$0xff]  }
 0x102   : > { %1360 = vadd.xlane.f32.xlu0 %v8333_v3  ;;  %1364 = vadd.xlane.f32.xlu1 %v8336_v4  ;;  %v728_v17 = vld [vmem:[%s8292_s0] sm:$0x1]  ;;  %v729_v18 = vld [vmem:[%s8292_s0 + $0x1] sm:$0x1]  ;;  %v730_v20 = vld [vmem:[%s8292_s0 + $0x2] sm:$0x1] }
 0x103   : > { %v731_v21 = vld [vmem:[%s8292_s0 + $0x3] sm:$0x1]  ;;  %v733_v22 = vpack.c.bf16 %v729_v18, %v729_v18  ;;  %v734_v23 = vpack.c.bf16 %v730_v20, %v730_v20  ;;  %v7018_v24 = vld [vmem:[#allocation7 + $0x90] ss:$24 sps:$4 sm:$0xff]   ;;  %v732_v25 = vpack.c.bf16 %v728_v17, %v728_v17  ;;  %v7022_v33 = vld [vmem:[#allocation7 + $0x34] ss:$24 sps:$4 sm:$0xff]  }
 0x104   : > { %1078 = vmatpush1.bf16.msra.mxu0 %v7009_v10  ;;  %v7019_v27 = vld [vmem:[#allocation7 + $0x64] ss:$24 sps:$4 sm:$0xff]   ;;  %v735_v28 = vpack.c.bf16 %v731_v21, %v731_v21  ;;  %v7021_v30 = vld [vmem:[#allocation7 + $0x60] ss:$24 sps:$4 sm:$0xff]   ;;  %v7024_v36 = vld [vmem:[#allocation7 + $0x30] ss:$24 sps:$4 sm:$0xff]  }
 0x105   : > { %1079 = vmatprep.subr.bf16.mxu0 %v7010_v11  ;;  %v821_v26 = vunpack.c.l.b16 %v733_v22  ;;  %v822_v29 = vunpack.c.l.b16 %v734_v23  ;;  %v820_v31 = vunpack.c.l.b16 %v732_v25  ;;  %v7025_v38 = vld [vmem:[#allocation7 + $0x4] ss:$24 sps:$4 sm:$0xff]   ;;  %v7027_v41 = vld [vmem:[#allocation7] ss:$24 sps:$4 sm:$0xff]   ;;  %v7042_v50 = vld [vmem:[#allocation7 + $0x134] ss:$24 sps:$4 sm:$0xff]  }
 0x106   : > { %1366 = vadd.xlane.f32.xlu0 %v8341_v8  ;;  %1368 = vadd.xlane.f32.xlu1 %v8344_v9  ;;  %v823_v34 = vunpack.c.l.b16 %v735_v28  ;;  %v7028_v43 = vld [vmem:[#allocation7 + $0x15c] ss:$24 sps:$4 sm:$0xff]   ;;  %v7030_v44 = vld [vmem:[#allocation7 + $0x158] ss:$24 sps:$4 sm:$0xff]   ;;  %v7031_v45 = vld [vmem:[#allocation7 + $0x12c] ss:$24 sps:$4 sm:$0xff]  }
 0x107   : > { %v824_v32 = vrot.slane %v821_v26, 7  ;;  %v827_v35 = vrot.slane %v822_v29, 6  ;;  %v7036_v47 = vld [vmem:[#allocation7 + $0x164] ss:$24 sps:$4 sm:$0xff]   ;;  %1116 = vmatprep.subr.bf16.mxu1 %v7028_v43  ;;  %v7034_v48 = vld [vmem:[#allocation7 + $0x160] ss:$24 sps:$4 sm:$0xff]  }
 0x108   : > { %1080 = vmatpush1.bf16.msra.mxu0 %v7012_v14  ;;  %v830_v39 = vrot.slane %v823_v34, 5  ;;  %1117 = vmatpush1.bf16.msra.mxu1 %v7030_v44  ;;  %v7033_v49 = vld [vmem:[#allocation7 + $0x128] ss:$24 sps:$4 sm:$0xff]   ;;  %v7037_v51 = vld [vmem:[#allocation7 + $0xfc] ss:$24 sps:$4 sm:$0xff]   ;;  %s9955_s10 = sld [smem:[#allocation97_spill]] }
 0x109   : > { %1081 = vmatprep.subr.bf16.mxu0 %v7013_v15  ;;  %v826_v37 = vsel %vm825_vm0, %v824_v32, %v820_v31  ;;  %1118 = vmatprep.subr.bf16.mxu1 %v7031_v45  ;;  %v7040_v52 = vld [vmem:[#allocation7 + $0x130] ss:$24 sps:$4 sm:$0xff]   ;;  %v7048_v54 = vld [vmem:[#allocation7 + $0x104] ss:$24 sps:$4 sm:$0xff]   ;;  %v7046_v57 = vld [vmem:[#allocation7 + $0x100] ss:$24 sps:$4 sm:$0xff]  }
 0x10a   : > { %1370 = vadd.xlane.f32.xlu0 %v8349_v12  ;;  %1372 = vadd.xlane.f32.xlu1 %v8352_v13  ;;  %v829_v40 = vsel %vm828_vm1, %v827_v35, %v826_v37  ;;  %v7039_v53 = vld [vmem:[#allocation7 + $0xf8] ss:$24 sps:$4 sm:$0xff]   ;;  %v7043_v55 = vld [vmem:[#allocation7 + $0xcc] ss:$24 sps:$4 sm:$0xff]   ;;  %v7045_v56 = vld [vmem:[#allocation7 + $0xc8] ss:$24 sps:$4 sm:$0xff]  }
 0x10b   : > { %v832_v42 = vsel %vm831_vm2, %v830_v39, %v829_v40  ;;  %v7049_v58 = vld [vmem:[#allocation7 + $0x9c] ss:$24 sps:$4 sm:$0xff]   ;;  %v7052_v60 = vld [vmem:[#allocation7 + $0xd0] ss:$24 sps:$4 sm:$0xff]   ;;  %v7055_v63 = vld [vmem:[#allocation7 + $0x6c] ss:$24 sps:$4 sm:$0xff]  }
 0x10c   : > { %1082 = vmatpush1.bf16.msra.mxu0 %v7015_v16  ;;  %v8360_v46 = vpack.c.b16 %v832_v42, %v832_v42  ;;  %1119 = vmatpush1.bf16.msra.mxu1 %v7033_v49  ;;  %v7054_v59 = vld [vmem:[#allocation7 + $0xd4] ss:$24 sps:$4 sm:$0xff]   ;;  %v7051_v61 = vld [vmem:[#allocation7 + $0x98] ss:$24 sps:$4 sm:$0xff]   ;;  %v7060_v62 = vld [vmem:[#allocation7 + $0xa4] ss:$24 sps:$4 sm:$0xff]  }
 0x10d   : > { %1083 = vmatprep.subr.bf16.mxu0 %v7016_v19  ;;  %1120 = vmatprep.subr.bf16.mxu1 %v7037_v51  ;;  %v7058_v5 = vld [vmem:[#allocation7 + $0xa0] ss:$24 sps:$4 sm:$0xff]   ;;  %v7066_v7 = vld [vmem:[#allocation7 + $0x74] ss:$24 sps:$4 sm:$0xff]   ;;  %v7064_v11 = vld [vmem:[#allocation7 + $0x70] ss:$24 sps:$4 sm:$0xff]  }
 0x10e   : > { %v7057_v6 = vld [vmem:[#allocation7 + $0x68] ss:$24 sps:$4 sm:$0xff]   ;;  %v7061_v10 = vld [vmem:[#allocation7 + $0x3c] ss:$24 sps:$4 sm:$0xff]   ;;  %v7063_v14 = vld [vmem:[#allocation7 + $0x38] ss:$24 sps:$4 sm:$0xff]  }
 0x10f   : > { %v7072_v15 = vld [vmem:[#allocation7 + $0x44] ss:$24 sps:$4 sm:$0xff]   ;;  %v7070_v17 = vld [vmem:[#allocation7 + $0x40] ss:$24 sps:$4 sm:$0xff]   ;;  %v7075_v19 = vld [vmem:[#allocation7 + $0x14] ss:$24 sps:$4 sm:$0xff]  }
 0x110   : > { %1084 = vmatpush1.bf16.msra.mxu0 %v7018_v24  ;;  %1121 = vmatpush1.bf16.msra.mxu1 %v7039_v53  ;;  %v7067_v16 = vld [vmem:[#allocation7 + $0xc] ss:$24 sps:$4 sm:$0xff]   ;;  %v7069_v18 = vld [vmem:[#allocation7 + $0x8] ss:$24 sps:$4 sm:$0xff]   ;;  %s6418_s15 = sshll.u32 %s8047_s27, 10  ;;  %s5921_s28 = sshll.u32 %s9623_s14, 4  ;;  %s9659_s28 = int_to_ptr.vmem [resolvable:$true] %s5921_s28 }
 0x111   : > { %1085 = vmatprep.subr.bf16.mxu0 %v7019_v27  ;;  %1122 = vmatprep.subr.bf16.mxu1 %v7043_v55  ;;  %v7073_v20 = vld [vmem:[#allocation7 + $0x10] ss:$24 sps:$4 sm:$0xff]   ;;  %s9958_s4 = sld [smem:[#allocation98_spill]]  ;;  %s5907_s20 = scalar_lea.sflag [#allocation4], %s8278_s6 }
 0x112   : > { %v7079_v49 = vld [vmem:[#allocation16 + $0x2a8] ss:$48 sps:$4 sm:$0xff]   ;;  %v7082_v51 = vld [vmem:[#allocation16 + $0x240] ss:$48 sps:$4 sm:$0xff]   ;;  %v7090_v53 = vld [vmem:[#allocation16 + $0x1e4] ss:$48 sps:$4 sm:$0xff]  }
 0x113   : > { %v7088_v55 = vld [vmem:[#allocation16 + $0x1e0] ss:$48 sps:$4 sm:$0xff]   ;;  %s7817_s8 = scalar_lea.vmem %s9659_s28, 1024  ;;  %p9959_p7 = scmp.ne.s32.totalorder %s9801_s18, 0 }
 0x114   : > { %1086 = vmatpush1.bf16.msra.mxu0 %v7021_v30  ;;  %1123 = vmatpush1.bf16.msra.mxu1 %v7045_v56  ;;  %v7091_v56 = vld [vmem:[#allocation16 + $0x1e8] ss:$48 sps:$4 sm:$0xff]   ;;  %p7818_p11 = scmp.ne.s32.totalorder %s9659_s28, %s7817_s8  ;;  %s7938_s27 = smov [#allocation22]  }
 0x115   : > { %1087 = vmatprep.subr.bf16.mxu0 %v7022_v33  ;;  %1124 = vmatprep.subr.bf16.mxu1 %v7049_v58  ;;  %v7099_v58 = vld [vmem:[#allocation16 + $0x18c] ss:$48 sps:$4 sm:$0xff]   ;;  %s7821_s12 = sshll.u32 %s7938_s27, 4  ;;  %s7822_s12 = int_to_ptr.vmem [resolvable:$false] %s7821_s12 }
 0x116   : > { %p7819_p2 = pnand %p7818_p11, %p9959_p7  ;;  %s7823_s29 = scalar_lea.vmem %s7822_s12, 2048 }
 0x117   : > { %s9657_s7 = scalar_lea.hbm %s9958_s4, %s6418_s15  ;;  %p7824_p10 = scmp.lt.s32.totalorder %s9659_s28, %s7822_s12 }
 0x118   : > { %1088 = vmatpush1.bf16.msra.mxu0 %v7024_v36  ;;  %1125 = vmatpush1.bf16.msra.mxu1 %v7051_v61  ;;  %v7102_v61 = vld [vmem:[#allocation16 + $0x124] ss:$48 sps:$4 sm:$0xff]   ;;  %p7820_p9 = pneg %p7819_p2  ;;  %p7825_p12 = scmp.lt.s32.totalorder %s7823_s29, %s7817_s8 }
 0x119   : > { %1089 = vmatprep.subr.bf16.mxu0 %v7025_v38  ;;  %1126 = vmatprep.subr.bf16.mxu1 %v7055_v63  ;;  %v7100_v63 = vld [vmem:[#allocation16 + $0x120] ss:$48 sps:$4 sm:$0xff]  }
 0x11a   : > { %p7826_p13 = por %p7825_p12, %p7824_p10 }
 0x11c   : > { %1090 = vmatpush1.bf16.msra.mxu0 %v7027_v41  ;;  %1127 = vmatpush1.bf16.msra.mxu1 %v7057_v6  ;;  %v7108_v6 = vld [vmem:[#allocation16 + $0xc4] ss:$48 sps:$4 sm:$0xff]   ;;  %p7827_p1 = pnand %p7826_p13, %p7820_p9 }
 0x11d   : > { %1157 = vmatprep.subr.bf16.mxu0 %v7036_v47  ;;  %1128 = vmatprep.subr.bf16.mxu1 %v7061_v10  ;;  %v7081_v47 = vld [vmem:[#allocation16 + $0x2ac] ss:$48 sps:$4 sm:$0xff]   ;;  %v7106_v10 = vld [vmem:[#allocation16 + $0xc0] ss:$48 sps:$4 sm:$0xff]  }
 0x11f   : > { %1108 = vmatmul.mubr.bf16.vlgmr.msra.gmra.mxu0 %v8360_v46 }
 0x120   : > { %1158 = vmatpush1.bf16.msra.mxu0 %v7034_v48  ;;  %1189 = vmatprep.mubr.bf16.mxu0 %v9729_v0  ;;  %v7076_v48 = vld [vmem:[#allocation16 + $0x2a0] ss:$48 sps:$4 sm:$0xff]  }
 0x121   : > { %1159 = vmatprep.subr.bf16.mxu0 %v7042_v50  ;;  %1129 = vmatpush1.bf16.msra.mxu1 %v7063_v14  ;;  %v7087_v50 = vld [vmem:[#allocation16 + $0x24c] ss:$48 sps:$4 sm:$0xff]   ;;  %v7114_v14 = vld [vmem:[#allocation16 + $0x64] ss:$48 sps:$4 sm:$0xff]  }
 0x122   : > { %1130 = vmatprep.subr.bf16.mxu1 %v7067_v16  ;;  %v7112_v16 = vld [vmem:[#allocation16 + $0x60] ss:$48 sps:$4 sm:$0xff]  }
 0x124   : > { %1160 = vmatpush1.bf16.msra.mxu0 %v7040_v52  ;;  %v7085_v52 = vld [vmem:[#allocation16 + $0x248] ss:$48 sps:$4 sm:$0xff]  }
 0x125   : > { %1161 = vmatprep.subr.bf16.mxu0 %v7048_v54  ;;  %1131 = vmatpush1.bf16.msra.mxu1 %v7069_v18  ;;  %v7093_v54 = vld [vmem:[#allocation16 + $0x1ec] ss:$48 sps:$4 sm:$0xff]   ;;  %v7120_v18 = vld [vmem:[#allocation16 + $0x4] ss:$48 sps:$4 sm:$0xff]  }
 0x128   : > { %1162 = vmatpush1.bf16.msra.mxu0 %v7046_v57  ;;  %1149 = vmatmul.mubr.bf16.vlgmr.msra.gmra.mxu1 %v8360_v46  ;;  %v7096_v57 = vld [vmem:[#allocation16 + $0x184] ss:$48 sps:$4 sm:$0xff]  }
 0x129   : > { %1163 = vmatprep.subr.bf16.mxu0 %v7054_v59  ;;  %2215 = vmatprep.mubr.bf16.mxu1 %v9729_v0  ;;  %v7094_v59 = vld [vmem:[#allocation16 + $0x180] ss:$48 sps:$4 sm:$0xff]  }
 0x12c   : > { %1164 = vmatpush1.bf16.msra.mxu0 %v7052_v60  ;;  %v7097_v60 = vld [vmem:[#allocation16 + $0x188] ss:$48 sps:$4 sm:$0xff]  }
 0x12d   : > { %1165 = vmatprep.subr.bf16.mxu0 %v7060_v62  ;;  %v7105_v62 = vld [vmem:[#allocation16 + $0x12c] ss:$48 sps:$4 sm:$0xff]  }
 0x130   : > { %1166 = vmatpush1.bf16.msra.mxu0 %v7058_v5  ;;  %v7103_v5 = vld [vmem:[#allocation16 + $0x128] ss:$48 sps:$4 sm:$0xff]  }
 0x131   : > { %1167 = vmatprep.subr.bf16.mxu0 %v7066_v7  ;;  %v7111_v7 = vld [vmem:[#allocation16 + $0xcc] ss:$48 sps:$4 sm:$0xff]  }
 0x134   : > { %1168 = vmatpush1.bf16.msra.mxu0 %v7064_v11  ;;  %v7109_v11 = vld [vmem:[#allocation16 + $0xc8] ss:$48 sps:$4 sm:$0xff]  }
 0x135   : > { %1169 = vmatprep.subr.bf16.mxu0 %v7072_v15  ;;  %v7117_v15 = vld [vmem:[#allocation16 + $0x6c] ss:$48 sps:$4 sm:$0xff]  }
 0x138   : > { %1170 = vmatpush1.bf16.msra.mxu0 %v7070_v17  ;;  %v7115_v17 = vld [vmem:[#allocation16 + $0x68] ss:$48 sps:$4 sm:$0xff]  }
 0x139   : > { %1171 = vmatprep.subr.bf16.mxu0 %v7075_v19  ;;  %v7123_v19 = vld [vmem:[#allocation16 + $0xc] ss:$48 sps:$4 sm:$0xff]  }
 0x13c   : > { %1172 = vmatpush1.bf16.msra.mxu0 %v7073_v20  ;;  %v7118_v20 = vld [vmem:[#allocation16] ss:$48 sps:$4 sm:$0xff]  }
 0x13d   : > { %2256 = vmatprep.subr.bf16.mxu0 %v7081_v47 }
 0x13f   : > { %1190 = vmatmul.mubr.bf16.vlgmr.msra.gmra.mxu0 %v8360_v46  ;;  %v7078_v46 = vld [vmem:[#allocation16 + $0x2a4] ss:$48 sps:$4 sm:$0xff]  }
 0x140   : > { %2288 = vmatprep.mubr.bf16.mxu0 %v9729_v0  ;;  %2183 = vmatprep.subr.bf16.mxu1 %v7078_v46 }
 0x141   : > { %2184 = vmatpush1.bf16.msra.mxu1 %v7076_v48  ;;  %2257 = vmatpush1.bf16.msra.mxu0 %v7079_v49 }
 0x142   : > { %2258 = vmatprep.subr.bf16.mxu0 %v7087_v50 }
 0x145   : > { %2259 = vmatpush1.bf16.msra.mxu0 %v7085_v52 }
 0x146   : > { %2260 = vmatprep.subr.bf16.mxu0 %v7093_v54 }
 0x149   : > { %2261 = vmatpush1.bf16.msra.mxu0 %v7091_v56 }
 0x14a   : > { %2262 = vmatprep.subr.bf16.mxu0 %v7099_v58 }
 0x14d   : > { %2263 = vmatpush1.bf16.msra.mxu0 %v7097_v60 }
 0x14e   : > { %2264 = vmatprep.subr.bf16.mxu0 %v7105_v62 }
 0x151   : > { %2265 = vmatpush1.bf16.msra.mxu0 %v7103_v5 }
 0x152   : > { %2266 = vmatprep.subr.bf16.mxu0 %v7111_v7 }
 0x155   : > { %2267 = vmatpush1.bf16.msra.mxu0 %v7109_v11 }
 0x156   : > { %2268 = vmatprep.subr.bf16.mxu0 %v7117_v15 }
 0x159   : > { %2269 = vmatpush1.bf16.msra.mxu0 %v7115_v17 }
 0x15a   : > { %2270 = vmatprep.subr.bf16.mxu0 %v7123_v19 }
 0x187   : > { %v1359_v21 = vpop.xlane.xlu0 %1358  ;;  %v1363_v22 = vpop.xlane.xlu1 %1362 }
 0x188   : > { %v1375_v23 = vmul.f32 0.0078125, %v1359_v21  ;;  %v1377_v24 = vmul.f32 0.0078125, %v1363_v22  ;;  %v7121_v21 = vld [vmem:[#allocation16 + $0x8] ss:$48 sps:$4 sm:$0xff]   ;;  %v7126_v22 = vld [vmem:[#allocation16 + $0x2b4] ss:$48 sps:$4 sm:$0xff]  }
 0x189   : > { %2271 = vmatpush1.bf16.msra.mxu0 %v7121_v21 }
 0x18a   : > { %v8369_v25 = vsub.f32 %v8325_v1, %v1375_v23  ;;  %v8372_v26 = vsub.f32 %v8328_v2, %v1377_v24  ;;  %v7129_v23 = vld [vmem:[#allocation16 + $0x2bc] ss:$48 sps:$4 sm:$0xff]  }
 0x18b   : > { %v1361_v27 = vpop.xlane.xlu0 %1360  ;;  %v1365_v28 = vpop.xlane.xlu1 %1364  ;;  %2402 = vmatprep.subr.bf16.mxu0 %v7129_v23 }
 0x18c   : > { %v1376_v29 = vmul.f32 0.0078125, %v1361_v27  ;;  %v1391_v30 = vmul.f32 %v8369_v25, %v8369_v25  ;;  %v1378_v31 = vmul.f32 0.0078125, %v1365_v28  ;;  %v1393_v1 = vmul.f32 %v8372_v26, %v8372_v26 }
 0x18e   : > { %v8377_v32 = vsub.f32 %v8333_v3, %v1376_v29  ;;  %1399 = vadd.xlane.f32.xlu0 %v1391_v30  ;;  %v8380_v33 = vsub.f32 %v8336_v4, %v1378_v31  ;;  %v786_v30 = vlaneseq  ;;  %v7935_v31 = vmov 1966171168  }
 0x18f   : > { %v1367_v34 = vpop.xlane.xlu0 %1366  ;;  %v1369_v2 = vpop.xlane.xlu1 %1368 }
 0x190   : > { %v1379_v35 = vmul.f32 0.0078125, %v1367_v34  ;;  %v1392_v36 = vmul.f32 %v8377_v32, %v8377_v32  ;;  %v1380_v37 = vmul.f32 0.0078125, %v1369_v2  ;;  %v1394_v4 = vmul.f32 %v8380_v33, %v8380_v33 }
 0x191   : > { %v8410_v34 = vshrl.u32 %v786_v30, 7 }
 0x192   : > { %v8387_v38 = vsub.f32 %v8341_v8, %v1379_v35  ;;  %1403 = vadd.xlane.f32.xlu0 %v1393_v1  ;;  %1401 = vadd.xlane.f32.xlu1 %v1392_v36  ;;  %v8390_v3 = vsub.f32 %v8344_v9, %v1380_v37  ;;  %v1200_v1 = vunpack.c.l.s4 %v7935_v31 }
 0x193   : > { %v1371_v39 = vpop.xlane.xlu0 %1370  ;;  %v1373_v40 = vpop.xlane.xlu1 %1372  ;;  %v8413_v35 = vsub.s32 2, %v8410_v34  ;;  %v8416_v37 = vsub.s32 3, %v8410_v34  ;;  %v8435_v60 = vsub.s32 1, %v8410_v34 }
 0x194   : > { %v1381_v41 = vmul.f32 0.0078125, %v1371_v39  ;;  %v1395_v42 = vmul.f32 %v8387_v38, %v8387_v38  ;;  %v1382_v43 = vmul.f32 0.0078125, %v1373_v40  ;;  %v1396_v9 = vmul.f32 %v8390_v3, %v8390_v3  ;;  %v784_v39 = vld [vmem:[#allocation8] sm:$0x3f] }
 0x195   : > { %v1201_v2 = vunpack.c.0.s8 %v1200_v1  ;;  %9820 = vst [vmem:[#allocation32_spill] sm:$0xff] %v8413_v35  ;;  %9821 = vst [vmem:[#allocation33_spill] sm:$0xff] %v8416_v37  ;;  %v8419_v40 = vsub.s32 0, %v8410_v34  ;;  %v801_v46 = vrot.slane %v784_v39, %v8416_v37 }
 0x196   : > { %v8397_v44 = vsub.f32 %v8349_v12, %v1381_v41  ;;  %1405 = vadd.xlane.f32.xlu1 %v1394_v4  ;;  %1407 = vadd.xlane.f32.xlu0 %v1395_v42  ;;  %v8400_v8 = vsub.f32 %v8352_v13, %v1382_v43  ;;  %v7084_v13 = vld [vmem:[#allocation16 + $0x244] ss:$48 sps:$4 sm:$0xff]   ;;  %v797_v41 = vrot.slane %v784_v39, %v8413_v35  ;;  %v804_v43 = vsub.s32 4, %v8410_v34 }
 0x197   : > { %2185 = vmatprep.subr.bf16.mxu1 %v7084_v13  ;;  %9822 = vst [vmem:[#allocation34_spill] sm:$0xff] %v8419_v40  ;;  %v8426_v47 = vsub.s32 %v1201_v2, %v8410_v34  ;;  %v789_v52 = vrot.slane %v784_v39, %v8419_v40  ;;  %9823 = vst [vmem:[#allocation35_spill] sm:$0xff] %v8435_v60 }
 0x198   : > { %v1397_v45 = vmul.f32 %v8397_v44, %v8397_v44  ;;  %v1398_v12 = vmul.f32 %v8400_v8, %v8400_v8  ;;  %2186 = vmatpush1.bf16.msra.mxu1 %v7082_v51 }
 0x199   : > { %2187 = vmatprep.subr.bf16.mxu1 %v7090_v53 }
 0x19a   : > { %1409 = vadd.xlane.f32.xlu1 %v1396_v9  ;;  %1411 = vadd.xlane.f32.xlu0 %v1397_v45  ;;  %v9731_v9 = vsub.s32 5, %v8410_v34 }
 0x19c   : > { %2188 = vmatpush1.bf16.msra.mxu1 %v7088_v55  ;;  %v809_v13 = vrot.slane %v784_v39, %v9731_v9 }
 0x19d   : > { %2189 = vmatprep.subr.bf16.mxu1 %v7096_v57 }
 0x19e   : > { %1413 = vadd.xlane.f32.xlu1 %v1398_v12  ;;  %v805_v12 = vrot.slane %v784_v39, %v804_v43 }
 0x1a0   : > { %2190 = vmatpush1.bf16.msra.mxu1 %v7094_v59 }
 0x1a1   : > { %2191 = vmatprep.subr.bf16.mxu1 %v7102_v61 }
 0x1a4   : > { %2192 = vmatpush1.bf16.msra.mxu1 %v7100_v63 }
 0x1a5   : > { %2193 = vmatprep.subr.bf16.mxu1 %v7108_v6 }
 0x1a8   : > { %2194 = vmatpush1.bf16.msra.mxu1 %v7106_v10 }
 0x1a9   : > { %2195 = vmatprep.subr.bf16.mxu1 %v7114_v14 }
 0x1ac   : > { %2196 = vmatpush1.bf16.msra.mxu1 %v7112_v16 }
 0x1ad   : > { %2197 = vmatprep.subr.bf16.mxu1 %v7120_v18 }
 0x1b0   : > { %2198 = vmatpush1.bf16.msra.mxu1 %v7118_v20  ;;  %v793_v20 = vrot.slane %v784_v39, %v8435_v60 }
 0x1b1   : > { %2329 = vmatprep.subr.bf16.mxu1 %v7126_v22 }
 0x1df   : > { %v1109_v24 = vpop.f32.mrf.mxu0 }
 0x1e0   : > { %v1110_v11 = vadd.f32 %v1109_v24, %v789_v52 }
 0x1e1   : > { %v8408_v27 = vpop.f32.mrf.mxu0 }
 0x1e2   : > { %v1205_v31 = vrot.slane %v1110_v11, %v8426_v47 }
 0x1e3   : > { %v1113_v28 = vpop.f32.mrf.mxu0 }
 0x1e5   : > { %v1114_v29 = vpop.f32.mrf.mxu0 }
 0x1e8   : > { %v1150_v36 = vpop.f32.mrf.mxu1 }
 0x1e9   : > { %v1151_v48 = vadd.f32 %v1150_v36, %v797_v41  ;;  %v1112_v41 = vadd.f32 %v8408_v27, %v793_v20 }
 0x1ea   : > { %v1152_v42 = vpop.f32.mrf.mxu1 }
 0x1eb   : > { %v1153_v53 = vadd.f32 %v1152_v42, %v801_v46  ;;  %v1259_v55 = vrot.slane %v1151_v48, %v8426_v47  ;;  %v1213_v48 = vrot.slane %v1205_v31, %v8426_v47  ;;  %v1234_v27 = vrot.slane %v1112_v41, %v8426_v47 }
 0x1ec   : > { %v1154_v49 = vpop.f32.mrf.mxu1 }
 0x1ed   : > { %v1284_v61 = vrot.slane %v1153_v53, %v8426_v47  ;;  %v1260_v63 = vcombine.high %v1259_v55, %v1259_v55  ;;  %v8439_v5 = vrot.slane %v1259_v55, %v8426_v47  ;;  %v1475_v55 = vadd.f32 1.0, %v1213_v48 }
 0x1ee   : > { %v1155_v56 = vpop.f32.mrf.mxu1 }
 0x1ef   : > { %9824 = vst [vmem:[#allocation36_spill] sm:$0xff] %v8439_v5  ;;  %v1285_v14 = vcombine.high %v1284_v61, %v1284_v61  ;;  %v8443_v15 = vrot.slane %v1284_v61, %v8426_v47  ;;  %v8447_v19 = vrot.slane %v1260_v63, %v8426_v47 }
 0x1f1   : > { %9825 = vst [vmem:[#allocation37_spill] sm:$0xff] %v8443_v15  ;;  %9826 = vst [vmem:[#allocation38_spill] sm:$0xff] %v8447_v19  ;;  %v8451_v21 = vrot.slane %v1285_v14, %v8426_v47 }
 0x1f3   : > { %9827 = vst [vmem:[#allocation39_spill] sm:$0xff] %v8451_v21 }
 0x1ff   : > { %v1191_v4 = vpop.f32.mrf.mxu0 }
 0x200   : > { %v1192_v57 = vadd.f32 %v1191_v4, %v805_v12 }
 0x201   : > { %v1193_v45 = vpop.f32.mrf.mxu0 }
 0x202   : > { %v1194_v58 = vadd.f32 %v1193_v45, %v809_v13  ;;  %v1313_v6 = vrot.slane %v1192_v57, %v8426_v47  ;;  %v1206_v13 = vcombine.high %v1205_v31, %v1205_v31 }
 0x203   : > { %v1195_v50 = vpop.f32.mrf.mxu0 }
 0x204   : > { %v1338_v16 = vrot.slane %v1194_v58, %v8426_v47  ;;  %v1314_v24 = vcombine.high %v1313_v6, %v1313_v6  ;;  %v8454_v28 = vrot.slane %v1313_v6, %v8426_v47  ;;  %v1220_v58 = vrot.slane %v1206_v13, %v8426_v47  ;;  %v8474_v6 = vld [vmem:[#allocation11] ss:$0 sm:$0xff] }
 0x205   : > { %v1196_v59 = vpop.f32.mrf.mxu0 }
 0x206   : > { %9828 = vst [vmem:[#allocation40_spill] sm:$0xff] %v8454_v28  ;;  %v8458_v36 = vrot.slane %v1314_v24, %v8426_v47  ;;  %v1339_v46 = vcombine.high %v1338_v16, %v1338_v16  ;;  %v8463_v50 = vrot.slane %v1338_v16, %v8426_v47  ;;  %v8470_v59 = vld [vmem:[#allocation10] ss:$0 sm:$0xff]  ;;  %v1476_v14 = vadd.f32 1.0, %v1220_v58 }
 0x207   : > { %v1235_v16 = vcombine.high %v1234_v27, %v1234_v27 }
 0x208   : > { %9829 = vst [vmem:[#allocation41_spill] sm:$0xff] %v8458_v36  ;;  %9830 = vst [vmem:[#allocation42_spill] sm:$0xff] %v8463_v50  ;;  %v1490_v31 = vrot.slane %v1476_v14, %v8419_v40  ;;  %v7132_v14 = vld [vmem:[#allocation16 + $0x254] ss:$48 sps:$4 sm:$0xff]  }
 0x217   : > { %v1400_v51 = vpop.xlane.xlu0 %1399 }
 0x218   : > { %v1415_v54 = vmul.f32 0.0078125, %v1400_v51  ;;  %v8466_v51 = vrot.slane %v1339_v46, %v8426_v47 }
 0x21a   : > { %v1423_v62 = vadd.f32 1e-05, %v1415_v54  ;;  %9831 = vst [vmem:[#allocation43_spill] sm:$0xff] %v8466_v51 }
 0x21b   : > { %v1402_v7 = vpop.xlane.xlu1 %1401  ;;  %v1404_v10 = vpop.xlane.xlu0 %1403 }
 0x21c   : > { %7332 = vrsqrt.f32 %v1423_v62  ;;  %v1416_v17 = vmul.f32 0.0078125, %v1402_v7  ;;  %v1417_v18 = vmul.f32 0.0078125, %v1404_v10  ;;  %v1242_v62 = vrot.slane %v1234_v27, %v8426_v47 }
 0x21d   : > { %v1486_v7 = vrot.slane %v1475_v55, %v8419_v40 }
 0x21e   : > { %v1424_v22 = vadd.f32 1e-05, %v1416_v17  ;;  %v1425_v23 = vadd.f32 1e-05, %v1417_v18  ;;  %v1250_v13 = vcombine.high %v1242_v62, %v1242_v62 }
 0x21f   : > { %v1406_v29 = vpop.xlane.xlu1 %1405  ;;  %v1408_v30 = vpop.xlane.xlu0 %1407 }
 0x220   : > { %7334 = vrsqrt.f32 %v1424_v22  ;;  %v1418_v1 = vmul.f32 0.0078125, %v1406_v29  ;;  %v1419_v2 = vmul.f32 0.0078125, %v1408_v30 }
 0x221   : > { %7336 = vrsqrt.f32 %v1425_v23  ;;  %v1221_v23 = vcombine.high %v1213_v48, %v1213_v48 }
 0x222   : > { %v1426_v4 = vadd.f32 1e-05, %v1418_v1  ;;  %v1427_v39 = vadd.f32 1e-05, %v1419_v2  ;;  %v1249_v1 = vrot.slane %v1235_v16, %v8426_v47  ;;  %v7135_v16 = vld [vmem:[#allocation16 + $0x25c] ss:$48 sps:$4 sm:$0xff]  }
 0x223   : > { %v1410_v42 = vpop.xlane.xlu1 %1409  ;;  %v1412_v45 = vpop.xlane.xlu0 %1411 }
 0x224   : > { %7338 = vrsqrt.f32 %v1426_v4  ;;  %v1420_v49 = vmul.f32 0.0078125, %v1410_v42  ;;  %v1421_v12 = vmul.f32 0.0078125, %v1412_v45  ;;  %v1477_v45 = vadd.f32 1.0, %v1221_v23 }
 0x225   : > { %7340 = vrsqrt.f32 %v1427_v39  ;;  %v1222_v39 = vcombine.high %v1220_v58, %v1220_v58 }
 0x226   : > { %v1428_v52 = vadd.f32 1e-05, %v1420_v49  ;;  %v1429_v53 = vadd.f32 1e-05, %v1421_v12 }
 0x227   : > { %v1414_v54 = vpop.xlane.xlu1 %1413  ;;  %v1478_v27 = vadd.f32 1.0, %v1222_v39  ;;  %v7141_v39 = vld [vmem:[#allocation16 + $0x1fc] ss:$48 sps:$4 sm:$0xff]  }
 0x228   : > { %7342 = vrsqrt.f32 %v1428_v52  ;;  %v1422_v56 = vmul.f32 0.0078125, %v1414_v54 }
 0x229   : > { %v7333_v57 = vpop.eup %7332  ;;  %7344 = vrsqrt.f32 %v1429_v53  ;;  %v1518_v53 = vrot.slane %v1249_v1, %v8419_v40 }
 0x22a   : > { %v1439_v61 = vmul.f32 %v7333_v57, %v8369_v25  ;;  %v1430_v63 = vadd.f32 1e-05, %v1422_v56  ;;  %v1514_v25 = vrot.slane %v1242_v62, %v8419_v40  ;;  %v1494_v57 = vrot.slane %v1477_v45, %v8419_v40 }
 0x22c   : > { %v1453_v10 = vmul.f32 %v8470_v59, %v1439_v61  ;;  %7346 = vrsqrt.f32 %v1430_v63  ;;  %v7124_v63 = vld [vmem:[#allocation16 + $0x2b0] ss:$48 sps:$4 sm:$0xff]  }
 0x22d   : > { %v7335_v11 = vpop.eup %7334 }
 0x22e   : > { %v7337_v17 = vpop.eup %7336  ;;  %v1440_v18 = vmul.f32 %v7335_v11, %v8377_v32  ;;  %v1467_v20 = vadd.f32 %v8474_v6, %v1453_v10 }
 0x22f   : > { %v1441_v22 = vmul.f32 %v7337_v17, %v8372_v26 }
 0x230   : > { %v1454_v24 = vmul.f32 %v8470_v59, %v1440_v18  ;;  %v1503_v29 = vmul.f32 %v1486_v7, %v1467_v20  ;;  %v1251_v20 = vcombine.high %v1249_v1, %v1249_v1  ;;  %v7133_v1 = vld [vmem:[#allocation16 + $0x258] ss:$48 sps:$4 sm:$0xff]  }
 0x231   : > { %v7339_v30 = vpop.eup %7338  ;;  %v1455_v2 = vmul.f32 %v8470_v59, %v1441_v22 }
 0x232   : > { %v7341_v4 = vpop.eup %7340  ;;  %v1442_v32 = vmul.f32 %v7339_v30, %v8380_v33  ;;  %v1468_v41 = vadd.f32 %v8474_v6, %v1454_v24  ;;  %v1531_v42 = vadd.f32 %v1514_v25, %v1503_v29  ;;  %v1498_v24 = vrot.slane %v1478_v27, %v8419_v40  ;;  %v7153_v27 = vld [vmem:[#allocation16 + $0x13c] ss:$48 sps:$4 sm:$0xff]  }
 0x233   : > { %v1443_v26 = vmul.f32 %v7341_v4, %v8387_v38  ;;  %v1469_v46 = vadd.f32 %v8474_v6, %v1455_v2 }
 0x234   : > { %v1456_v48 = vmul.f32 %v8470_v59, %v1442_v32  ;;  %v1504_v49 = vmul.f32 %v1486_v7, %v1468_v41  ;;  %v7127_v7 = vld [vmem:[#allocation16 + $0x2b8] ss:$48 sps:$4 sm:$0xff]  }
 0x235   : > { %v7343_v12 = vpop.eup %7342  ;;  %v1457_v47 = vmul.f32 %v8470_v59, %v1443_v26  ;;  %v1505_v52 = vmul.f32 %v1490_v31, %v1469_v46 }
 0x236   : > { %v7345_v33 = vpop.eup %7344  ;;  %v1444_v54 = vmul.f32 %v7343_v12, %v8390_v3  ;;  %v1470_v55 = vadd.f32 %v8474_v6, %v1456_v48  ;;  %v1532_v38 = vadd.f32 %v1514_v25, %v1504_v49  ;;  %v1522_v25 = vrot.slane %v1250_v13, %v8419_v40  ;;  %v7136_v48 = vld [vmem:[#allocation16 + $0x1f0] ss:$48 sps:$4 sm:$0xff]   ;;  %v7139_v49 = vld [vmem:[#allocation16 + $0x1f8] ss:$48 sps:$4 sm:$0xff]   ;;  %v7144_v12 = vld [vmem:[#allocation16 + $0x194] ss:$48 sps:$4 sm:$0xff]  }
 0x237   : > { %v1471_v56 = vadd.f32 %v8474_v6, %v1457_v47  ;;  %v1445_v58 = vmul.f32 %v7345_v33, %v8397_v44  ;;  %v1533_v61 = vadd.f32 %v1518_v53, %v1505_v52  ;;  %v7147_v47 = vld [vmem:[#allocation16 + $0x19c] ss:$48 sps:$4 sm:$0xff]   ;;  %v7150_v33 = vld [vmem:[#allocation16 + $0x134] ss:$48 sps:$4 sm:$0xff]  }
 0x238   : > { %v1458_v62 = vmul.f32 %v8470_v59, %v1444_v54  ;;  %v1506_v10 = vmul.f32 %v1490_v31, %v1470_v55  ;;  %v8499_v11 = vpack.c.bf16 %v1532_v38, %v1531_v42  ;;  %v7130_v31 = vld [vmem:[#allocation16 + $0x250] ss:$48 sps:$4 sm:$0xff]   ;;  %v1526_v42 = vrot.slane %v1251_v20, %v8419_v40  ;;  %v7151_v38 = vld [vmem:[#allocation16 + $0x138] ss:$48 sps:$4 sm:$0xff]   ;;  %v7177_v20 = vld [vmem:[#allocation16 + $0x2cc] ss:$48 sps:$4 sm:$0xff]  }
 0x239   : > { %v7347_v3 = vpop.eup %7346  ;;  %v1507_v17 = vmul.f32 %v1494_v57, %v1471_v56  ;;  %v1459_v18 = vmul.f32 %v8470_v59, %v1445_v58  ;;  %v7148_v55 = vld [vmem:[#allocation16 + $0x130] ss:$48 sps:$4 sm:$0xff]   ;;  %v7156_v56 = vld [vmem:[#allocation16 + $0xd4] ss:$48 sps:$4 sm:$0xff]  }
 0x23a   : > { %v1472_v22 = vadd.f32 %v8474_v6, %v1458_v62  ;;  %v1534_v44 = vadd.f32 %v1518_v53, %v1506_v10  ;;  %v1446_v23 = vmul.f32 %v7347_v3, %v8400_v8  ;;  %2216 = vmatmul.mubr.bf16.vlgmr.msra.gmra.mxu1 %v8499_v11  ;;  %2289 = vmatmul.mubr.bf16.vlgmr.msra.gmra.mxu0 %v8499_v11  ;;  %v7138_v8 = vld [vmem:[#allocation16 + $0x1f4] ss:$48 sps:$4 sm:$0xff]   ;;  %v7145_v53 = vld [vmem:[#allocation16 + $0x198] ss:$48 sps:$4 sm:$0xff]   ;;  %v7154_v58 = vld [vmem:[#allocation16 + $0xd0] ss:$48 sps:$4 sm:$0xff]  }
 0x23b   : > { %v1473_v29 = vadd.f32 %v8474_v6, %v1459_v18  ;;  %v1535_v30 = vadd.f32 %v1522_v25, %v1507_v17  ;;  %2330 = vmatpush1.bf16.msra.mxu1 %v7124_v63  ;;  %2403 = vmatpush1.bf16.msra.mxu0 %v7127_v7  ;;  %v7162_v63 = vld [vmem:[#allocation16 + $0x74] ss:$48 sps:$4 sm:$0xff]   ;;  %v7165_v7 = vld [vmem:[#allocation16 + $0x7c] ss:$48 sps:$4 sm:$0xff]   ;;  %v7160_v62 = vld [vmem:[#allocation16 + $0x70] ss:$48 sps:$4 sm:$0xff]  }
 0x23c   : > { %v1508_v2 = vmul.f32 %v1494_v57, %v1472_v22  ;;  %v8509_v4 = vpack.c.bf16 %v1534_v44, %v1533_v61  ;;  %v1460_v32 = vmul.f32 %v8470_v59, %v1446_v23  ;;  %2331 = vmatprep.subr.bf16.mxu1 %v7132_v14  ;;  %2404 = vmatprep.subr.bf16.mxu0 %v7135_v16  ;;  %v7159_v57 = vld [vmem:[#allocation16 + $0xdc] ss:$48 sps:$4 sm:$0xff]   ;;  %v7157_v61 = vld [vmem:[#allocation16 + $0xd8] ss:$48 sps:$4 sm:$0xff]   ;;  %v7168_v14 = vld [vmem:[#allocation16 + $0x14] ss:$48 sps:$4 sm:$0xff]  }
 0x23d   : > { %v1509_v41 = vmul.f32 %v1498_v24, %v1473_v29  ;;  %2225 = vmatprep.mubr.bf16.mxu1 %v9729_v0  ;;  %2298 = vmatprep.mubr.bf16.mxu0 %v9729_v0  ;;  %v7163_v10 = vld [vmem:[#allocation16 + $0x78] ss:$48 sps:$4 sm:$0xff]   ;;  %v7171_v16 = vld [vmem:[#allocation16 + $0x1c] ss:$48 sps:$4 sm:$0xff]   ;;  %v7166_v3 = vld [vmem:[#allocation16 + $0x10] ss:$48 sps:$4 sm:$0xff]  }
 0x23e   : > { %v1536_v26 = vadd.f32 %v1522_v25, %v1508_v2  ;;  %v1474_v45 = vadd.f32 %v8474_v6, %v1460_v32  ;;  %v7142_v6 = vld [vmem:[#allocation16 + $0x190] ss:$48 sps:$4 sm:$0xff]   ;;  %v7169_v17 = vld [vmem:[#allocation16 + $0x18] ss:$48 sps:$4 sm:$0xff]   ;;  %v7174_v18 = vld [vmem:[#allocation16 + $0x2c4] ss:$48 sps:$4 sm:$0xff]  }
 0x23f   : > { %v1537_v46 = vadd.f32 %v1526_v42, %v1509_v41  ;;  %2332 = vmatpush1.bf16.msra.mxu1 %v7130_v31  ;;  %2405 = vmatpush1.bf16.msra.mxu0 %v7133_v1  ;;  %v7172_v25 = vld [vmem:[#allocation16 + $0x2c0] ss:$48 sps:$4 sm:$0xff]   ;;  %v7175_v22 = vld [vmem:[#allocation16 + $0x2c8] ss:$48 sps:$4 sm:$0xff]   ;;  %v7180_v44 = vld [vmem:[#allocation16 + $0x264] ss:$48 sps:$4 sm:$0xff]  }
 0x240   : > { %v8516_v59 = vpack.c.bf16 %v1536_v26, %v1535_v30  ;;  %2333 = vmatprep.subr.bf16.mxu1 %v7138_v8  ;;  %2406 = vmatprep.subr.bf16.mxu0 %v7141_v39  ;;  %v1510_v13 = vmul.f32 %v1498_v24, %v1474_v45  ;;  %v7183_v23 = vld [vmem:[#allocation16 + $0x26c] ss:$48 sps:$4 sm:$0xff]   ;;  %v7178_v24 = vld [vmem:[#allocation16 + $0x260] ss:$48 sps:$4 sm:$0xff]   ;;  %v7181_v29 = vld [vmem:[#allocation16 + $0x268] ss:$48 sps:$4 sm:$0xff]  }
 0x241   : > { %v7186_v30 = vld [vmem:[#allocation16 + $0x204] ss:$48 sps:$4 sm:$0xff]   ;;  %v7189_v31 = vld [vmem:[#allocation16 + $0x20c] ss:$48 sps:$4 sm:$0xff]   ;;  %v7184_v1 = vld [vmem:[#allocation16 + $0x200] ss:$48 sps:$4 sm:$0xff]  }
 0x242   : > { %2226 = vmatmul.mubr.bf16.gmra.mxu1 %v8509_v4  ;;  %2299 = vmatmul.mubr.bf16.gmra.mxu0 %v8509_v4  ;;  %v1538_v52 = vadd.f32 %v1526_v42, %v1510_v13  ;;  %v7187_v2 = vld [vmem:[#allocation16 + $0x208] ss:$48 sps:$4 sm:$0xff]   ;;  %v7192_v32 = vld [vmem:[#allocation16 + $0x1a4] ss:$48 sps:$4 sm:$0xff]   ;;  %v7195_v8 = vld [vmem:[#allocation16 + $0x1ac] ss:$48 sps:$4 sm:$0xff]  }
 0x243   : > { %2334 = vmatpush1.bf16.msra.mxu1 %v7136_v48  ;;  %2407 = vmatpush1.bf16.msra.mxu0 %v7139_v49  ;;  %v7190_v39 = vld [vmem:[#allocation16 + $0x1a0] ss:$48 sps:$4 sm:$0xff]   ;;  %v7193_v41 = vld [vmem:[#allocation16 + $0x1a8] ss:$48 sps:$4 sm:$0xff]   ;;  %v7198_v42 = vld [vmem:[#allocation16 + $0x144] ss:$48 sps:$4 sm:$0xff]  }
 0x244   : > { %2335 = vmatprep.subr.bf16.mxu1 %v7144_v12  ;;  %2408 = vmatprep.subr.bf16.mxu0 %v7147_v47  ;;  %v8520_v54 = vpack.c.bf16 %v1538_v52, %v1537_v46  ;;  %v7201_v26 = vld [vmem:[#allocation16 + $0x14c] ss:$48 sps:$4 sm:$0xff]   ;;  %v7196_v45 = vld [vmem:[#allocation16 + $0x140] ss:$48 sps:$4 sm:$0xff]   ;;  %v7199_v46 = vld [vmem:[#allocation16 + $0x148] ss:$48 sps:$4 sm:$0xff]  }
 0x245   : > { %2235 = vmatprep.mubr.bf16.mxu1 %v9729_v0  ;;  %2308 = vmatprep.mubr.bf16.mxu0 %v9729_v0  ;;  %v7204_v48 = vld [vmem:[#allocation16 + $0xe4] ss:$48 sps:$4 sm:$0xff]   ;;  %v7207_v49 = vld [vmem:[#allocation16 + $0xec] ss:$48 sps:$4 sm:$0xff]   ;;  %v7202_v12 = vld [vmem:[#allocation16 + $0xe0] ss:$48 sps:$4 sm:$0xff]  }
 0x246   : > { %v7205_v47 = vld [vmem:[#allocation16 + $0xe8] ss:$48 sps:$4 sm:$0xff]   ;;  %v7210_v13 = vld [vmem:[#allocation16 + $0x84] ss:$48 sps:$4 sm:$0xff]   ;;  %v7213_v52 = vld [vmem:[#allocation16 + $0x8c] ss:$48 sps:$4 sm:$0xff]  }
 0x247   : > { %2336 = vmatpush1.bf16.msra.mxu1 %v7142_v6  ;;  %2409 = vmatpush1.bf16.msra.mxu0 %v7145_v53  ;;  %v7208_v6 = vld [vmem:[#allocation16 + $0x80] ss:$48 sps:$4 sm:$0xff]   ;;  %v7211_v53 = vld [vmem:[#allocation16 + $0x88] ss:$48 sps:$4 sm:$0xff]  }
 0x248   : > { %2337 = vmatprep.subr.bf16.mxu1 %v7150_v33  ;;  %2410 = vmatprep.subr.bf16.mxu0 %v7153_v27  ;;  %v7216_v33 = vld [vmem:[#allocation16 + $0x24] ss:$48 sps:$4 sm:$0xff]   ;;  %v7219_v27 = vld [vmem:[#allocation16 + $0x2c] ss:$48 sps:$4 sm:$0xff]  }
 0x24a   : > { %2236 = vmatmul.mubr.bf16.gmra.mxu1 %v8516_v59  ;;  %2309 = vmatmul.mubr.bf16.gmra.mxu0 %v8516_v59 }
 0x24b   : > { %2338 = vmatpush1.bf16.msra.mxu1 %v7148_v55  ;;  %2411 = vmatpush1.bf16.msra.mxu0 %v7151_v38  ;;  %v7214_v55 = vld [vmem:[#allocation16 + $0x20] ss:$48 sps:$4 sm:$0xff]   ;;  %v7217_v38 = vld [vmem:[#allocation16 + $0x28] ss:$48 sps:$4 sm:$0xff]  }
 0x24c   : > { %2339 = vmatprep.subr.bf16.mxu1 %v7156_v56  ;;  %2412 = vmatprep.subr.bf16.mxu0 %v7159_v57 }
 0x24d   : > { %2245 = vmatprep.mubr.bf16.mxu1 %v9729_v0  ;;  %2318 = vmatprep.mubr.bf16.mxu0 %v9729_v0 }
 0x24f   : > { %2340 = vmatpush1.bf16.msra.mxu1 %v7154_v58  ;;  %2413 = vmatpush1.bf16.msra.mxu0 %v7157_v61 }
 0x250   : > { %2341 = vmatprep.subr.bf16.mxu1 %v7162_v63  ;;  %2414 = vmatprep.subr.bf16.mxu0 %v7165_v7 }
 0x252   : > { %2246 = vmatmul.mubr.bf16.gmra.mxu1 %v8520_v54  ;;  %2319 = vmatmul.mubr.bf16.gmra.mxu0 %v8520_v54 }
 0x253   : > { %2342 = vmatpush1.bf16.msra.mxu1 %v7160_v62  ;;  %2415 = vmatpush1.bf16.msra.mxu0 %v7163_v10 }
 0x254   : > { %2343 = vmatprep.subr.bf16.mxu1 %v7168_v14  ;;  %2416 = vmatprep.subr.bf16.mxu0 %v7171_v16 }
 0x255   : > { %2361 = vmatprep.mubr.bf16.mxu1 %v9729_v0  ;;  %2434 = vmatprep.mubr.bf16.mxu0 %v9729_v0 }
 0x257   : > { %2344 = vmatpush1.bf16.msra.mxu1 %v7166_v3  ;;  %2417 = vmatpush1.bf16.msra.mxu0 %v7169_v17 }
 0x258   : > { %2475 = vmatprep.subr.bf16.mxu1 %v7174_v18  ;;  %2548 = vmatprep.subr.bf16.mxu0 %v7177_v20 }
 0x25a   : > { %2362 = vmatmul.mubr.bf16.vlgmr.msra.gmra.mxu1 %v8499_v11  ;;  %2435 = vmatmul.mubr.bf16.vlgmr.msra.gmra.mxu0 %v8499_v11 }
 0x25b   : > { %2476 = vmatpush1.bf16.msra.mxu1 %v7172_v25  ;;  %2549 = vmatpush1.bf16.msra.mxu0 %v7175_v22 }
 0x25c   : > { %2477 = vmatprep.subr.bf16.mxu1 %v7180_v44  ;;  %2550 = vmatprep.subr.bf16.mxu0 %v7183_v23 }
 0x25d   : > { %2371 = vmatprep.mubr.bf16.mxu1 %v9729_v0  ;;  %2444 = vmatprep.mubr.bf16.mxu0 %v9729_v0 }
 0x25f   : > { %2478 = vmatpush1.bf16.msra.mxu1 %v7178_v24  ;;  %2551 = vmatpush1.bf16.msra.mxu0 %v7181_v29 }
 0x260   : > { %2479 = vmatprep.subr.bf16.mxu1 %v7186_v30  ;;  %2552 = vmatprep.subr.bf16.mxu0 %v7189_v31 }
 0x262   : > { %2372 = vmatmul.mubr.bf16.gmra.mxu1 %v8509_v4  ;;  %2445 = vmatmul.mubr.bf16.gmra.mxu0 %v8509_v4 }
 0x263   : > { %2480 = vmatpush1.bf16.msra.mxu1 %v7184_v1  ;;  %2553 = vmatpush1.bf16.msra.mxu0 %v7187_v2 }
 0x264   : > { %2481 = vmatprep.subr.bf16.mxu1 %v7192_v32  ;;  %2554 = vmatprep.subr.bf16.mxu0 %v7195_v8 }
 0x265   : > { %2381 = vmatprep.mubr.bf16.mxu1 %v9729_v0  ;;  %2454 = vmatprep.mubr.bf16.mxu0 %v9729_v0 }
 0x267   : > { %2482 = vmatpush1.bf16.msra.mxu1 %v7190_v39  ;;  %2555 = vmatpush1.bf16.msra.mxu0 %v7193_v41 }
 0x268   : > { %2483 = vmatprep.subr.bf16.mxu1 %v7198_v42  ;;  %2556 = vmatprep.subr.bf16.mxu0 %v7201_v26 }
 0x26a   : > { %2382 = vmatmul.mubr.bf16.gmra.mxu1 %v8516_v59  ;;  %2455 = vmatmul.mubr.bf16.gmra.mxu0 %v8516_v59 }
 0x26b   : > { %2484 = vmatpush1.bf16.msra.mxu1 %v7196_v45  ;;  %2557 = vmatpush1.bf16.msra.mxu0 %v7199_v46 }
 0x26c   : > { %2485 = vmatprep.subr.bf16.mxu1 %v7204_v48  ;;  %2558 = vmatprep.subr.bf16.mxu0 %v7207_v49 }
 0x26d   : > { %2391 = vmatprep.mubr.bf16.mxu1 %v9729_v0  ;;  %2464 = vmatprep.mubr.bf16.mxu0 %v9729_v0 }
 0x26f   : > { %2486 = vmatpush1.bf16.msra.mxu1 %v7202_v12  ;;  %2559 = vmatpush1.bf16.msra.mxu0 %v7205_v47 }
 0x270   : > { %2487 = vmatprep.subr.bf16.mxu1 %v7210_v13  ;;  %2560 = vmatprep.subr.bf16.mxu0 %v7213_v52 }
 0x272   : > { %2392 = vmatmul.mubr.bf16.gmra.mxu1 %v8520_v54  ;;  %2465 = vmatmul.mubr.bf16.gmra.mxu0 %v8520_v54 }
 0x273   : > { %2488 = vmatpush1.bf16.msra.mxu1 %v7208_v6  ;;  %2561 = vmatpush1.bf16.msra.mxu0 %v7211_v53 }
 0x274   : > { %2489 = vmatprep.subr.bf16.mxu1 %v7216_v33  ;;  %2562 = vmatprep.subr.bf16.mxu0 %v7219_v27 }
 0x275   : > { %2507 = vmatprep.mubr.bf16.mxu1 %v9729_v0  ;;  %2580 = vmatprep.mubr.bf16.mxu0 %v9729_v0 }
 0x277   : > { %2490 = vmatpush1.bf16.msra.mxu1 %v7214_v55  ;;  %2563 = vmatpush1.bf16.msra.mxu0 %v7217_v38 }
 0x27a   : > { %2508 = vmatmul.mubr.bf16.vlgmr.msra.gmra.mxu1 %v8499_v11  ;;  %2581 = vmatmul.mubr.bf16.vlgmr.msra.gmra.mxu0 %v8499_v11  ;;  %v9732_v11 = vmov 0.0  }
 0x27b   : > { %2517 = vmatprep.mubr.bf16.mxu1 %v9729_v0  ;;  %2590 = vmatprep.mubr.bf16.mxu0 %v9729_v0 }
 0x27c   : > { %6643 = vmatprep.subr.bf16.mxu1 %v9732_v11  ;;  %6667 = vmatprep.subr.bf16.mxu0 %v9732_v11 }
 0x282   : > { %2518 = vmatmul.mubr.bf16.gmra.mxu1 %v8509_v4  ;;  %2591 = vmatmul.mubr.bf16.gmra.mxu0 %v8509_v4  ;;  %v8571_v4 = vld [vmem:[%s9713_s9] sm:$0xff] }
 0x283   : > { %2527 = vmatprep.mubr.bf16.mxu1 %v9729_v0  ;;  %2600 = vmatprep.mubr.bf16.mxu0 %v9729_v0 }
 0x28a   : > { %2528 = vmatmul.mubr.bf16.gmra.mxu1 %v8516_v59  ;;  %2601 = vmatmul.mubr.bf16.gmra.mxu0 %v8516_v59  ;;  %v8575_v59 = vrot.slane %v8571_v4, %v8435_v60 }
 0x28b   : > { %2537 = vmatprep.mubr.bf16.mxu1 %v9729_v0  ;;  %2610 = vmatprep.mubr.bf16.mxu0 %v9729_v0 }
 0x292   : > { %2538 = vmatmul.mubr.bf16.gmra.mxu1 %v8520_v54  ;;  %2611 = vmatmul.mubr.bf16.gmra.mxu0 %v8520_v54  ;;  %v8579_v54 = vrot.slane %v8571_v4, %v8413_v35 }
 0x293   : > { %6645 = vmatprep.mubr.msk.bf16.mxu1 %vm7937_vm3, %v9732_v11  ;;  %6669 = vmatprep.mubr.msk.bf16.mxu0 %vm7937_vm3, %v9732_v11 }
 0x2fa   : > { %v8581_v56 = vpop.f32.mrf.mxu1  ;;  %v2290_v57 = vpop.f32.mrf.mxu0 }
 0x2fb   : > { %v2291_v63 = vadd.f32 %v2290_v57, %v8579_v54 }
 0x2fc   : > { %v2219_v58 = vpop.f32.mrf.mxu1  ;;  %v8583_v61 = vpop.f32.mrf.mxu0 }
 0x2fd   : > { %9832 = vst [vmem:[#allocation44_spill] sm:$0xff] %v8583_v61  ;;  %v2220_v7 = vadd.f32 %v2219_v58, %v8575_v59  ;;  %v8592_v17 = vmul.f32 0.25, %v2291_v63 }
 0x2fe   : > { %v8587_v62 = vpop.f32.mrf.mxu1  ;;  %v2294_v10 = vpop.f32.mrf.mxu0 }
 0x2ff   : > { %v2295_v14 = vadd.f32 %v2294_v10, %v8579_v54  ;;  %v8599_v44 = vmul.f32 0.25, %v2220_v7 }
 0x300   : > { %v2223_v16 = vpop.f32.mrf.mxu1  ;;  %v8590_v3 = vpop.f32.mrf.mxu0 }
 0x301   : > { %9833 = vst [vmem:[#allocation45_spill] sm:$0xff] %v8590_v3  ;;  %v8594_v18 = vmul.f32 0.25, %v2295_v14  ;;  %v2224_v20 = vadd.f32 %v2223_v16, %v8575_v59 }
 0x302   : > { %v8597_v25 = vpop.f32.mrf.mxu1  ;;  %v2300_v22 = vpop.f32.mrf.mxu0 }
 0x303   : > { %v8603_v24 = vmul.f32 0.25, %v2224_v20  ;;  %v2301_v1 = vadd.f32 %v2300_v22, %v8579_v54 }
 0x304   : > { %v2229_v29 = vpop.f32.mrf.mxu1  ;;  %v8605_v30 = vpop.f32.mrf.mxu0 }
 0x305   : > { %9834 = vst [vmem:[#allocation46_spill] sm:$0xff] %v8605_v30  ;;  %v2230_v2 = vadd.f32 %v2229_v29, %v8575_v59  ;;  %v8616_v26 = vmul.f32 0.25, %v2301_v1 }
 0x306   : > { %v8611_v32 = vpop.f32.mrf.mxu1  ;;  %v2304_v8 = vpop.f32.mrf.mxu0 }
 0x307   : > { %v2305_v39 = vadd.f32 %v2304_v8, %v8579_v54  ;;  %9836 = vst [vmem:[#allocation48_spill] sm:$0xff] %v8616_v26  ;;  %v8623_v12 = vmul.f32 0.25, %v2230_v2 }
 0x308   : > { %v2233_v41 = vpop.f32.mrf.mxu1  ;;  %v8614_v42 = vpop.f32.mrf.mxu0 }
 0x309   : > { %9835 = vst [vmem:[#allocation47_spill] sm:$0xff] %v8614_v42  ;;  %v8618_v45 = vmul.f32 0.25, %v2305_v39  ;;  %v2234_v46 = vadd.f32 %v2233_v41, %v8575_v59 }
 0x30a   : > { %v8621_v48 = vpop.f32.mrf.mxu1  ;;  %v2310_v49 = vpop.f32.mrf.mxu0 }
 0x30b   : > { %9837 = vst [vmem:[#allocation49_spill] sm:$0xff] %v8618_v45  ;;  %v8627_v13 = vmul.f32 0.25, %v2234_v46  ;;  %v2311_v33 = vadd.f32 %v2310_v49, %v8579_v54 }
 0x30c   : > { %v2239_v52 = vpop.f32.mrf.mxu1  ;;  %v8629_v6 = vpop.f32.mrf.mxu0 }
 0x30d   : > { %9838 = vst [vmem:[#allocation50_spill] sm:$0xff] %v8629_v6  ;;  %v2240_v27 = vadd.f32 %v2239_v52, %v8575_v59  ;;  %v8640_v7 = vmul.f32 0.25, %v2311_v33 }
 0x30e   : > { %v8635_v55 = vpop.f32.mrf.mxu1  ;;  %v2314_v38 = vpop.f32.mrf.mxu0 }
 0x30f   : > { %v2315_v57 = vadd.f32 %v2314_v38, %v8579_v54  ;;  %9840 = vst [vmem:[#allocation52_spill] sm:$0xff] %v8640_v7  ;;  %v8647_v22 = vmul.f32 0.25, %v2240_v27  ;;  %v1669_v27 = vsub.s32 6, %v8410_v34 }
 0x310   : > { %v2243_v58 = vpop.f32.mrf.mxu1  ;;  %v8638_v63 = vpop.f32.mrf.mxu0 }
 0x311   : > { %9839 = vst [vmem:[#allocation51_spill] sm:$0xff] %v8638_v63  ;;  %v8642_v10 = vmul.f32 0.25, %v2315_v57  ;;  %v2244_v14 = vadd.f32 %v2243_v58, %v8575_v59 }
 0x312   : > { %v8645_v16 = vpop.f32.mrf.mxu1  ;;  %v2320_v20 = vpop.f32.mrf.mxu0 }
 0x313   : > { %9841 = vst [vmem:[#allocation53_spill] sm:$0xff] %v8642_v10  ;;  %v8651_v1 = vmul.f32 0.25, %v2244_v14  ;;  %v2321_v41 = vadd.f32 %v2320_v20, %v8579_v54  ;;  %v8673_v20 = vrot.slane %v8571_v4, %v804_v43 }
 0x314   : > { %v2249_v2 = vpop.f32.mrf.mxu1  ;;  %v8653_v8 = vpop.f32.mrf.mxu0 }
 0x315   : > { %9842 = vst [vmem:[#allocation54_spill] sm:$0xff] %v8653_v8  ;;  %v2250_v46 = vadd.f32 %v2249_v2, %v8575_v59  ;;  %v8665_v58 = vmul.f32 0.25, %v2321_v41  ;;  %v8682_v41 = vrot.slane %v8571_v4, %v1669_v27 }
 0x316   : > { %v8659_v49 = vpop.f32.mrf.mxu1  ;;  %v2324_v52 = vpop.f32.mrf.mxu0 }
 0x317   : > { %v2325_v33 = vadd.f32 %v2324_v52, %v8579_v54  ;;  %9844 = vst [vmem:[#allocation56_spill] sm:$0xff] %v8665_v58  ;;  %v8675_v47 = vmul.f32 0.25, %v2250_v46 }
 0x318   : > { %v2253_v38 = vpop.f32.mrf.mxu1  ;;  %v8663_v57 = vpop.f32.mrf.mxu0 }
 0x319   : > { %9843 = vst [vmem:[#allocation55_spill] sm:$0xff] %v8663_v57  ;;  %v8667_v14 = vmul.f32 0.25, %v2325_v33  ;;  %v2254_v0 = vadd.f32 %v2253_v38, %v8575_v59  ;;  %v8692_v38 = vrot.slane %v8571_v4, %v8419_v40 }
 0x31a   : > { %v2363_v2 = vpop.f32.mrf.mxu1  ;;  %v2436_v29 = vpop.f32.mrf.mxu0 }
 0x31b   : > { %9845 = vst [vmem:[#allocation57_spill] sm:$0xff] %v8667_v14  ;;  %v8679_v52 = vmul.f32 0.25, %v2254_v0  ;;  %v2364_v54 = vadd.f32 %v2363_v2, %v8673_v20  ;;  %v8696_v0 = vadd.f32 %v2436_v29, %v8682_v41  ;;  %v2222_v53 = vadd.f32 %v8587_v62, %v8692_v38 }
 0x31c   : > { %v8684_v33 = vpop.f32.mrf.mxu1  ;;  %v8686_v59 = vpop.f32.mrf.mxu0  ;;  %v2218_v29 = vadd.f32 %v8581_v56, %v8692_v38  ;;  %v9849_v62 = vmov 0.0   ;;  %v2242_v8 = vadd.f32 %v8635_v55, %v8692_v38 }
 0x31d   : > { %9846 = vst [vmem:[#allocation58_spill] sm:$0xff] %v8686_v59 }
 0x31e   : > { %v2367_v46 = vpop.f32.mrf.mxu1  ;;  %v2440_v23 = vpop.f32.mrf.mxu0  ;;  %v2621_v36 = vmul.f32 0.25, %v2218_v29 }
 0x31f   : > { %v2368_v27 = vadd.f32 %v2367_v46, %v8673_v20  ;;  %v8700_v39 = vadd.f32 %v2440_v23, %v8682_v41  ;;  %v2622_v46 = vmul.f32 0.25, %v2222_v53  ;;  %v2232_v53 = vadd.f32 %v8611_v32, %v8692_v38 }
 0x320   : > { %v8704_v43 = vpop.f32.mrf.mxu1  ;;  %v8706_v31 = vpop.f32.mrf.mxu0 }
 0x321   : > { %9847 = vst [vmem:[#allocation59_spill] sm:$0xff] %v8706_v31  ;;  %v2633_v9 = vpack.c.bf16 %v2368_v27, %v2364_v54 }
 0x322   : > { %v2373_v2 = vpop.f32.mrf.mxu1  ;;  %v2446_v51 = vpop.f32.mrf.mxu0 }
 0x323   : > { %6644 = vmatpush3.bf16.xpose.msra.mxu1 %v2633_v9  ;;  %v2374_v54 = vadd.f32 %v2373_v2, %v8673_v20  ;;  %v8719_v27 = vadd.f32 %v2446_v51, %v8682_v41  ;;  %v2629_v9 = vpack.c.bf16 %v2622_v46, %v2621_v36  ;;  %v2228_v51 = vadd.f32 %v8597_v25, %v8692_v38 }
 0x324   : > { %v8712_v23 = vpop.f32.mrf.mxu1  ;;  %v8714_v50 = vpop.f32.mrf.mxu0  ;;  %6649 = vmatprep.subr.bf16.mxu1 %v9849_v62 }
 0x325   : > { %9848 = vst [vmem:[#allocation60_spill] sm:$0xff] %v8714_v50  ;;  %v2623_v32 = vmul.f32 0.25, %v2228_v51 }
 0x326   : > { %v2377_v21 = vpop.f32.mrf.mxu1  ;;  %v2450_v28 = vpop.f32.mrf.mxu0 }
 0x327   : > { %v2378_v56 = vadd.f32 %v2377_v21, %v8673_v20  ;;  %v8723_v11 = vadd.f32 %v2450_v28, %v8682_v41  ;;  %v2624_v28 = vmul.f32 0.25, %v2232_v53 }
 0x328   : > { %v8727_v15 = vpop.f32.mrf.mxu1  ;;  %v8729_v19 = vpop.f32.mrf.mxu0 }
 0x329   : > { %9850 = vst [vmem:[#allocation61_spill] sm:$0xff] %v8729_v19  ;;  %v2634_v29 = vpack.c.bf16 %v2378_v56, %v2374_v54 }
 0x32a   : > { %v2383_v5 = vpop.f32.mrf.mxu1  ;;  %v2456_v21 = vpop.f32.mrf.mxu0  ;;  %6646 = vmatmul.mubr.bf16.vlgmr.msra.gmra.mxu1 %v2629_v9 }
 0x32b   : > { %6650 = vmatpush3.bf16.xpose.msra.mxu1 %v2634_v29  ;;  %6651 = vmatprep.mubr.msk.bf16.mxu1 %vm7937_vm3, %v9849_v62  ;;  %v2384_v2 = vadd.f32 %v2383_v5, %v8673_v20  ;;  %v8744_v25 = vadd.f32 %v2456_v21, %v8682_v41  ;;  %v2630_v29 = vpack.c.bf16 %v2624_v28, %v2623_v32 }
 0x32c   : > { %v8735_v36 = vpop.f32.mrf.mxu1  ;;  %v8737_v46 = vpop.f32.mrf.mxu0  ;;  %6655 = vmatprep.subr.bf16.mxu1 %v9849_v62  ;;  %v2238_v21 = vadd.f32 %v8621_v48, %v8692_v38 }
 0x32d   : > { %9851 = vst [vmem:[#allocation62_spill] sm:$0xff] %v8737_v46 }
 0x32e   : > { %v2387_v54 = vpop.f32.mrf.mxu1  ;;  %v2460_v56 = vpop.f32.mrf.mxu0  ;;  %v2625_v55 = vmul.f32 0.25, %v2238_v21  ;;  %v2252_v21 = vadd.f32 %v8659_v49, %v8692_v38 }
 0x32f   : > { %v2388_v9 = vadd.f32 %v2387_v54, %v8673_v20  ;;  %v8748_v53 = vadd.f32 %v2460_v56, %v8682_v41  ;;  %v2626_v56 = vmul.f32 0.25, %v2242_v8 }
 0x330   : > { %v8752_v57 = vpop.f32.mrf.mxu1  ;;  %v8754_v6 = vpop.f32.mrf.mxu0 }
 0x331   : > { %9852 = vst [vmem:[#allocation63_spill] sm:$0xff] %v8754_v6  ;;  %v2635_v51 = vpack.c.bf16 %v2388_v9, %v2384_v2 }
 0x332   : > { %v2393_v63 = vpop.f32.mrf.mxu1  ;;  %v2466_v54 = vpop.f32.mrf.mxu0  ;;  %6652 = vmatmul.mubr.bf16.vlgmr.msra.gmra.mxu1 %v2630_v29 }
 0x333   : > { %6656 = vmatpush3.bf16.xpose.msra.mxu1 %v2635_v51  ;;  %6657 = vmatprep.mubr.msk.bf16.mxu1 %vm7937_vm3, %v9849_v62  ;;  %v2394_v5 = vadd.f32 %v2393_v63, %v8673_v20  ;;  %v8769_v48 = vadd.f32 %v2466_v54, %v8682_v41  ;;  %v1640_v51 = vld [vmem:[%s9713_s9 + $0x8] sm:$0xf] }
 0x334   : > { %v8760_v28 = vpop.f32.mrf.mxu1  ;;  %v8762_v32 = vpop.f32.mrf.mxu0  ;;  %6661 = vmatprep.subr.bf16.mxu1 %v9849_v62  ;;  %v8785_v63 = vrot.slane %v1640_v51, %v8435_v60  ;;  %v8795_v49 = vrot.slane %v1640_v51, %v8413_v35 }
 0x335   : > { %9853 = vst [vmem:[#allocation64_spill] sm:$0xff] %v8762_v32  ;;  %9854 = vst [vmem:[#allocation65_spill] sm:$0xff] %v8769_v48  ;;  %v2631_v32 = vpack.c.bf16 %v2626_v56, %v2625_v55  ;;  %v8792_v56 = vrot.slane %v1640_v51, %v8419_v40  ;;  %v2628_v55 = vmul.f32 0.25, %v2252_v21 }
 0x336   : > { %v2397_v2 = vpop.f32.mrf.mxu1  ;;  %v2470_v9 = vpop.f32.mrf.mxu0 }
 0x337   : > { %v2398_v29 = vadd.f32 %v2397_v2, %v8673_v20  ;;  %v8773_v8 = vadd.f32 %v2470_v9, %v8682_v41  ;;  %v2248_v41 = vadd.f32 %v8645_v16, %v8692_v38 }
 0x338   : > { %v8780_v46 = vpop.f32.mrf.mxu1  ;;  %v8782_v30 = vpop.f32.mrf.mxu0 }
 0x339   : > { %9855 = vst [vmem:[#allocation66_spill] sm:$0xff] %v8773_v8  ;;  %9856 = vst [vmem:[#allocation67_spill] sm:$0xff] %v8782_v30  ;;  %v2636_v54 = vpack.c.bf16 %v2398_v29, %v2394_v5  ;;  %v2627_v38 = vmul.f32 0.25, %v2248_v41 }
 0x33a   : > { %v2509_v2 = vpop.f32.mrf.mxu1  ;;  %v2582_v9 = vpop.f32.mrf.mxu0  ;;  %6658 = vmatmul.mubr.bf16.vlgmr.msra.gmra.mxu1 %v2631_v32 }
 0x33b   : > { %6662 = vmatpush3.bf16.xpose.msra.mxu1 %v2636_v54  ;;  %6663 = vmatprep.mubr.msk.bf16.mxu1 %vm7937_vm3, %v9849_v62  ;;  %v2510_v29 = vadd.f32 %v2509_v2, %v8792_v56  ;;  %v8807_v20 = vadd.f32 %v2582_v9, %v8795_v49  ;;  %v2632_v35 = vpack.c.bf16 %v2628_v55, %v2627_v38 }
 0x33c   : > { %v2511_v60 = vpop.f32.mrf.mxu1  ;;  %v8797_v30 = vpop.f32.mrf.mxu0  ;;  %6673 = vmatprep.subr.bf16.mxu1 %v9849_v62 }
 0x33d   : > { %9857 = vst [vmem:[#allocation68_spill] sm:$0xff] %v8797_v30  ;;  %v8803_v16 = vadd.f32 %v2511_v60, %v8785_v63  ;;  %9858 = vst [vmem:[#allocation69_spill] sm:$0xff] %v8807_v20 }
 0x33e   : > { %v2513_v5 = vpop.f32.mrf.mxu1  ;;  %v2586_v32 = vpop.f32.mrf.mxu0 }
 0x33f   : > { %v2514_v21 = vadd.f32 %v2513_v5, %v8792_v56  ;;  %v8811_v54 = vadd.f32 %v2586_v32, %v8795_v49 }
 0x340   : > { %v2515_v40 = vpop.f32.mrf.mxu1  ;;  %v8813_v30 = vpop.f32.mrf.mxu0 }
 0x341   : > { %9859 = vst [vmem:[#allocation70_spill] sm:$0xff] %v8811_v54  ;;  %9860 = vst [vmem:[#allocation71_spill] sm:$0xff] %v8813_v30  ;;  %v2637_v6 = vpack.c.bf16 %v2514_v21, %v2510_v29  ;;  %v8818_v41 = vadd.f32 %v2515_v40, %v8785_v63 }
 0x342   : > { %v2519_v2 = vpop.f32.mrf.mxu1  ;;  %v2592_v42 = vpop.f32.mrf.mxu0  ;;  %6664 = vmatmul.mubr.bf16.vlgmr.msra.gmra.mxu1 %v2632_v35 }
 0x343   : > { %6668 = vmatpush3.bf16.msra.mxu0 %v2637_v6  ;;  %6675 = vmatprep.mubr.msk.bf16.mxu1 %vm7937_vm3, %v9849_v62  ;;  %v2520_v29 = vadd.f32 %v2519_v2, %v8792_v56  ;;  %v8832_v35 = vadd.f32 %v2592_v42, %v8795_v49  ;;  %v8846_v42 = vrot.slane %v1640_v51, %v8416_v37 }
 0x344   : > { %v2521_v5 = vpop.f32.mrf.mxu1  ;;  %v8822_v32 = vpop.f32.mrf.mxu0  ;;  %6679 = vmatprep.subr.bf16.mxu0 %v9849_v62 }
 0x345   : > { %9861 = vst [vmem:[#allocation72_spill] sm:$0xff] %v8822_v32  ;;  %v8828_v55 = vadd.f32 %v2521_v5, %v8785_v63  ;;  %9862 = vst [vmem:[#allocation73_spill] sm:$0xff] %v8832_v35 }
 0x346   : > { %v2523_v40 = vpop.f32.mrf.mxu1  ;;  %v2596_v38 = vpop.f32.mrf.mxu0  ;;  %9865 = vst [vmem:[#allocation76_spill] sm:$0xff] %v8846_v42 }
 0x347   : > { %v2524_v6 = vadd.f32 %v2523_v40, %v8792_v56  ;;  %v8836_v21 = vadd.f32 %v2596_v38, %v8795_v49 }
 0x348   : > { %v2525_v60 = vpop.f32.mrf.mxu1  ;;  %v8838_v9 = vpop.f32.mrf.mxu0 }
 0x349   : > { %9863 = vst [vmem:[#allocation74_spill] sm:$0xff] %v8836_v21  ;;  %9864 = vst [vmem:[#allocation75_spill] sm:$0xff] %v8838_v9  ;;  %v2638_v32 = vpack.c.bf16 %v2524_v6, %v2520_v29  ;;  %v8843_v30 = vadd.f32 %v2525_v60, %v8785_v63 }
 0x34a   : > { %v2529_v50 = vpop.f32.mrf.mxu1  ;;  %v2602_v2 = vpop.f32.mrf.mxu0 }
 0x34b   : > { %v8851_v38 = vadd.f32 %v2529_v50, %v8792_v56  ;;  %v8854_v9 = vadd.f32 %v2602_v2, %v8795_v49  ;;  %6674 = vmatpush3.bf16.msra.mxu1 %v2638_v32 }
 0x34c   : > { %v2531_v29 = vpop.f32.mrf.mxu1  ;;  %v2604_v6 = vpop.f32.mrf.mxu0  ;;  %6685 = vmatprep.subr.bf16.mxu1 %v9849_v62 }
 0x34d   : > { %9866 = vst [vmem:[#allocation77_spill] sm:$0xff] %v8854_v9  ;;  %v8858_v60 = vadd.f32 %v2531_v29, %v8785_v63  ;;  %v8861_v51 = vadd.f32 %v2604_v6, %v8846_v42 }
 0x34e   : > { %v2533_v5 = vpop.f32.mrf.mxu1  ;;  %v2606_v19 = vpop.f32.mrf.mxu0 }
 0x34f   : > { %9867 = vst [vmem:[#allocation78_spill] sm:$0xff] %v8861_v51  ;;  %v8864_v40 = vadd.f32 %v2533_v5, %v8792_v56  ;;  %v8867_v50 = vadd.f32 %v2606_v19, %v8795_v49 }
 0x350   : > { %v2535_v2 = vpop.f32.mrf.mxu1  ;;  %v2608_v32 = vpop.f32.mrf.mxu0 }
 0x351   : > { %9868 = vst [vmem:[#allocation79_spill] sm:$0xff] %v8867_v50  ;;  %v8874_v3 = vadd.f32 %v2535_v2, %v8785_v63  ;;  %v8877_v6 = vadd.f32 %v2608_v32, %v8846_v42 }
 0x352   : > { %v2539_v59 = vpop.f32.mrf.mxu1  ;;  %v2612_v5 = vpop.f32.mrf.mxu0 }
 0x353   : > { %9869 = vst [vmem:[#allocation80_spill] sm:$0xff] %v8877_v6  ;;  %v8884_v31 = vadd.f32 %v2539_v59, %v8792_v56  ;;  %v8887_v61 = vadd.f32 %v2612_v5, %v8795_v49 }
 0x354   : > { %v2541_v29 = vpop.f32.mrf.mxu1  ;;  %v2614_v2 = vpop.f32.mrf.mxu0 }
 0x355   : > { %9870 = vst [vmem:[#allocation81_spill] sm:$0xff] %v8887_v61  ;;  %v8890_v9 = vadd.f32 %v2541_v29, %v8785_v63  ;;  %v8893_v32 = vadd.f32 %v2614_v2, %v8846_v42 }
 0x356   : > { %v2543_v50 = vpop.f32.mrf.mxu1  ;;  %v2616_v35 = vpop.f32.mrf.mxu0 }
 0x357   : > { %9871 = vst [vmem:[#allocation82_spill] sm:$0xff] %v8893_v32  ;;  %v8896_v19 = vadd.f32 %v2543_v50, %v8792_v56  ;;  %v8899_v37 = vadd.f32 %v2616_v35, %v8795_v49 }
 0x358   : > { %v2545_v59 = vpop.f32.mrf.mxu1  ;;  %v2618_v51 = vpop.f32.mrf.mxu0 }
 0x359   : > { %9872 = vst [vmem:[#allocation83_spill] sm:$0xff] %v8899_v37  ;;  %v8906_v6 = vadd.f32 %v2545_v59, %v8785_v63  ;;  %v8909_v2 = vadd.f32 %v2618_v51, %v8846_v42 }
 0x35b   : > { %9873 = vst [vmem:[#allocation84_spill] sm:$0xff] %v8909_v2 }
 0x3ea   : > { %v2675_v35 = vpop.f32.mrf.mxu1 }
 0x3eb   : > { %v2806_v50 = vsel %vm2805_vm4, %v2675_v35, -inf }
 0x3ec   : > { %2807 = vmax.xlane.f32.xlu0 %v2806_v50  ;;  %v6647_v5 = vpop.f32.mrf.mxu1 }
 0x3ee   : > { %v2678_v21 = vpop.f32.mrf.mxu1 }
 0x3ef   : > { %v2809_v29 = vsel %vm2805_vm4, %v2678_v21, -inf }
 0x3f0   : > { %2810 = vmax.xlane.f32.xlu1 %v2809_v29  ;;  %v6648_v63 = vpop.f32.mrf.mxu1 }
 0x3f2   : > { %v2716_v59 = vpop.f32.mrf.mxu1 }
 0x3f3   : > { %v2812_v51 = vsel %vm2805_vm4, %v2716_v59, -inf }
 0x3f4   : > { %2813 = vmax.xlane.f32.xlu0 %v2812_v51  ;;  %v6653_v42 = vpop.f32.mrf.mxu1 }
 0x3f6   : > { %v2719_v56 = vpop.f32.mrf.mxu1 }
 0x3f7   : > { %v2815_v61 = vsel %vm2805_vm4, %v2719_v56, -inf }
 0x3f8   : > { %2816 = vmax.xlane.f32.xlu1 %v2815_v61  ;;  %v6654_v49 = vpop.f32.mrf.mxu1 }
 0x3fa   : > { %v2757_v32 = vpop.f32.mrf.mxu1 }
 0x3fb   : > { %v2818_v2 = vsel %vm2805_vm4, %v2757_v32, -inf }
 0x3fc   : > { %2819 = vmax.xlane.f32.xlu0 %v2818_v2  ;;  %v6659_v5 = vpop.f32.mrf.mxu1 }
 0x3fe   : > { %v2760_v50 = vpop.f32.mrf.mxu1 }
 0x3ff   : > { %v2821_v37 = vsel %vm2805_vm4, %v2760_v50, -inf }
 0x400   : > { %2822 = vmax.xlane.f32.xlu1 %v2821_v37  ;;  %v6660_v29 = vpop.f32.mrf.mxu1 }
 0x402   : > { %v2798_v63 = vpop.f32.mrf.mxu1 }
 0x403   : > { %v2824_v58 = vsel %vm2805_vm4, %v2798_v63, -inf }
 0x404   : > { %2825 = vmax.xlane.f32.xlu0 %v2824_v58  ;;  %v6665_v42 = vpop.f32.mrf.mxu1 }
 0x406   : > { %v2801_v51 = vpop.f32.mrf.mxu1 }
 0x407   : > { %v2827_v14 = vsel %vm2805_vm4, %v2801_v51, -inf }
 0x408   : > { %2828 = vmax.xlane.f32.xlu1 %v2827_v14  ;;  %v6666_v61 = vpop.f32.mrf.mxu1 }
 0x475   : > { %v2808_v49 = vpop.xlane.xlu0 %2807 }
 0x476   : > { %v2830_v20 = vsub.f32 %v2675_v35, %v2808_v49  ;;  %v9876_v49 = vpack.c.bf16 %v8896_v19, %v8884_v31 }
 0x478   : > { %v2838_v54 = vmul.f32 1.442695, %v2830_v20 }
 0x479   : > { %v2811_v2 = vpop.xlane.xlu1 %2810 }
 0x47a   : > { %v2831_v5 = vsub.f32 %v2678_v21, %v2811_v2  ;;  %7348 = vpow2.f32 %v2838_v54 }
 0x47c   : > { %v2840_v7 = vmul.f32 1.442695, %v2831_v5 }
 0x47d   : > { %v2814_v10 = vpop.xlane.xlu0 %2813 }
 0x47e   : > { %7350 = vpow2.f32 %v2840_v7  ;;  %v2832_v37 = vsub.f32 %v2716_v59, %v2814_v10 }
 0x480   : > { %v2842_v29 = vmul.f32 1.442695, %v2832_v37 }
 0x481   : > { %v2817_v48 = vpop.xlane.xlu1 %2816 }
 0x482   : > { %v2833_v8 = vsub.f32 %v2719_v56, %v2817_v48  ;;  %7352 = vpow2.f32 %v2842_v29 }
 0x484   : > { %v2844_v58 = vmul.f32 1.442695, %v2833_v8  ;;  %v9874_v8 = vpack.c.bf16 %v8864_v40, %v8851_v38  ;;  %v9875_v40 = vsub.s32 5, %v8410_v34 }
 0x485   : > { %v2820_v42 = vpop.xlane.xlu0 %2819 }
 0x486   : > { %7354 = vpow2.f32 %v2844_v58  ;;  %v2834_v26 = vsub.f32 %v2757_v32, %v2820_v42  ;;  %v1666_v38 = vrot.slane %v8571_v4, %v9875_v40 }
 0x487   : > { %v8923_v45 = vpop.eup %7348 }
 0x488   : > { %v2846_v14 = vmul.f32 1.442695, %v2834_v26  ;;  %v2366_v37 = vadd.f32 %v8684_v33, %v1666_v38  ;;  %v2380_v31 = vadd.f32 %v8727_v15, %v1666_v38  ;;  %v2376_v33 = vadd.f32 %v8712_v23, %v1666_v38 }
 0x489   : > { %v2823_v61 = vpop.xlane.xlu1 %2822  ;;  %v2386_v42 = vadd.f32 %v8735_v36, %v1666_v38  ;;  %v9877_v15 = vpack.c.bf16 %v8603_v24, %v8599_v44  ;;  %v2396_v23 = vadd.f32 %v8760_v28, %v1666_v38  ;;  %v9878_v44 = vpack.c.bf16 %v8627_v13, %v8623_v12 }
 0x48a   : > { %v2835_v20 = vsub.f32 %v2760_v50, %v2823_v61  ;;  %7356 = vpow2.f32 %v2846_v14  ;;  %v3087_v61 = vpack.c.bf16 %v2380_v31, %v2376_v33  ;;  %v9879_v24 = vpack.c.bf16 %v8651_v1, %v8647_v22 }
 0x48b   : > { %v8925_v35 = vpop.eup %7350  ;;  %v9881_v12 = vpack.c.bf16 %v8679_v52, %v8675_v47  ;;  %v9882_v13 = vpack.c.bf16 %v8843_v30, %v8828_v55 }
 0x48c   : > { %v2878_v54 = vpack.c.bf16 %v8925_v35, %v8923_v45  ;;  %v2848_v7 = vmul.f32 1.442695, %v2835_v20 }
 0x48d   : > { %v2826_v10 = vpop.xlane.xlu0 %2825 }
 0x48e   : > { %7358 = vpow2.f32 %v2848_v7  ;;  %v2836_v48 = vsub.f32 %v2798_v63, %v2826_v10  ;;  %6670 = vmatmul.mubr.msk.bf16.vlgmr.msra.gmra.mxu0 %vm2805_vm4, %v2878_v54  ;;  %v9880_v54 = vpack.c.bf16 %v8818_v41, %v8803_v16 }
 0x48f   : > { %6680 = vmatpush3.bf16.msra.mxu0 %v9874_v8  ;;  %6681 = vmatprep.mubr.msk.bf16.mxu0 %vm7937_vm3, %v9849_v62  ;;  %v8936_v32 = vpop.eup %7352 }
 0x490   : > { %6691 = vmatprep.subr.bf16.mxu0 %v9849_v62  ;;  %v2850_v26 = vmul.f32 1.442695, %v2836_v48 }
 0x491   : > { %v2829_v21 = vpop.xlane.xlu1 %2828 }
 0x492   : > { %v2837_v56 = vsub.f32 %v2801_v51, %v2829_v21  ;;  %7360 = vpow2.f32 %v2850_v26  ;;  %v2370_v51 = vadd.f32 %v8704_v43, %v1666_v38  ;;  %v2390_v43 = vadd.f32 %v8752_v57, %v1666_v38 }
 0x493   : > { %v8938_v59 = vpop.eup %7354  ;;  %v2400_v57 = vadd.f32 %v8780_v46, %v1666_v38 }
 0x494   : > { %v2852_v50 = vmul.f32 1.442695, %v2837_v56  ;;  %v2879_v63 = vpack.c.bf16 %v8938_v59, %v8936_v32  ;;  %v3086_v29 = vpack.c.bf16 %v2370_v51, %v2366_v37  ;;  %v3088_v20 = vpack.c.bf16 %v2390_v43, %v2386_v42 }
 0x495   : > { %v3089_v36 = vpack.c.bf16 %v2400_v57, %v2396_v23 }
 0x496   : > { %7362 = vpow2.f32 %v2852_v50  ;;  %6676 = vmatmul.mubr.msk.bf16.vlgmr.msra.gmra.mxu1 %vm2805_vm4, %v2879_v63 }
 0x497   : > { %6686 = vmatpush3.bf16.msra.mxu1 %v9876_v49  ;;  %6687 = vmatprep.mubr.msk.bf16.mxu1 %vm7937_vm3, %v9849_v62  ;;  %v8953_v2 = vpop.eup %7356 }
 0x498   : > { %6697 = vmatprep.subr.bf16.mxu1 %v9849_v62 }
 0x49b   : > { %v8955_v5 = vpop.eup %7358 }
 0x49c   : > { %v2880_v4 = vpack.c.bf16 %v8955_v5, %v8953_v2 }
 0x49e   : > { %6682 = vmatmul.mubr.msk.bf16.vlgmr.msra.gmra.mxu0 %vm2805_vm4, %v2880_v4 }
 0x49f   : > { %6692 = vmatpush3.bf16.xpose.msra.mxu0 %v3086_v29  ;;  %6693 = vmatprep.mubr.msk.bf16.mxu0 %vm7937_vm3, %v9849_v62  ;;  %v8966_v19 = vpop.eup %7360 }
 0x4a0   : > { %6703 = vmatprep.subr.bf16.mxu0 %v9849_v62 }
 0x4a3   : > { %v8968_v58 = vpop.eup %7362 }
 0x4a4   : > { %v2881_v14 = vpack.c.bf16 %v8968_v58, %v8966_v19 }
 0x4a6   : > { %6688 = vmatmul.mubr.msk.bf16.vlgmr.msra.gmra.mxu1 %vm2805_vm4, %v2881_v14  ;;  %6694 = vmatmul.mubr.bf16.vlgmr.msra.gmra.mxu0 %v9877_v15 }
 0x4a7   : > { %6698 = vmatpush3.bf16.xpose.msra.mxu1 %v3087_v61  ;;  %6704 = vmatpush3.bf16.xpose.msra.mxu0 %v3088_v20 }
 0x4a8   : > { %6699 = vmatprep.mubr.msk.bf16.mxu1 %vm7937_vm3, %v9849_v62  ;;  %6705 = vmatprep.mubr.msk.bf16.mxu0 %vm7937_vm3, %v9849_v62 }
 0x4a9   : > { %6709 = vmatprep.subr.bf16.mxu1 %v9849_v62  ;;  %6715 = vmatprep.subr.bf16.mxu0 %v9849_v62 }
 0x4ae   : > { %6700 = vmatmul.mubr.bf16.vlgmr.msra.gmra.mxu1 %v9878_v44  ;;  %6706 = vmatmul.mubr.bf16.vlgmr.msra.gmra.mxu0 %v9879_v24 }
 0x4af   : > { %6710 = vmatpush3.bf16.xpose.msra.mxu1 %v3089_v36  ;;  %6716 = vmatpush3.bf16.msra.mxu0 %v9880_v54 }
 0x4b0   : > { %6711 = vmatprep.mubr.msk.bf16.mxu1 %vm7937_vm3, %v9849_v62  ;;  %6721 = vmatprep.subr.bf16.mxu1 %v9849_v62 }
 0x4b1   : > { %6717 = vmatprep.mubr.msk.bf16.mxu0 %vm7937_vm3, %v9849_v62  ;;  %6727 = vmatprep.subr.bf16.mxu0 %v9849_v62 }
 0x4b6   : > { %6712 = vmatmul.mubr.bf16.vlgmr.msra.gmra.mxu1 %v9881_v12 }
 0x4b7   : > { %6722 = vmatpush3.bf16.msra.mxu1 %v9882_v13  ;;  %6723 = vmatprep.mubr.msk.bf16.mxu1 %vm7937_vm3, %v9849_v62 }
 0x4b8   : > { %6733 = vmatprep.subr.bf16.mxu1 %v9849_v62 }
 0x54e   : > { %v9010_v22 = vpop.f32.mrf.mxu0 }
 0x550   : > { %v6671_v1 = vpop.f32.mrf.mxu0 }
 0x552   : > { %v9012_v46 = vpop.f32.mrf.mxu0 }
 0x554   : > { %v6672_v28 = vpop.f32.mrf.mxu0 }
 0x556   : > { %v9014_v16 = vpop.f32.mrf.mxu1 }
 0x558   : > { %v6677_v41 = vpop.f32.mrf.mxu1 }
 0x55a   : > { %v9016_v47 = vpop.f32.mrf.mxu1 }
 0x55c   : > { %v6678_v52 = vpop.f32.mrf.mxu1 }
 0x55e   : > { %v9018_v7 = vpop.f32.mrf.mxu0 }
 0x560   : > { %v6683_v30 = vpop.f32.mrf.mxu0 }
 0x562   : > { %v9020_v55 = vpop.f32.mrf.mxu0 }
 0x564   : > { %v6684_v10 = vpop.f32.mrf.mxu0 }
 0x566   : > { %v9022_v48 = vpop.f32.mrf.mxu1  ;;  %v3128_v8 = vpop.f32.mrf.mxu0 }
 0x567   : > { %v3258_v26 = vsel %vm2805_vm4, %v3128_v8, -inf }
 0x568   : > { %v6695_v21 = vpop.f32.mrf.mxu0  ;;  %3259 = vmax.xlane.f32.xlu0 %v3258_v26  ;;  %v6689_v56 = vpop.f32.mrf.mxu1 }
 0x56a   : > { %v9025_v50 = vpop.f32.mrf.mxu1  ;;  %v3131_v63 = vpop.f32.mrf.mxu0 }
 0x56b   : > { %v3261_v40 = vsel %vm2805_vm4, %v3131_v63, -inf }
 0x56c   : > { %v6696_v38 = vpop.f32.mrf.mxu0  ;;  %3262 = vmax.xlane.f32.xlu1 %v3261_v40  ;;  %v6690_v49 = vpop.f32.mrf.mxu1 }
 0x56e   : > { %v3169_v51 = vpop.f32.mrf.mxu1  ;;  %v3210_v37 = vpop.f32.mrf.mxu0 }
 0x56f   : > { %v3264_v4 = vsel %vm2805_vm4, %v3169_v51, -inf  ;;  %v3270_v42 = vsel %vm2805_vm4, %v3210_v37, -inf }
 0x570   : > { %v6707_v29 = vpop.f32.mrf.mxu0  ;;  %3265 = vmax.xlane.f32.xlu0 %v3264_v4  ;;  %v6701_v31 = vpop.f32.mrf.mxu1 }
 0x572   : > { %v3172_v43 = vpop.f32.mrf.mxu1  ;;  %v3213_v33 = vpop.f32.mrf.mxu0 }
 0x573   : > { %v3267_v14 = vsel %vm2805_vm4, %v3172_v43, -inf  ;;  %v3273_v57 = vsel %vm2805_vm4, %v3213_v33, -inf }
 0x574   : > { %v6708_v61 = vpop.f32.mrf.mxu0  ;;  %3271 = vmax.xlane.f32.xlu0 %v3270_v42  ;;  %3268 = vmax.xlane.f32.xlu1 %v3267_v14  ;;  %v6702_v20 = vpop.f32.mrf.mxu1 }
 0x576   : > { %v3251_v15 = vpop.f32.mrf.mxu1 }
 0x577   : > { %v3276_v23 = vsel %vm2805_vm4, %v3251_v15, -inf }
 0x578   : > { %3274 = vmax.xlane.f32.xlu1 %v3273_v57  ;;  %3277 = vmax.xlane.f32.xlu0 %v3276_v23  ;;  %v6713_v36 = vpop.f32.mrf.mxu1 }
 0x57a   : > { %v3254_v44 = vpop.f32.mrf.mxu1 }
 0x57b   : > { %v3279_v24 = vsel %vm2805_vm4, %v3254_v44, -inf }
 0x57c   : > { %3280 = vmax.xlane.f32.xlu1 %v3279_v24  ;;  %v6714_v54 = vpop.f32.mrf.mxu1 }
 0x5f1   : > { %v3260_v12 = vpop.xlane.xlu0 %3259 }
 0x5f2   : > { %v3282_v13 = vsub.f32 %v3128_v8, %v3260_v12 }
 0x5f4   : > { %v3290_v1 = vmul.f32 1.442695, %v3282_v13  ;;  %v9885_v13 = vpack.c.bf16 %v8700_v39, %v8696_v0  ;;  %v9887_v39 = vpack.c.bf16 %v8594_v18, %v8592_v17  ;;  %v9888_v0 = vpack.c.bf16 %v8748_v53, %v8744_v25  ;;  %v9895_v17 = vld [vmem:[#allocation53_spill] sm:$0xff]  ;;  %v9896_v18 = vld [vmem:[#allocation52_spill] sm:$0xff]  ;;  %v9898_v53 = vld [vmem:[#allocation70_spill] sm:$0xff] }
 0x5f5   : > { %v3263_v28 = vpop.xlane.xlu1 %3262  ;;  %v9897_v25 = vpack.c.bf16 %v9895_v17, %v9896_v18 }
 0x5f6   : > { %v3283_v41 = vsub.f32 %v3131_v63, %v3263_v28  ;;  %7364 = vpow2.f32 %v3290_v1  ;;  %v9892_v28 = vld [vmem:[#allocation66_spill] sm:$0xff] }
 0x5f8   : > { %v3292_v52 = vmul.f32 1.442695, %v3283_v41  ;;  %v9893_v41 = vld [vmem:[#allocation65_spill] sm:$0xff] }
 0x5f9   : > { %v3266_v30 = vpop.xlane.xlu0 %3265 }
 0x5fa   : > { %7366 = vpow2.f32 %v3292_v52  ;;  %v3284_v10 = vsub.f32 %v3169_v51, %v3266_v30  ;;  %v9894_v52 = vpack.c.bf16 %v9892_v28, %v9893_v41  ;;  %v9899_v30 = vld [vmem:[#allocation69_spill] sm:$0xff] }
 0x5fc   : > { %v3294_v56 = vmul.f32 1.442695, %v3284_v10  ;;  %v9900_v10 = vpack.c.bf16 %v9898_v53, %v9899_v30 }
 0x5fd   : > { %v3272_v26 = vpop.xlane.xlu0 %3271  ;;  %v3269_v21 = vpop.xlane.xlu1 %3268 }
 0x5fe   : > { %v3286_v40 = vsub.f32 %v3210_v37, %v3272_v26  ;;  %v3285_v38 = vsub.f32 %v3172_v43, %v3269_v21  ;;  %7368 = vpow2.f32 %v3294_v56  ;;  %v9901_v26 = vld [vmem:[#allocation57_spill] sm:$0xff]  ;;  %v9902_v21 = vld [vmem:[#allocation56_spill] sm:$0xff] }
 0x5ff   : > { %v9903_v56 = vpack.c.bf16 %v9901_v26, %v9902_v21 }
 0x600   : > { %v3296_v49 = vmul.f32 1.442695, %v3285_v38  ;;  %v3298_v4 = vmul.f32 1.442695, %v3286_v40  ;;  %v9904_v40 = vld [vmem:[#allocation74_spill] sm:$0xff]  ;;  %v9905_v38 = vld [vmem:[#allocation73_spill] sm:$0xff] }
 0x601   : > { %v3275_v29 = vpop.xlane.xlu1 %3274  ;;  %v3278_v31 = vpop.xlane.xlu0 %3277 }
 0x602   : > { %v3287_v42 = vsub.f32 %v3213_v33, %v3275_v29  ;;  %v3288_v8 = vsub.f32 %v3251_v15, %v3278_v31  ;;  %7370 = vpow2.f32 %v3296_v49  ;;  %v9883_v33 = vpack.c.bf16 %v8874_v3, %v8858_v60 }
 0x603   : > { %7372 = vpow2.f32 %v3298_v4  ;;  %v9034_v20 = vpop.eup %7364  ;;  %v9884_v3 = vpack.c.bf16 %v8906_v6, %v8890_v9  ;;  %v9886_v6 = vpack.c.bf16 %v8723_v11, %v8719_v27  ;;  %v9889_v11 = vld [vmem:[#allocation49_spill] sm:$0xff]  ;;  %v9890_v27 = vld [vmem:[#allocation48_spill] sm:$0xff]  ;;  %v9906_v49 = vpack.c.bf16 %v9904_v40, %v9905_v38 }
 0x604   : > { %v3300_v14 = vmul.f32 1.442695, %v3287_v42  ;;  %v3302_v63 = vmul.f32 1.442695, %v3288_v8  ;;  %v9891_v1 = vpack.c.bf16 %v9889_v11, %v9890_v27 }
 0x605   : > { %v3281_v61 = vpop.xlane.xlu1 %3280 }
 0x606   : > { %7374 = vpow2.f32 %v3300_v14  ;;  %v3289_v51 = vsub.f32 %v3254_v44, %v3281_v61 }
 0x607   : > { %v9036_v57 = vpop.eup %7366  ;;  %7376 = vpow2.f32 %v3302_v63 }
 0x608   : > { %v3304_v37 = vmul.f32 1.442695, %v3289_v51  ;;  %v3330_v43 = vpack.c.bf16 %v9036_v57, %v9034_v20 }
 0x60a   : > { %7378 = vpow2.f32 %v3304_v37  ;;  %6718 = vmatmul.mubr.msk.bf16.vlgmr.msra.gmra.mxu0 %vm2805_vm4, %v3330_v43 }
 0x60b   : > { %6728 = vmatpush3.bf16.msra.mxu0 %v9883_v33  ;;  %6729 = vmatprep.mubr.msk.bf16.mxu0 %vm7937_vm3, %v9849_v62  ;;  %v9047_v15 = vpop.eup %7368 }
 0x60c   : > { %6739 = vmatprep.subr.bf16.mxu0 %v9849_v62 }
 0x60f   : > { %v9049_v23 = vpop.eup %7370 }
 0x610   : > { %v3331_v36 = vpack.c.bf16 %v9049_v23, %v9047_v15  ;;  %v9053_v44 = vpop.eup %7372 }
 0x612   : > { %6724 = vmatmul.mubr.msk.bf16.vlgmr.msra.gmra.mxu1 %vm2805_vm4, %v3331_v36 }
 0x613   : > { %v9055_v24 = vpop.eup %7374  ;;  %6734 = vmatpush3.bf16.msra.mxu1 %v9884_v3  ;;  %6735 = vmatprep.mubr.msk.bf16.mxu1 %vm7937_vm3, %v9849_v62 }
 0x614   : > { %v3332_v60 = vpack.c.bf16 %v9055_v24, %v9053_v44  ;;  %6745 = vmatprep.subr.bf16.mxu1 %v9849_v62  ;;  %v9066_v54 = vpop.eup %7376 }
 0x616   : > { %6730 = vmatmul.mubr.msk.bf16.vlgmr.msra.gmra.mxu0 %vm2805_vm4, %v3332_v60 }
 0x617   : > { %v9069_v12 = vpop.eup %7378  ;;  %6740 = vmatpush3.bf16.xpose.msra.mxu0 %v9885_v13  ;;  %6741 = vmatprep.mubr.msk.bf16.mxu0 %vm7937_vm3, %v9849_v62 }
 0x618   : > { %v3333_v9 = vpack.c.bf16 %v9069_v12, %v9066_v54  ;;  %6751 = vmatprep.subr.bf16.mxu0 %v9849_v62 }
 0x61a   : > { %6736 = vmatmul.mubr.msk.bf16.vlgmr.msra.gmra.mxu1 %vm2805_vm4, %v3333_v9 }
 0x61b   : > { %6746 = vmatpush3.bf16.xpose.msra.mxu1 %v9886_v6  ;;  %6747 = vmatprep.mubr.msk.bf16.mxu1 %vm7937_vm3, %v9849_v62 }
 0x61c   : > { %6757 = vmatprep.subr.bf16.mxu1 %v9849_v62 }
 0x61e   : > { %6742 = vmatmul.mubr.bf16.vlgmr.msra.gmra.mxu0 %v9887_v39 }
 0x61f   : > { %6752 = vmatpush3.bf16.xpose.msra.mxu0 %v9888_v0  ;;  %6753 = vmatprep.mubr.msk.bf16.mxu0 %vm7937_vm3, %v9849_v62 }
 0x620   : > { %6763 = vmatprep.subr.bf16.mxu0 %v9849_v62 }
 0x622   : > { %6748 = vmatmul.mubr.bf16.vlgmr.msra.gmra.mxu1 %v9891_v1 }
 0x623   : > { %6758 = vmatpush3.bf16.xpose.msra.mxu1 %v9894_v52  ;;  %6759 = vmatprep.mubr.msk.bf16.mxu1 %vm7937_vm3, %v9849_v62 }
 0x624   : > { %6769 = vmatprep.subr.bf16.mxu1 %v9849_v62 }
 0x626   : > { %6754 = vmatmul.mubr.bf16.vlgmr.msra.gmra.mxu0 %v9897_v25 }
 0x627   : > { %6764 = vmatpush3.bf16.msra.mxu0 %v9900_v10  ;;  %6765 = vmatprep.mubr.msk.bf16.mxu0 %vm7937_vm3, %v9849_v62 }
 0x628   : > { %6775 = vmatprep.subr.bf16.mxu0 %v9849_v62 }
 0x62a   : > { %6760 = vmatmul.mubr.bf16.vlgmr.msra.gmra.mxu1 %v9903_v56 }
 0x62b   : > { %6770 = vmatpush3.bf16.msra.mxu1 %v9906_v49  ;;  %6771 = vmatprep.mubr.msk.bf16.mxu1 %vm7937_vm3, %v9849_v62 }
 0x62c   : > { %6781 = vmatprep.subr.bf16.mxu1 %v9849_v62 }
 0x6ca   : > { %v9122_v4 = vpop.f32.mrf.mxu0 }
 0x6cc   : > { %v6719_v29 = vpop.f32.mrf.mxu0 }
 0x6ce   : > { %v9124_v31 = vpop.f32.mrf.mxu0 }
 0x6d0   : > { %v6720_v42 = vpop.f32.mrf.mxu0 }
 0x6d2   : > { %v9126_v8 = vpop.f32.mrf.mxu1 }
 0x6d4   : > { %v6725_v14 = vpop.f32.mrf.mxu1 }
 0x6d6   : > { %v9128_v63 = vpop.f32.mrf.mxu0  ;;  %v9130_v61 = vpop.f32.mrf.mxu1 }
 0x6d8   : > { %v6731_v51 = vpop.f32.mrf.mxu0  ;;  %v6726_v37 = vpop.f32.mrf.mxu1 }
 0x6da   : > { %v9132_v43 = vpop.f32.mrf.mxu0  ;;  %v9134_v33 = vpop.f32.mrf.mxu1 }
 0x6dc   : > { %v6732_v36 = vpop.f32.mrf.mxu0  ;;  %v6737_v3 = vpop.f32.mrf.mxu1 }
 0x6de   : > { %v3580_v60 = vpop.f32.mrf.mxu0  ;;  %v9136_v13 = vpop.f32.mrf.mxu1 }
 0x6df   : > { %v3710_v9 = vsel %vm2805_vm4, %v3580_v60, -inf }
 0x6e0   : > { %v6743_v6 = vpop.f32.mrf.mxu0  ;;  %3711 = vmax.xlane.f32.xlu0 %v3710_v9  ;;  %v6738_v39 = vpop.f32.mrf.mxu1 }
 0x6e2   : > { %v3583_v0 = vpop.f32.mrf.mxu0  ;;  %v3621_v11 = vpop.f32.mrf.mxu1 }
 0x6e3   : > { %v3713_v27 = vsel %vm2805_vm4, %v3583_v0, -inf  ;;  %v3716_v28 = vsel %vm2805_vm4, %v3621_v11, -inf }
 0x6e4   : > { %v6744_v1 = vpop.f32.mrf.mxu0  ;;  %3714 = vmax.xlane.f32.xlu1 %v3713_v27  ;;  %3717 = vmax.xlane.f32.xlu0 %v3716_v28  ;;  %v6749_v41 = vpop.f32.mrf.mxu1 }
 0x6e6   : > { %v3662_v52 = vpop.f32.mrf.mxu0  ;;  %v3624_v17 = vpop.f32.mrf.mxu1 }
 0x6e7   : > { %v3722_v18 = vsel %vm2805_vm4, %v3662_v52, -inf  ;;  %v3719_v53 = vsel %vm2805_vm4, %v3624_v17, -inf }
 0x6e8   : > { %v6755_v25 = vpop.f32.mrf.mxu0  ;;  %3723 = vmax.xlane.f32.xlu0 %v3722_v18  ;;  %3720 = vmax.xlane.f32.xlu1 %v3719_v53  ;;  %v6750_v30 = vpop.f32.mrf.mxu1 }
 0x6ea   : > { %v3665_v10 = vpop.f32.mrf.mxu0  ;;  %v3703_v26 = vpop.f32.mrf.mxu1 }
 0x6eb   : > { %v3725_v21 = vsel %vm2805_vm4, %v3665_v10, -inf  ;;  %v3728_v40 = vsel %vm2805_vm4, %v3703_v26, -inf }
 0x6ec   : > { %v6756_v56 = vpop.f32.mrf.mxu0  ;;  %3726 = vmax.xlane.f32.xlu1 %v3725_v21  ;;  %3729 = vmax.xlane.f32.xlu0 %v3728_v40  ;;  %v6761_v38 = vpop.f32.mrf.mxu1 }
 0x6ee   : > { %v3706_v49 = vpop.f32.mrf.mxu1 }
 0x6ef   : > { %v3731_v29 = vsel %vm2805_vm4, %v3706_v49, -inf }
 0x6f0   : > { %3732 = vmax.xlane.f32.xlu1 %v3731_v29  ;;  %v6762_v42 = vpop.f32.mrf.mxu1 }
 0x769   : > { %v3712_v14 = vpop.xlane.xlu0 %3711 }
 0x76a   : > { %v3734_v51 = vsub.f32 %v3580_v60, %v3712_v14  ;;  %v9908_v14 = vld [vmem:[#allocation77_spill] sm:$0xff] }
 0x76c   : > { %v3742_v37 = vmul.f32 1.442695, %v3734_v51 }
 0x76d   : > { %v3715_v36 = vpop.xlane.xlu1 %3714  ;;  %v3718_v9 = vpop.xlane.xlu0 %3717 }
 0x76e   : > { %v3735_v3 = vsub.f32 %v3583_v0, %v3715_v36  ;;  %v3736_v6 = vsub.f32 %v3621_v11, %v3718_v9  ;;  %7380 = vpow2.f32 %v3742_v37  ;;  %v7492_v37 = vld [vmem:[%s9713_s9] sm:$0xff] }
 0x770   : > { %v3744_v39 = vmul.f32 1.442695, %v3735_v3  ;;  %v3746_v28 = vmul.f32 1.442695, %v3736_v6  ;;  %v9910_v3 = vld [vmem:[#allocation59_spill] sm:$0xff] }
 0x771   : > { %v3724_v27 = vpop.xlane.xlu0 %3723  ;;  %v3721_v1 = vpop.xlane.xlu1 %3720 }
 0x772   : > { %7382 = vpow2.f32 %v3744_v39  ;;  %v3738_v41 = vsub.f32 %v3662_v52, %v3724_v27  ;;  %v3737_v18 = vsub.f32 %v3624_v17, %v3721_v1  ;;  %v1673_v17 = vsub.s32 7, %v8410_v34  ;;  %v9911_v27 = vld [vmem:[#allocation33_spill] sm:$0xff] }
 0x773   : > { %7384 = vpow2.f32 %v3746_v28  ;;  %v1658_v1 = vrot.slane %v7492_v37, %v9911_v27 }
 0x774   : > { %v3748_v25 = vmul.f32 1.442695, %v3737_v18  ;;  %v3750_v53 = vmul.f32 1.442695, %v3738_v41  ;;  %v1674_v36 = vrot.slane %v7492_v37, %v1673_v17  ;;  %v9912_v41 = vld [vmem:[#allocation58_spill] sm:$0xff] }
 0x775   : > { %v3727_v30 = vpop.xlane.xlu1 %3726  ;;  %v3730_v21 = vpop.xlane.xlu0 %3729 }
 0x776   : > { %v3739_v56 = vsub.f32 %v3665_v10, %v3727_v30  ;;  %v3740_v60 = vsub.f32 %v3703_v26, %v3730_v21  ;;  %7386 = vpow2.f32 %v3748_v25  ;;  %v9907_v26 = vld [vmem:[#allocation79_spill] sm:$0xff]  ;;  %v2443_v9 = vadd.f32 %v9910_v3, %v1674_v36  ;;  %v9913_v25 = vld [vmem:[#allocation45_spill] sm:$0xff] }
 0x777   : > { %7388 = vpow2.f32 %v3750_v53  ;;  %v9909_v51 = vpack.c.bf16 %v9907_v26, %v9908_v14  ;;  %v2439_v18 = vadd.f32 %v9912_v41, %v1674_v36  ;;  %v2297_v53 = vadd.f32 %v9913_v25, %v1658_v1  ;;  %v9914_v30 = vld [vmem:[#allocation83_spill] sm:$0xff]  ;;  %v9915_v21 = vld [vmem:[#allocation81_spill] sm:$0xff]  ;;  %v9919_v14 = vld [vmem:[#allocation60_spill] sm:$0xff] }
 0x778   : > { %v3752_v40 = vmul.f32 1.442695, %v3739_v56  ;;  %v3754_v0 = vmul.f32 1.442695, %v3740_v60  ;;  %v9916_v56 = vpack.c.bf16 %v9914_v30, %v9915_v21  ;;  %v9920_v3 = vld [vmem:[#allocation47_spill] sm:$0xff]  ;;  %v9922_v30 = vld [vmem:[#allocation46_spill] sm:$0xff] }
 0x779   : > { %v3733_v11 = vpop.xlane.xlu1 %3732  ;;  %v3979_v26 = vmul.f32 0.25, %v2297_v53  ;;  %v2303_v21 = vadd.f32 %v9922_v30, %v1658_v1  ;;  %v9929_v30 = vld [vmem:[#allocation76_spill] sm:$0xff] }
 0x77a   : > { %7390 = vpow2.f32 %v3752_v40  ;;  %v3741_v38 = vsub.f32 %v3706_v49, %v3733_v11  ;;  %v3990_v40 = vpack.c.bf16 %v2443_v9, %v2439_v18  ;;  %v9917_v11 = vld [vmem:[#allocation44_spill] sm:$0xff]  ;;  %v2307_v9 = vadd.f32 %v9920_v3, %v1658_v1  ;;  %v9925_v3 = vld [vmem:[#allocation50_spill] sm:$0xff] }
 0x77b   : > { %v9146_v42 = vpop.eup %7380  ;;  %7392 = vpow2.f32 %v3754_v0 }
 0x77c   : > { %v3756_v29 = vmul.f32 1.442695, %v3741_v38  ;;  %v2293_v38 = vadd.f32 %v9917_v11, %v1658_v1 }
 0x77e   : > { %7394 = vpow2.f32 %v3756_v29  ;;  %v9918_v29 = vld [vmem:[#allocation61_spill] sm:$0xff]  ;;  %v3978_v18 = vmul.f32 0.25, %v2293_v38  ;;  %v2313_v38 = vadd.f32 %v9925_v3, %v1658_v1 }
 0x77f   : > { %v9148_v52 = vpop.eup %7382  ;;  %v2453_v17 = vadd.f32 %v9918_v29, %v1674_v36  ;;  %v3981_v29 = vmul.f32 0.25, %v2307_v9  ;;  %v9928_v9 = vld [vmem:[#allocation55_spill] sm:$0xff] }
 0x780   : > { %v3782_v10 = vpack.c.bf16 %v9148_v52, %v9146_v42  ;;  %v9159_v49 = vpop.eup %7384  ;;  %v3986_v53 = vpack.c.bf16 %v3979_v26, %v3978_v18 }
 0x782   : > { %6766 = vmatmul.mubr.msk.bf16.vlgmr.msra.gmra.mxu0 %vm2805_vm4, %v3782_v10 }
 0x783   : > { %6776 = vmatpush3.bf16.msra.mxu0 %v9909_v51  ;;  %6777 = vmatprep.mubr.msk.bf16.mxu0 %vm7937_vm3, %v9849_v62  ;;  %v9165_v34 = vpop.eup %7386  ;;  %v2449_v51 = vadd.f32 %v9919_v14, %v1674_v36 }
 0x784   : > { %6787 = vmatprep.subr.bf16.mxu0 %v9849_v62  ;;  %v3783_v6 = vpack.c.bf16 %v9165_v34, %v9159_v49  ;;  %v9170_v39 = vpop.eup %7388 }
 0x785   : > { %v3991_v25 = vpack.c.bf16 %v2453_v17, %v2449_v51  ;;  %v9926_v17 = vld [vmem:[#allocation67_spill] sm:$0xff] }
 0x786   : > { %6772 = vmatmul.mubr.msk.bf16.vlgmr.msra.gmra.mxu1 %vm2805_vm4, %v3783_v6  ;;  %v9921_v6 = vld [vmem:[#allocation63_spill] sm:$0xff]  ;;  %v2473_v51 = vadd.f32 %v9926_v17, %v1674_v36  ;;  %v9931_v17 = vld [vmem:[#allocation54_spill] sm:$0xff] }
 0x787   : > { %v9173_v28 = vpop.eup %7390  ;;  %6782 = vmatpush3.bf16.msra.mxu1 %v9916_v56  ;;  %6783 = vmatprep.mubr.msk.bf16.mxu1 %vm7937_vm3, %v9849_v62  ;;  %v2463_v41 = vadd.f32 %v9921_v6, %v1674_v36  ;;  %v9923_v56 = vld [vmem:[#allocation62_spill] sm:$0xff]  ;;  %v3980_v6 = vmul.f32 0.25, %v2303_v21  ;;  %v9932_v21 = vld [vmem:[#allocation68_spill] sm:$0xff] }
 0x788   : > { %v3784_v60 = vpack.c.bf16 %v9173_v28, %v9170_v39  ;;  %6793 = vmatprep.subr.bf16.mxu1 %v9849_v62  ;;  %v9186_v0 = vpop.eup %7392 }
 0x78a   : > { %6778 = vmatmul.mubr.msk.bf16.vlgmr.msra.gmra.mxu0 %vm2805_vm4, %v3784_v60  ;;  %v2459_v60 = vadd.f32 %v9923_v56, %v1674_v36  ;;  %v9930_v56 = vld [vmem:[#allocation71_spill] sm:$0xff] }
 0x78b   : > { %v9191_v10 = vpop.eup %7394  ;;  %6788 = vmatpush3.bf16.xpose.msra.mxu0 %v3990_v40  ;;  %6789 = vmatprep.mubr.msk.bf16.mxu0 %vm7937_vm3, %v9849_v62  ;;  %v9924_v40 = vld [vmem:[#allocation51_spill] sm:$0xff] }
 0x78c   : > { %v3785_v37 = vpack.c.bf16 %v9191_v10, %v9186_v0  ;;  %6799 = vmatprep.subr.bf16.mxu0 %v9849_v62  ;;  %v2317_v11 = vadd.f32 %v9924_v40, %v1658_v1  ;;  %v3992_v14 = vpack.c.bf16 %v2463_v41, %v2459_v60  ;;  %v2327_v41 = vadd.f32 %v9928_v9, %v1658_v1 }
 0x78d   : > { %v2589_v60 = vadd.f32 %v9930_v56, %v9929_v30  ;;  %v3982_v40 = vmul.f32 0.25, %v2313_v38 }
 0x78e   : > { %6784 = vmatmul.mubr.msk.bf16.vlgmr.msra.gmra.mxu1 %vm2805_vm4, %v3785_v37  ;;  %v3983_v26 = vmul.f32 0.25, %v2317_v11  ;;  %v9927_v37 = vld [vmem:[#allocation64_spill] sm:$0xff] }
 0x78f   : > { %6794 = vmatpush3.bf16.xpose.msra.mxu1 %v3991_v25  ;;  %6795 = vmatprep.mubr.msk.bf16.mxu1 %vm7937_vm3, %v9849_v62  ;;  %v2469_v18 = vadd.f32 %v9927_v37, %v1674_v36  ;;  %v3987_v25 = vpack.c.bf16 %v3981_v29, %v3980_v6  ;;  %v3985_v36 = vmul.f32 0.25, %v2327_v41  ;;  %v9933_v29 = vld [vmem:[#allocation75_spill] sm:$0xff] }
 0x790   : > { %6805 = vmatprep.subr.bf16.mxu1 %v9849_v62  ;;  %v3988_v27 = vpack.c.bf16 %v3983_v26, %v3982_v40  ;;  %v2599_v6 = vadd.f32 %v9933_v29, %v9929_v30 }
 0x791   : > { %v3993_v3 = vpack.c.bf16 %v2473_v51, %v2469_v18 }
 0x792   : > { %6790 = vmatmul.mubr.bf16.vlgmr.msra.gmra.mxu0 %v3986_v53  ;;  %v2323_v53 = vadd.f32 %v9931_v17, %v1658_v1  ;;  %v9934_v1 = vld [vmem:[#allocation72_spill] sm:$0xff] }
 0x793   : > { %6800 = vmatpush3.bf16.xpose.msra.mxu0 %v3992_v14  ;;  %6801 = vmatprep.mubr.msk.bf16.mxu0 %vm7937_vm3, %v9849_v62  ;;  %v2585_v14 = vadd.f32 %v9932_v21, %v9929_v30  ;;  %v2595_v51 = vadd.f32 %v9934_v1, %v9929_v30 }
 0x794   : > { %6811 = vmatprep.subr.bf16.mxu0 %v9849_v62  ;;  %v3984_v38 = vmul.f32 0.25, %v2323_v53 }
 0x795   : > { %v3994_v11 = vpack.c.bf16 %v2589_v60, %v2585_v14  ;;  %v3995_v37 = vpack.c.bf16 %v2599_v6, %v2595_v51 }
 0x796   : > { %6796 = vmatmul.mubr.bf16.vlgmr.msra.gmra.mxu1 %v3987_v25  ;;  %v3989_v26 = vpack.c.bf16 %v3985_v36, %v3984_v38 }
 0x797   : > { %6806 = vmatpush3.bf16.xpose.msra.mxu1 %v3993_v3  ;;  %6807 = vmatprep.mubr.msk.bf16.mxu1 %vm7937_vm3, %v9849_v62 }
 0x798   : > { %6817 = vmatprep.subr.bf16.mxu1 %v9849_v62 }
 0x79a   : > { %6802 = vmatmul.mubr.bf16.vlgmr.msra.gmra.mxu0 %v3988_v27 }
 0x79b   : > { %6812 = vmatpush3.bf16.msra.mxu0 %v3994_v11  ;;  %6813 = vmatprep.mubr.msk.bf16.mxu0 %vm7937_vm3, %v9849_v62 }
 0x79c   : > { %6823 = vmatprep.subr.bf16.mxu0 %v9849_v62 }
 0x79e   : > { %6808 = vmatmul.mubr.bf16.vlgmr.msra.gmra.mxu1 %v3989_v26 }
 0x79f   : > { %6818 = vmatpush3.bf16.msra.mxu1 %v3995_v37  ;;  %6819 = vmatprep.mubr.msk.bf16.mxu1 %vm7937_vm3, %v9849_v62 }
 0x7a0   : > { %6829 = vmatprep.subr.bf16.mxu1 %v9849_v62 }
 0x842   : > { %v9233_v27 = vpop.f32.mrf.mxu0 }
 0x844   : > { %v6767_v18 = vpop.f32.mrf.mxu0 }
 0x846   : > { %v9235_v25 = vpop.f32.mrf.mxu0  ;;  %v9237_v9 = vpop.f32.mrf.mxu1 }
 0x848   : > { %v6768_v41 = vpop.f32.mrf.mxu0  ;;  %v6773_v30 = vpop.f32.mrf.mxu1 }
 0x84a   : > { %v9239_v56 = vpop.f32.mrf.mxu0  ;;  %v9241_v60 = vpop.f32.mrf.mxu1 }
 0x84c   : > { %v6779_v40 = vpop.f32.mrf.mxu0  ;;  %v6774_v3 = vpop.f32.mrf.mxu1 }
 0x84e   : > { %v9243_v17 = vpop.f32.mrf.mxu0  ;;  %v9245_v53 = vpop.f32.mrf.mxu1 }
 0x84f   : > { %9935 = vst [vmem:[#allocation49_spill] sm:$0xff] %v9245_v53  ;;  %v3309_v53 = vsel %vm2805_vm4, %v9036_v57, 0.0  ;;  %v3315_v57 = vsel %vm2805_vm4, %v9049_v23, 0.0  ;;  %v3321_v23 = vsel %vm2805_vm4, %v9055_v24, 0.0 }
 0x850   : > { %v6780_v21 = vpop.f32.mrf.mxu0  ;;  %v6785_v14 = vpop.f32.mrf.mxu1 }
 0x852   : > { %v9247_v36 = vpop.f32.mrf.mxu0  ;;  %v9249_v11 = vpop.f32.mrf.mxu1 }
 0x853   : > { %v4162_v29 = vsel %vm2805_vm4, %v9247_v36, -inf }
 0x854   : > { %v6791_v6 = vpop.f32.mrf.mxu0  ;;  %4163 = vmax.xlane.f32.xlu0 %v4162_v29  ;;  %v6786_v38 = vpop.f32.mrf.mxu1 }
 0x856   : > { %v9253_v1 = vpop.f32.mrf.mxu0  ;;  %v9255_v51 = vpop.f32.mrf.mxu1 }
 0x857   : > { %v4165_v26 = vsel %vm2805_vm4, %v9253_v1, -inf  ;;  %v4168_v18 = vsel %vm2805_vm4, %v9255_v51, -inf }
 0x858   : > { %v6792_v37 = vpop.f32.mrf.mxu0  ;;  %4166 = vmax.xlane.f32.xlu1 %v4165_v26  ;;  %4169 = vmax.xlane.f32.xlu0 %v4168_v18  ;;  %v6797_v41 = vpop.f32.mrf.mxu1 }
 0x85a   : > { %v9261_v30 = vpop.f32.mrf.mxu0  ;;  %v9263_v40 = vpop.f32.mrf.mxu1 }
 0x85b   : > { %v4174_v3 = vsel %vm2805_vm4, %v9261_v30, -inf  ;;  %v4171_v14 = vsel %vm2805_vm4, %v9263_v40, -inf }
 0x85c   : > { %v6803_v21 = vpop.f32.mrf.mxu0  ;;  %4175 = vmax.xlane.f32.xlu0 %v4174_v3  ;;  %4172 = vmax.xlane.f32.xlu1 %v4171_v14  ;;  %v6798_v29 = vpop.f32.mrf.mxu1  ;;  %v3306_v3 = vsel %vm2805_vm4, %v9034_v20, 0.0  ;;  %v2857_v20 = vsel %vm2805_vm4, %v8925_v35, 0.0  ;;  %v3764_v35 = vsel %vm2805_vm4, %v9159_v49, 0.0 }
 0x85e   : > { %v9269_v6 = vpop.f32.mrf.mxu0  ;;  %v9271_v38 = vpop.f32.mrf.mxu1 }
 0x85f   : > { %v4177_v26 = vsel %vm2805_vm4, %v9269_v6, -inf  ;;  %v4180_v18 = vsel %vm2805_vm4, %v9271_v38, -inf }
 0x860   : > { %v6804_v37 = vpop.f32.mrf.mxu0  ;;  %4178 = vmax.xlane.f32.xlu1 %v4177_v26  ;;  %4181 = vmax.xlane.f32.xlu0 %v4180_v18  ;;  %v6809_v41 = vpop.f32.mrf.mxu1  ;;  %v3758_v26 = vsel %vm2805_vm4, %v9146_v42, 0.0  ;;  %v3312_v18 = vsel %vm2805_vm4, %v9047_v15, 0.0  ;;  %v2863_v42 = vsel %vm2805_vm4, %v8938_v59, 0.0  ;;  %v3318_v15 = vsel %vm2805_vm4, %v9053_v44, 0.0 }
 0x861   : > { %v2854_v37 = vsel %vm2805_vm4, %v8923_v45, 0.0  ;;  %v3761_v41 = vsel %vm2805_vm4, %v9148_v52, 0.0  ;;  %v2860_v45 = vsel %vm2805_vm4, %v8936_v32, 0.0  ;;  %v3767_v52 = vsel %vm2805_vm4, %v9165_v34, 0.0 }
 0x862   : > { %v9277_v21 = vpop.f32.mrf.mxu1  ;;  %v2866_v32 = vsel %vm2805_vm4, %v8953_v2, 0.0  ;;  %v2869_v59 = vsel %vm2805_vm4, %v8955_v5, 0.0 }
 0x863   : > { %v4183_v14 = vsel %vm2805_vm4, %v9277_v21, -inf }
 0x864   : > { %3307 = vadd.xlane.f32.xlu0 %v3306_v3  ;;  %4184 = vmax.xlane.f32.xlu1 %v4183_v14  ;;  %v6810_v29 = vpop.f32.mrf.mxu1 }
 0x868   : > { %2855 = vadd.xlane.f32.xlu0 %v2854_v37  ;;  %3310 = vadd.xlane.f32.xlu1 %v3309_v53 }
 0x86c   : > { %3759 = vadd.xlane.f32.xlu0 %v3758_v26  ;;  %2858 = vadd.xlane.f32.xlu1 %v2857_v20 }
 0x870   : > { %3313 = vadd.xlane.f32.xlu0 %v3312_v18  ;;  %3762 = vadd.xlane.f32.xlu1 %v3761_v41 }
 0x874   : > { %2861 = vadd.xlane.f32.xlu0 %v2860_v45  ;;  %3316 = vadd.xlane.f32.xlu1 %v3315_v57 }
 0x878   : > { %3765 = vadd.xlane.f32.xlu0 %v3764_v35  ;;  %2864 = vadd.xlane.f32.xlu1 %v2863_v42 }
 0x87c   : > { %3319 = vadd.xlane.f32.xlu0 %v3318_v15  ;;  %3768 = vadd.xlane.f32.xlu1 %v3767_v52 }
 0x880   : > { %2867 = vadd.xlane.f32.xlu0 %v2866_v32  ;;  %3322 = vadd.xlane.f32.xlu1 %v3321_v23 }
 0x884   : > { %2870 = vadd.xlane.f32.xlu1 %v2869_v59  ;;  %v3770_v59 = vsel %vm2805_vm4, %v9170_v39, 0.0 }
 0x8dd   : > { %v4164_v49 = vpop.xlane.xlu0 %4163 }
 0x8de   : > { %v4186_v44 = vsub.f32 %v9247_v36, %v4164_v49 }
 0x8e0   : > { %v4194_v53 = vmul.f32 1.442695, %v4186_v44 }
 0x8e1   : > { %v4167_v3 = vpop.xlane.xlu1 %4166  ;;  %v4170_v14 = vpop.xlane.xlu0 %4169 }
 0x8e2   : > { %7396 = vpow2.f32 %v4194_v53  ;;  %v4187_v34 = vsub.f32 %v9253_v1, %v4167_v3  ;;  %v4188_v2 = vsub.f32 %v9255_v51, %v4170_v14  ;;  %v7220_v53 = vld [vmem:[#allocation17 + $0x78] sm:$0xff]   ;;  %v9936_v14 = vld [vmem:[#allocation80_spill] sm:$0xff] }
 0x8e4   : > { %v4196_v29 = vmul.f32 1.442695, %v4187_v34  ;;  %v4198_v37 = vmul.f32 1.442695, %v4188_v2  ;;  %v9937_v2 = vld [vmem:[#allocation78_spill] sm:$0xff] }
 0x8e5   : > { %v4176_v24 = vpop.xlane.xlu0 %4175  ;;  %v4173_v26 = vpop.xlane.xlu1 %4172 }
 0x8e6   : > { %7398 = vpow2.f32 %v4196_v29  ;;  %v4190_v20 = vsub.f32 %v9261_v30, %v4176_v24  ;;  %v4189_v5 = vsub.f32 %v9263_v40, %v4173_v26  ;;  %v9938_v29 = vpack.c.bf16 %v9936_v14, %v9937_v2  ;;  %v7225_v2 = vld [vmem:[#allocation17 + $0x28] sm:$0xff]  }
 0x8e7   : > { %7400 = vpow2.f32 %v4198_v37  ;;  %v3773_v37 = vsel %vm2805_vm4, %v9173_v28, 0.0  ;;  %v9940_v28 = vld [vmem:[#allocation82_spill] sm:$0xff]  ;;  %v2872_v14 = vsel %vm2805_vm4, %v8966_v19, 0.0  ;;  %v2875_v19 = vsel %vm2805_vm4, %v8968_v58, 0.0 }
 0x8e8   : > { %v4200_v18 = vmul.f32 1.442695, %v4189_v5  ;;  %v4202_v36 = vmul.f32 1.442695, %v4190_v20 }
 0x8e9   : > { %v4179_v41 = vpop.xlane.xlu1 %4178  ;;  %v4182_v45 = vpop.xlane.xlu0 %4181 }
 0x8ea   : > { %v4191_v57 = vsub.f32 %v9269_v6, %v4179_v41  ;;  %v4192_v1 = vsub.f32 %v9271_v38, %v4182_v45  ;;  %7402 = vpow2.f32 %v4200_v18  ;;  %v3324_v41 = vsel %vm2805_vm4, %v9066_v54, 0.0  ;;  %v7221_v45 = vld [vmem:[#allocation17 + $0x38] sm:$0xff]  }
 0x8eb   : > { %7404 = vpow2.f32 %v4202_v36 }
 0x8ec   : > { %v4204_v51 = vmul.f32 1.442695, %v4191_v57  ;;  %v4206_v35 = vmul.f32 1.442695, %v4192_v1  ;;  %v9939_v57 = vld [vmem:[#allocation84_spill] sm:$0xff] }
 0x8ed   : > { %v3308_v42 = vpop.xlane.xlu0 %3307  ;;  %v4185_v15 = vpop.xlane.xlu1 %4184  ;;  %v9941_v1 = vpack.c.bf16 %v9939_v57, %v9940_v28  ;;  %v7231_v57 = vld [vmem:[#allocation17 + $0x10] sm:$0xff]  }
 0x8ee   : > { %7406 = vpow2.f32 %v4204_v51  ;;  %v4193_v30 = vsub.f32 %v9277_v21, %v4185_v15 }
 0x8ef   : > { %v7397_v52 = vpop.eup %7396  ;;  %7408 = vpow2.f32 %v4206_v35 }
 0x8f0   : > { %v4210_v40 = vsel %vm2805_vm4, %v7397_v52, 0.0  ;;  %v4208_v32 = vmul.f32 1.442695, %v4193_v30  ;;  %7410 = vrcp.f32 %v3308_v42  ;;  %v7222_v42 = vld [vmem:[#allocation17 + $0x70] sm:$0xff]  }
 0x8f1   : > { %4211 = vadd.xlane.f32.xlu0 %v4210_v40  ;;  %v9322_v23 = vpop.xlane.xlu0 %2855  ;;  %v3311_v6 = vpop.xlane.xlu1 %3310 }
 0x8f2   : > { %7412 = vpow2.f32 %v4208_v32 }
 0x8f3   : > { %v7399_v38 = vpop.eup %7398  ;;  %7414 = vrcp.f32 %v3311_v6  ;;  %v7223_v6 = vld [vmem:[#allocation17 + $0x30] sm:$0xff]  }
 0x8f4   : > { %v4213_v49 = vsel %vm2805_vm4, %v7399_v38, 0.0  ;;  %v4234_v44 = vpack.c.bf16 %v7399_v38, %v7397_v52  ;;  %v7401_v3 = vpop.eup %7400 }
 0x8f5   : > { %3771 = vadd.xlane.f32.xlu0 %v3770_v59  ;;  %4214 = vadd.xlane.f32.xlu1 %v4213_v49  ;;  %v3760_v21 = vpop.xlane.xlu0 %3759  ;;  %v9327_v34 = vpop.xlane.xlu1 %2858  ;;  %v4216_v39 = vsel %vm2805_vm4, %v7401_v3, 0.0  ;;  %v3327_v59 = vsel %vm2805_vm4, %v9069_v12, 0.0  ;;  %v7224_v49 = vld [vmem:[#allocation17 + $0x68] sm:$0xff]  }
 0x8f6   : > { %6814 = vmatmul.mubr.msk.bf16.vlgmr.msra.gmra.mxu0 %vm2805_vm4, %v4234_v44  ;;  %7416 = vrcp.f32 %v3760_v21 }
 0x8f7   : > { %6824 = vmatpush3.bf16.msra.mxu0 %v9938_v29  ;;  %6825 = vmatprep.mubr.msk.bf16.mxu0 %vm7937_vm3, %v9849_v62  ;;  %v7403_v24 = vpop.eup %7402 }
 0x8f8   : > { %6483 = vmatprep.subr.bf16.mxu0 %v7220_v53  ;;  %v4235_v26 = vpack.c.bf16 %v7403_v24, %v7401_v3  ;;  %v7405_v18 = vpop.eup %7404  ;;  %v4219_v51 = vsel %vm2805_vm4, %v7403_v24, 0.0 }
 0x8f9   : > { %4217 = vadd.xlane.f32.xlu0 %v4216_v39  ;;  %3774 = vadd.xlane.f32.xlu1 %v3773_v37  ;;  %v9338_v20 = vpop.xlane.xlu0 %3313  ;;  %v3763_v5 = vpop.xlane.xlu1 %3762  ;;  %v4222_v32 = vsel %vm2805_vm4, %v7405_v18, 0.0  ;;  %v7226_v39 = vld [vmem:[#allocation17 + $0x60] sm:$0xff]  }
 0x8fa   : > { %7418 = vrcp.f32 %v3763_v5  ;;  %6820 = vmatmul.mubr.msk.bf16.vlgmr.msra.gmra.mxu1 %vm2805_vm4, %v4235_v26  ;;  %v7228_v5 = vld [vmem:[#allocation17 + $0x58] sm:$0xff]  }
 0x8fb   : > { %v7407_v36 = vpop.eup %7406  ;;  %6830 = vmatpush3.bf16.msra.mxu1 %v9941_v1  ;;  %6831 = vmatprep.mubr.msk.bf16.mxu1 %vm7937_vm3, %v9849_v62  ;;  %v7233_v1 = vld [vmem:[#allocation17 + $0x8] sm:$0xff]  }
 0x8fc   : > { %v4236_v35 = vpack.c.bf16 %v7407_v36, %v7405_v18  ;;  %v7409_v15 = vpop.eup %7408  ;;  %v4225_v12 = vsel %vm2805_vm4, %v7407_v36, 0.0 }
 0x8fd   : > { %3325 = vadd.xlane.f32.xlu0 %v3324_v41  ;;  %v9347_v52 = vpop.xlane.xlu0 %2861  ;;  %4220 = vadd.xlane.f32.xlu1 %v4219_v51  ;;  %v3317_v30 = vpop.xlane.xlu1 %3316  ;;  %v7229_v41 = vld [vmem:[#allocation17 + $0x18] sm:$0xff]  }
 0x8fe   : > { %v7411_v40 = vpop.eup %7410  ;;  %6826 = vmatmul.mubr.msk.bf16.vlgmr.msra.gmra.mxu0 %vm2805_vm4, %v4236_v35  ;;  %v7234_v35 = vld [vmem:[#allocation17 + $0x40] sm:$0xff]  }
 0x8ff   : > { %v7413_v54 = vpop.eup %7412  ;;  %6484 = vmatpush3.bf16.msra.mxu0 %v7221_v45  ;;  %v3518_v62 = vmul.f32 %v7411_v40, %v9122_v4  ;;  %v4228_v4 = vsel %vm2805_vm4, %v7409_v15, 0.0  ;;  %v7230_v45 = vld [vmem:[#allocation17 + $0x50] sm:$0xff]  }
 0x900   : > { %v4237_v38 = vpack.c.bf16 %v7413_v54, %v7409_v15  ;;  %6485 = vmatprep.subr.bf16.mxu0 %v7222_v42  ;;  %v7415_v44 = vpop.eup %7414 }
 0x901   : > { %4223 = vadd.xlane.f32.xlu0 %v4222_v32  ;;  %3328 = vadd.xlane.f32.xlu1 %v3327_v59  ;;  %v2865_v53 = vpop.xlane.xlu1 %2864  ;;  %v3766_v3 = vpop.xlane.xlu0 %3765  ;;  %v3519_v21 = vmul.f32 %v7415_v44, %v9124_v31  ;;  %v7227_v31 = vld [vmem:[#allocation17 + $0x20] sm:$0xff]  }
 0x902   : > { %6832 = vmatmul.mubr.msk.bf16.vlgmr.msra.gmra.mxu1 %vm2805_vm4, %v4237_v38  ;;  %7420 = vrcp.f32 %v3766_v3 }
 0x903   : > { %6486 = vmatpush3.bf16.msra.mxu0 %v7223_v6  ;;  %v4431_v29 = vpack.c.bf16 %v3519_v21, %v3518_v62  ;;  %v7417_v24 = vpop.eup %7416  ;;  %v7235_v6 = vld [vmem:[#allocation17] sm:$0xff]   ;;  %v7236_v62 = vld [vmem:[#allocation17 + $0xf8] sm:$0xff]  }
 0x904   : > { %6487 = vmatprep.subr.bf16.mxu0 %v7224_v49  ;;  %v9366_v18 = vmul.f32 %v7417_v24, %v9233_v27  ;;  %v4231_v27 = vsel %vm2805_vm4, %v7413_v54, 0.0  ;;  %v7237_v21 = vld [vmem:[#allocation17 + $0xb8] sm:$0xff]   ;;  %6523 = vmatprep.subr.bf16.mxu1 %v7236_v62 }
 0x905   : > { %2873 = vadd.xlane.f32.xlu0 %v2872_v14  ;;  %4226 = vadd.xlane.f32.xlu1 %v4225_v12  ;;  %v3769_v37 = vpop.xlane.xlu1 %3768  ;;  %v7238_v14 = vld [vmem:[#allocation17 + $0xf0] sm:$0xff]  }
 0x906   : > { %4741 = vmatprep.mubr.bf16.mxu0 %v4431_v29  ;;  %7422 = vrcp.f32 %v3769_v37  ;;  %6524 = vmatpush3.bf16.msra.mxu1 %v7237_v21  ;;  %v9942_v21 = vmov 0  }
 0x907   : > { %6488 = vmatpush3.bf16.msra.mxu0 %v7225_v2  ;;  %v7419_v26 = vpop.eup %7418  ;;  %7424 = vrcp.f32 %v9327_v34  ;;  %v3776_v34 = vsel %vm2805_vm4, %v9186_v0, 0.0  ;;  %v7232_v0 = vld [vmem:[#allocation17 + $0x48] sm:$0xff]   ;;  %6525 = vmatprep.subr.bf16.mxu1 %v7238_v14 }
 0x908   : > { %6489 = vmatprep.subr.bf16.mxu0 %v7226_v39  ;;  %7426 = vrcp.f32 %v3317_v30  ;;  %v9369_v36 = vmul.f32 %v7419_v26, %v9235_v25 }
 0x909   : > { %4229 = vadd.xlane.f32.xlu0 %v4228_v4  ;;  %2876 = vadd.xlane.f32.xlu1 %v2875_v19  ;;  %7428 = vrcp.f32 %v9322_v23  ;;  %v3323_v25 = vpop.xlane.xlu1 %3322  ;;  %v3320_v23 = vpop.xlane.xlu0 %3319  ;;  %v7239_v4 = vld [vmem:[#allocation17 + $0xb0] sm:$0xff]   ;;  %v7241_v19 = vld [vmem:[#allocation17 + $0xa8] sm:$0xff]  }
 0x90a   : > { %7430 = vrcp.f32 %v9338_v20  ;;  %v4432_v58 = vpack.c.bf16 %v9369_v36, %v9366_v18  ;;  %v3779_v20 = vsel %vm2805_vm4, %v9191_v10, 0.0  ;;  %6526 = vmatpush3.bf16.msra.mxu1 %v7239_v4 }
 0x90b   : > { %6490 = vmatpush3.bf16.msra.mxu0 %v7227_v31  ;;  %7432 = vrcp.f32 %v2865_v53  ;;  %v7240_v31 = vld [vmem:[#allocation17 + $0xe8] sm:$0xff]  }
 0x90c   : > { %6491 = vmatprep.subr.bf16.mxu0 %v7228_v5  ;;  %7434 = vrcp.f32 %v3323_v25  ;;  %6527 = vmatprep.subr.bf16.mxu1 %v7240_v31  ;;  %v7242_v5 = vld [vmem:[#allocation17 + $0xe0] sm:$0xff]   ;;  %v7248_v25 = vld [vmem:[#allocation17 + $0xc8] sm:$0xff]  }
 0x90d   : > { %3777 = vadd.xlane.f32.xlu0 %v3776_v34  ;;  %4232 = vadd.xlane.f32.xlu1 %v4231_v27  ;;  %7436 = vrcp.f32 %v9347_v52  ;;  %v2871_v15 = vpop.xlane.xlu1 %2870  ;;  %v2868_v32 = vpop.xlane.xlu0 %2867  ;;  %v7246_v27 = vld [vmem:[#allocation17 + $0xd0] sm:$0xff]  }
 0x90e   : > { %7438 = vrcp.f32 %v3320_v23  ;;  %6528 = vmatpush3.bf16.msra.mxu1 %v7241_v19 }
 0x90f   : > { %6492 = vmatpush3.bf16.msra.mxu0 %v7229_v41  ;;  %v7421_v28 = vpop.eup %7420  ;;  %7440 = vrcp.f32 %v2871_v15  ;;  %6529 = vmatprep.subr.bf16.mxu1 %v7242_v5  ;;  %v7245_v41 = vld [vmem:[#allocation17 + $0x98] sm:$0xff]  }
 0x910   : > { %6493 = vmatprep.subr.bf16.mxu0 %v7230_v45  ;;  %v9382_v30 = vmul.f32 %v7421_v28, %v9237_v9  ;;  %7442 = vrcp.f32 %v2868_v32  ;;  %v7247_v45 = vld [vmem:[#allocation17 + $0x90] sm:$0xff]  }
 0x911   : > { %3780 = vadd.xlane.f32.xlu1 %v3779_v20 }
 0x913   : > { %6494 = vmatpush3.bf16.msra.mxu0 %v7231_v57  ;;  %v7423_v51 = vpop.eup %7422  ;;  %v7250_v57 = vld [vmem:[#allocation17 + $0xc0] sm:$0xff]  }
 0x914   : > { %6495 = vmatprep.subr.bf16.mxu0 %v7232_v0  ;;  %v7425_v42 = vpop.eup %7424  ;;  %v9385_v40 = vmul.f32 %v7423_v51, %v9241_v60 }
 0x915   : > { %v7427_v10 = vpop.eup %7426  ;;  %v3067_v59 = vmul.f32 %v7425_v42, %v9012_v46 }
 0x916   : > { %v7429_v54 = vpop.eup %7428  ;;  %v4436_v52 = vpack.c.bf16 %v9385_v40, %v9382_v30  ;;  %v3521_v49 = vmul.f32 %v7427_v10, %v9130_v61  ;;  %v9943_v40 = vld [vmem:[#allocation49_spill] sm:$0xff] }
 0x917   : > { %6496 = vmatpush3.bf16.msra.mxu0 %v7233_v1  ;;  %v7431_v38 = vpop.eup %7430  ;;  %v3066_v9 = vmul.f32 %v7429_v54, %v9010_v22 }
 0x918   : > { %6497 = vmatprep.subr.bf16.mxu0 %v7234_v35  ;;  %v3520_v60 = vmul.f32 %v7431_v38, %v9126_v8  ;;  %v7433_v53 = vpop.eup %7432 }
 0x919   : > { %v4430_v44 = vpack.c.bf16 %v3067_v59, %v3066_v9  ;;  %v7435_v2 = vpop.eup %7434  ;;  %v3069_v61 = vmul.f32 %v7433_v53, %v9016_v47 }
 0x91a   : > { %v4435_v3 = vpack.c.bf16 %v3521_v49, %v3520_v60  ;;  %v7437_v29 = vpop.eup %7436  ;;  %v3523_v22 = vmul.f32 %v7435_v2, %v9132_v43 }
 0x91b   : > { %6498 = vmatpush3.bf16.msra.mxu0 %v7235_v6  ;;  %v7439_v46 = vpop.eup %7438  ;;  %v3068_v8 = vmul.f32 %v7437_v29, %v9014_v16  ;;  %v7243_v16 = vld [vmem:[#allocation17 + $0xa0] sm:$0xff]  }
 0x91c   : > { %v3522_v12 = vmul.f32 %v7439_v46, %v9128_v63  ;;  %v7441_v37 = vpop.eup %7440  ;;  %v7244_v63 = vld [vmem:[#allocation17 + $0xd8] sm:$0xff]   ;;  %6530 = vmatpush3.bf16.msra.mxu1 %v7243_v16 }
 0x91d   : > { %v4434_v39 = vpack.c.bf16 %v3069_v61, %v3068_v8  ;;  %v7443_v26 = vpop.eup %7442  ;;  %v3071_v47 = vmul.f32 %v7441_v37, %v9020_v55  ;;  %6531 = vmatprep.subr.bf16.mxu1 %v7244_v63  ;;  %v7249_v55 = vld [vmem:[#allocation17 + $0x88] sm:$0xff]  }
 0x91e   : > { %4742 = vmatmul.mubr.bf16.vlgmr.msra.gmra.mxu0 %v4430_v44  ;;  %v4439_v24 = vpack.c.bf16 %v3523_v22, %v3522_v12  ;;  %v3070_v43 = vmul.f32 %v7443_v26, %v9018_v7  ;;  %v7251_v7 = vld [vmem:[#allocation17 + $0x80] sm:$0xff]  }
 0x91f   : > { %4749 = vmatprep.mubr.bf16.mxu0 %v4435_v3 }
 0x920   : > { %v4438_v34 = vpack.c.bf16 %v3071_v47, %v3070_v43  ;;  %6532 = vmatpush3.bf16.msra.mxu1 %v7245_v41 }
 0x921   : > { %6533 = vmatprep.subr.bf16.mxu1 %v7246_v27 }
 0x924   : > { %6534 = vmatpush3.bf16.msra.mxu1 %v7247_v45 }
 0x925   : > { %6535 = vmatprep.subr.bf16.mxu1 %v7248_v25 }
 0x926   : > { %4750 = vmatmul.mubr.bf16.gmra.mxu0 %v4434_v39 }
 0x927   : > { %4757 = vmatprep.mubr.bf16.mxu0 %v4439_v24 }
 0x928   : > { %6536 = vmatpush3.bf16.msra.mxu1 %v7249_v55 }
 0x929   : > { %6537 = vmatprep.subr.bf16.mxu1 %v7250_v57 }
 0x92c   : > { %6538 = vmatpush3.bf16.msra.mxu1 %v7251_v7 }
 0x92e   : > { %4758 = vmatmul.mubr.bf16.gmra.mxu0 %v4438_v34 }
 0x97a   : > { %v4212_v23 = vpop.xlane.xlu0 %4211 }
 0x97e   : > { %v3772_v20 = vpop.xlane.xlu0 %3771  ;;  %v4215_v0 = vpop.xlane.xlu1 %4214 }
 0x982   : > { %v4218_v28 = vpop.xlane.xlu0 %4217  ;;  %v3775_v1 = vpop.xlane.xlu1 %3774 }
 0x986   : > { %v3326_v51 = vpop.xlane.xlu0 %3325  ;;  %v4221_v35 = vpop.xlane.xlu1 %4220 }
 0x987   : > { %7444 = vrcp.f32 %v3326_v51 }
 0x98a   : > { %v4224_v42 = vpop.xlane.xlu0 %4223  ;;  %v3329_v15 = vpop.xlane.xlu1 %3328 }
 0x98b   : > { %7446 = vrcp.f32 %v3329_v15 }
 0x98e   : > { %v2874_v10 = vpop.xlane.xlu0 %2873  ;;  %v4227_v54 = vpop.xlane.xlu1 %4226 }
 0x98f   : > { %7448 = vrcp.f32 %v2874_v10 }
 0x992   : > { %v2877_v32 = vpop.xlane.xlu1 %2876 }
 0x993   : > { %7450 = vrcp.f32 %v2877_v32 }
 0x994   : > { %v7445_v6 = vpop.eup %7444  ;;  %7452 = vrcp.f32 %v4212_v23 }
 0x995   : > { %v3524_v59 = vmul.f32 %v7445_v6, %v9134_v33  ;;  %7454 = vrcp.f32 %v4215_v0 }
 0x996   : > { %7456 = vrcp.f32 %v4218_v28  ;;  %v4233_v2 = vpop.xlane.xlu1 %4232 }
 0x997   : > { %7458 = vrcp.f32 %v4221_v35 }
 0x998   : > { %v7447_v38 = vpop.eup %7446  ;;  %7460 = vrcp.f32 %v4227_v54 }
 0x999   : > { %v3525_v49 = vmul.f32 %v7447_v38, %v9136_v13  ;;  %7462 = vrcp.f32 %v4224_v42 }
 0x99a   : > { %7464 = vrcp.f32 %v3775_v1  ;;  %v3781_v24 = vpop.xlane.xlu1 %3780 }
 0x99b   : > { %v4443_v9 = vpack.c.bf16 %v3525_v49, %v3524_v59  ;;  %7466 = vrcp.f32 %v3772_v20 }
 0x99c   : > { %v7449_v60 = vpop.eup %7448  ;;  %7468 = vrcp.f32 %v4233_v2 }
 0x99d   : > { %4765 = vmatprep.mubr.bf16.mxu0 %v4443_v9  ;;  %v3072_v53 = vmul.f32 %v7449_v60, %v9022_v48  ;;  %v4230_v48 = vpop.xlane.xlu0 %4229 }
 0x99e   : > { %7470 = vrcp.f32 %v4230_v48 }
 0x99f   : > { %7472 = vrcp.f32 %v3781_v24 }
 0x9a0   : > { %v7451_v44 = vpop.eup %7450 }
 0x9a1   : > { %v3073_v3 = vmul.f32 %v7451_v44, %v9025_v50  ;;  %v7453_v14 = vpop.eup %7452  ;;  %v3778_v19 = vpop.xlane.xlu0 %3777 }
 0x9a2   : > { %v7455_v29 = vpop.eup %7454  ;;  %7474 = vrcp.f32 %v3778_v19  ;;  %v7493_v19 = vld [vmem:[%s8284_s5] sm:$0xff] }
 0x9a3   : > { %v4442_v62 = vpack.c.bf16 %v3073_v3, %v3072_v53  ;;  %v7457_v37 = vpop.eup %7456 }
 0x9a4   : > { %v7459_v31 = vpop.eup %7458 }
 0x9a5   : > { %4766 = vmatmul.mubr.bf16.gmra.mxu0 %v4442_v62  ;;  %v7461_v34 = vpop.eup %7460 }
 0x9a6   : > { %5307 = vmatprep.mubr.bf16.mxu0 %v9942_v21  ;;  %v7463_v27 = vpop.eup %7462 }
 0x9a7   : > { %v7465_v23 = vpop.eup %7464 }
 0x9a8   : > { %v3975_v28 = vmul.f32 %v7465_v23, %v9243_v17 }
 0x9b6   : > { %v4275_v33 = vpop.f32.mrf.mxu0 }
 0x9b7   : > { %v4422_v61 = vmul.f32 %v7453_v14, %v4275_v33 }
 0x9b8   : > { %v6815_v13 = vpop.f32.mrf.mxu0 }
 0x9ba   : > { %v4278_v46 = vpop.f32.mrf.mxu0  ;;  %v4319_v22 = vpop.f32.mrf.mxu1 }
 0x9bb   : > { %v4423_v50 = vmul.f32 %v7455_v29, %v4278_v46  ;;  %v4424_v47 = vmul.f32 %v7457_v37, %v4319_v22 }
 0x9bc   : > { %v6816_v8 = vpop.f32.mrf.mxu0  ;;  %v6821_v39 = vpop.f32.mrf.mxu1 }
 0x9bd   : > { %v4433_v12 = vpack.c.bf16 %v4423_v50, %v4422_v61  ;;  %v9944_v61 = vld [vmem:[#allocation34_spill] sm:$0xff]  ;;  %v9945_v50 = vld [vmem:[#allocation36_spill] sm:$0xff] }
 0x9be   : > { %v4363_v4 = vpop.f32.mrf.mxu0  ;;  %v4322_v26 = vpop.f32.mrf.mxu1  ;;  %v4842_v22 = vrot.slane %v9945_v50, %v9944_v61 }
 0x9bf   : > { %4806 = vmatprep.mubr.bf16.mxu1 %v4433_v12  ;;  %v4425_v5 = vmul.f32 %v7459_v31, %v4322_v26  ;;  %v4426_v55 = vmul.f32 %v7463_v27, %v4363_v4 }
 0x9c0   : > { %4807 = vmatmul.mubr.bf16.vlgmr.msra.gmra.mxu1 %v4432_v58  ;;  %v6827_v43 = vpop.f32.mrf.mxu0  ;;  %v6822_v16 = vpop.f32.mrf.mxu1 }
 0x9c1   : > { %v4437_v63 = vpack.c.bf16 %v4425_v5, %v4424_v47  ;;  %v7467_v58 = vpop.eup %7466 }
 0x9c2   : > { %v4366_v41 = vpop.f32.mrf.mxu0  ;;  %v4407_v25 = vpop.f32.mrf.mxu1  ;;  %v3974_v35 = vmul.f32 %v7467_v58, %v9239_v56 }
 0x9c3   : > { %v4427_v45 = vmul.f32 %v7461_v34, %v4366_v41  ;;  %4814 = vmatprep.mubr.bf16.mxu1 %v4437_v63  ;;  %v7469_v20 = vpop.eup %7468 }
 0x9c4   : > { %v6828_v57 = vpop.f32.mrf.mxu0  ;;  %v6833_v7 = vpop.f32.mrf.mxu1  ;;  %v4440_v15 = vpack.c.bf16 %v3975_v28, %v3974_v35 }
 0x9c5   : > { %v4441_v18 = vpack.c.bf16 %v4427_v45, %v4426_v55  ;;  %v7471_v51 = vpop.eup %7470  ;;  %v9946_v55 = vld [vmem:[#allocation38_spill] sm:$0xff] }
 0x9c6   : > { %v4410_v36 = vpop.f32.mrf.mxu1  ;;  %v4428_v42 = vmul.f32 %v7471_v51, %v4407_v25  ;;  %v7473_v10 = vpop.eup %7472  ;;  %v4846_v57 = vrot.slane %v9946_v55, %v9944_v61  ;;  %v7494_v7 = vld [vmem:[%s8284_s5 + $0x8] sm:$0xff]  ;;  %v1275_v51 = vcombine.high %v9945_v50, %v9945_v50 }
 0x9c7   : > { %v4429_v1 = vmul.f32 %v7469_v20, %v4410_v36  ;;  %v7475_v32 = vpop.eup %7474  ;;  %v3977_v30 = vmul.f32 %v7473_v10, %v9249_v11  ;;  %v9418_v11 = vld [vmem:[%s9715_s11] ss:$0 sm:$0xff] }
 0x9c8   : > { %4815 = vmatmul.mubr.bf16.gmra.mxu1 %v4436_v52  ;;  %v6834_v0 = vpop.f32.mrf.mxu1  ;;  %v3976_v52 = vmul.f32 %v7475_v32, %v9943_v40 }
 0x9c9   : > { %4822 = vmatprep.mubr.bf16.mxu1 %v4441_v18  ;;  %v4445_v54 = vpack.c.bf16 %v4429_v1, %v4428_v42  ;;  %v7495_v42 = vld [vmem:[%s8284_s5 + $0x10] sm:$0xff] }
 0x9ca   : > { %v4444_v6 = vpack.c.bf16 %v3977_v30, %v3976_v52 }
 0x9d0   : > { %4823 = vmatmul.mubr.bf16.gmra.mxu1 %v4440_v15 }
 0x9d1   : > { %4830 = vmatprep.mubr.bf16.mxu1 %v4445_v54 }
 0x9d8   : > { %4831 = vmatmul.mubr.bf16.gmra.mxu1 %v4444_v6 }
 0x9d9   : > { %5380 = vmatprep.mubr.bf16.mxu1 %v9942_v21 }
 0x9de   : > { %v6499_v17 = vpop.f32.mrf.mxu0 }
 0x9e0   : > { %v6500_v38 = vpop.f32.mrf.mxu0 }
 0x9e1   : > { %v6501_v3 = vadd.f32 %v6500_v38, %v6499_v17  ;;  %v4850_v38 = vrot.slane %v1275_v51, %v9944_v61 }
 0x9e2   : > { %v6502_v59 = vpop.f32.mrf.mxu0 }
 0x9e3   : > { %v4744_v14 = vadd.f32 %v6501_v3, %v9418_v11 }
 0x9e4   : > { %v6503_v49 = vpop.f32.mrf.mxu0 }
 0x9e5   : > { %v6504_v2 = vadd.f32 %v6503_v49, %v6502_v59  ;;  %v7496_v59 = vld [vmem:[%s8284_s5 + $0x18] sm:$0xff] }
 0x9e6   : > { %v6505_v56 = vpop.f32.mrf.mxu0 }
 0x9e7   : > { %v4747_v39 = vadd.f32 %v6504_v2, %v9418_v11 }
 0x9e8   : > { %v6506_v9 = vpop.f32.mrf.mxu0 }
 0x9e9   : > { %v6507_v37 = vadd.f32 %v6506_v9, %v6505_v56 }
 0x9ea   : > { %v6508_v60 = vpop.f32.mrf.mxu0 }
 0x9eb   : > { %v4752_v16 = vadd.f32 %v6507_v37, %v9418_v11  ;;  %v7498_v37 = vld [vmem:[%s8284_s5 + $0x28] sm:$0xff] }
 0x9ec   : > { %v6509_v44 = vpop.f32.mrf.mxu0 }
 0x9ed   : > { %v6510_v34 = vadd.f32 %v6509_v44, %v6508_v60 }
 0x9ee   : > { %v6511_v53 = vpop.f32.mrf.mxu0 }
 0x9ef   : > { %v4755_v36 = vadd.f32 %v6510_v34, %v9418_v11 }
 0x9f0   : > { %v6512_v33 = vpop.f32.mrf.mxu0 }
 0x9f1   : > { %v6513_v58 = vadd.f32 %v6512_v33, %v6511_v53 }
 0x9f2   : > { %v6514_v8 = vpop.f32.mrf.mxu0 }
 0x9f3   : > { %v4760_v54 = vadd.f32 %v6513_v58, %v9418_v11 }
 0x9f4   : > { %v6515_v5 = vpop.f32.mrf.mxu0 }
 0x9f5   : > { %v6516_v32 = vadd.f32 %v6515_v5, %v6514_v8 }
 0x9f7   : > { %v4763_v9 = vadd.f32 %v6516_v32, %v9418_v11 }
 0xa65   : > { %v6517_v27 = vpop.f32.mrf.mxu0 }
 0xa67   : > { %v6518_v28 = vpop.f32.mrf.mxu0 }
 0xa68   : > { %v6519_v60 = vadd.f32 %v6518_v28, %v6517_v27 }
 0xa69   : > { %v6520_v52 = vpop.f32.mrf.mxu0 }
 0xa6b   : > { %v6521_v3 = vpop.f32.mrf.mxu0 }
 0xa80   : > { %v6539_v62 = vpop.f32.mrf.mxu1 }
 0xa82   : > { %v6540_v13 = vpop.f32.mrf.mxu1 }
 0xa83   : > { %v6541_v29 = vadd.f32 %v6540_v13, %v6539_v62  ;;  %v1276_v13 = vcombine.high %v9946_v55, %v9946_v55 }
 0xa84   : > { %v6542_v46 = vpop.f32.mrf.mxu1 }
 0xa85   : > { %v4809_v48 = vadd.f32 %v6541_v29, %v4744_v14  ;;  %v7497_v14 = vld [vmem:[%s8284_s5 + $0x20] sm:$0xff] }
 0xa86   : > { %v6543_v12 = vpop.f32.mrf.mxu1 }
 0xa87   : > { %v4859_v24 = vmul.f32 %v4842_v22, %v4809_v48  ;;  %v6544_v4 = vadd.f32 %v6543_v12, %v6542_v46  ;;  %v4768_v46 = vadd.f32 %v6519_v60, %v9418_v11  ;;  %v6522_v48 = vadd.f32 %v6521_v3, %v6520_v52  ;;  %v7263_v60 = vld [vmem:[#allocation19 + $0xcc] ss:$16 sps:$4 sm:$0xff]   ;;  %v7258_v3 = vld [vmem:[#allocation19 + $0xc0] ss:$16 sps:$4 sm:$0xff]  }
 0xa88   : > { %v6545_v31 = vpop.f32.mrf.mxu1 }
 0xa89   : > { %v4812_v26 = vadd.f32 %v6544_v4, %v4747_v39  ;;  %v9425_v47 = vadd.f32 %v7493_v19, %v4859_v24  ;;  %v4854_v39 = vrot.slane %v1276_v13, %v9944_v61 }
 0xa8a   : > { %v6546_v43 = vpop.f32.mrf.mxu1 }
 0xa8b   : > { %v4860_v63 = vmul.f32 %v4842_v22, %v4812_v26  ;;  %v6547_v41 = vadd.f32 %v6546_v43, %v6545_v31  ;;  %4877 = vadd.xlane.f32.xlu0 %v9425_v47  ;;  %v4771_v31 = vadd.f32 %v6522_v48, %v9418_v11  ;;  %v7499_v43 = vld [vmem:[%s8284_s5 + $0x30] sm:$0xff] }
 0xa8c   : > { %v6548_v45 = vpop.f32.mrf.mxu1 }
 0xa8d   : > { %v4817_v25 = vadd.f32 %v6547_v41, %v4752_v16  ;;  %v9432_v23 = vadd.f32 %v7494_v7, %v4860_v63  ;;  %v7500_v63 = vld [vmem:[%s8284_s5 + $0x38] sm:$0xff] }
 0xa8e   : > { %v6549_v18 = vpop.f32.mrf.mxu1 }
 0xa8f   : > { %v4861_v20 = vmul.f32 %v4846_v57, %v4817_v25  ;;  %v6550_v0 = vadd.f32 %v6549_v18, %v6548_v45  ;;  %4879 = vadd.xlane.f32.xlu1 %v9432_v23 }
 0xa90   : > { %v6551_v1 = vpop.f32.mrf.mxu1 }
 0xa91   : > { %v4820_v35 = vadd.f32 %v6550_v0, %v4755_v36  ;;  %v9439_v15 = vadd.f32 %v7495_v42, %v4861_v20 }
 0xa92   : > { %v6552_v10 = vpop.f32.mrf.mxu1 }
 0xa93   : > { %v4862_v30 = vmul.f32 %v4846_v57, %v4820_v35  ;;  %v6553_v40 = vadd.f32 %v6552_v10, %v6551_v1  ;;  %4881 = vadd.xlane.f32.xlu0 %v9439_v15 }
 0xa94   : > { %v6554_v6 = vpop.f32.mrf.mxu1 }
 0xa95   : > { %v4825_v17 = vadd.f32 %v6553_v40, %v4760_v54  ;;  %v9445_v49 = vadd.f32 %v7496_v59, %v4862_v30  ;;  %v7254_v30 = vld [vmem:[#allocation19 + $0xe4] ss:$16 sps:$4 sm:$0xff]   ;;  %v7257_v40 = vld [vmem:[#allocation19 + $0xec] ss:$16 sps:$4 sm:$0xff]  }
 0xa96   : > { %v6555_v56 = vpop.f32.mrf.mxu1  ;;  %5275 = vmatprep.subr.bf16.mxu0 %v7254_v30  ;;  %5348 = vmatprep.subr.bf16.mxu1 %v7257_v40 }
 0xa97   : > { %v4863_v44 = vmul.f32 %v4850_v38, %v4825_v17  ;;  %v6556_v53 = vadd.f32 %v6555_v56, %v6554_v6  ;;  %4883 = vadd.xlane.f32.xlu1 %v9445_v49  ;;  %v7252_v17 = vld [vmem:[#allocation19 + $0xe0] ss:$16 sps:$4 sm:$0xff]  }
 0xa98   : > { %v6557_v62 = vpop.f32.mrf.mxu1  ;;  %5276 = vmatpush1.bf16.msra.mxu0 %v7252_v17 }
 0xa99   : > { %v4828_v33 = vadd.f32 %v6556_v53, %v4763_v9  ;;  %v9452_v2 = vadd.f32 %v7497_v14, %v4863_v44  ;;  %v7260_v9 = vld [vmem:[#allocation19 + $0xc4] ss:$16 sps:$4 sm:$0xff]  }
 0xa9a   : > { %v6558_v29 = vpop.f32.mrf.mxu1  ;;  %5277 = vmatprep.subr.bf16.mxu0 %v7260_v9  ;;  %v7266_v14 = vld [vmem:[#allocation19 + $0xa4] ss:$16 sps:$4 sm:$0xff]  }
 0xa9b   : > { %v4864_v50 = vmul.f32 %v4850_v38, %v4828_v33  ;;  %v6559_v22 = vadd.f32 %v6558_v29, %v6557_v62  ;;  %4885 = vadd.xlane.f32.xlu0 %v9452_v2  ;;  %v7255_v38 = vld [vmem:[#allocation19 + $0xe8] ss:$16 sps:$4 sm:$0xff]   ;;  %v7269_v29 = vld [vmem:[#allocation19 + $0xac] ss:$16 sps:$4 sm:$0xff]  }
 0xa9c   : > { %v6560_v8 = vpop.f32.mrf.mxu1  ;;  %5349 = vmatpush1.bf16.msra.mxu1 %v7255_v38  ;;  %v7261_v62 = vld [vmem:[#allocation19 + $0xc8] ss:$16 sps:$4 sm:$0xff]   ;;  %5278 = vmatpush1.bf16.msra.mxu0 %v7258_v3 }
 0xa9d   : > { %v4833_v12 = vadd.f32 %v6559_v22, %v4768_v46  ;;  %v9458_v24 = vadd.f32 %v7498_v37, %v4864_v50  ;;  %5350 = vmatprep.subr.bf16.mxu1 %v7263_v60  ;;  %v7264_v50 = vld [vmem:[#allocation19 + $0xa0] ss:$16 sps:$4 sm:$0xff]   ;;  %v7267_v22 = vld [vmem:[#allocation19 + $0xa8] ss:$16 sps:$4 sm:$0xff]   ;;  %5279 = vmatprep.subr.bf16.mxu0 %v7266_v14 }
 0xa9e   : > { %v6561_v4 = vpop.f32.mrf.mxu1 }
 0xa9f   : > { %v4865_v26 = vmul.f32 %v4854_v39, %v4833_v12  ;;  %v6562_v19 = vadd.f32 %v6561_v4, %v6560_v8  ;;  %4887 = vadd.xlane.f32.xlu1 %v9458_v24  ;;  %v7272_v12 = vld [vmem:[#allocation19 + $0x84] ss:$16 sps:$4 sm:$0xff]   ;;  %v7270_v4 = vld [vmem:[#allocation19 + $0x80] ss:$16 sps:$4 sm:$0xff]  }
 0xaa0   : > { %5351 = vmatpush1.bf16.msra.mxu1 %v7261_v62  ;;  %5280 = vmatpush1.bf16.msra.mxu0 %v7264_v50  ;;  %v9510_v62 = vld [vmem:[#allocation13] ss:$0 sm:$0xff] }
 0xaa1   : > { %v4836_v5 = vadd.f32 %v6562_v19, %v4771_v31  ;;  %v9463_v16 = vadd.f32 %v7499_v43, %v4865_v26  ;;  %5352 = vmatprep.subr.bf16.mxu1 %v7269_v29  ;;  %v7273_v31 = vld [vmem:[#allocation19 + $0x88] ss:$16 sps:$4 sm:$0xff]   ;;  %5281 = vmatprep.subr.bf16.mxu0 %v7272_v12  ;;  %v7278_v26 = vld [vmem:[#allocation19 + $0x64] ss:$16 sps:$4 sm:$0xff]   ;;  %v7281_v19 = vld [vmem:[#allocation19 + $0x6c] ss:$16 sps:$4 sm:$0xff]  }
 0xaa2   : > { %v7279_v43 = vld [vmem:[#allocation19 + $0x68] ss:$16 sps:$4 sm:$0xff]  }
 0xaa3   : > { %v4866_v34 = vmul.f32 %v4854_v39, %v4836_v5  ;;  %4889 = vadd.xlane.f32.xlu0 %v9463_v16  ;;  %v7275_v39 = vld [vmem:[#allocation19 + $0x8c] ss:$16 sps:$4 sm:$0xff]   ;;  %v7276_v5 = vld [vmem:[#allocation19 + $0x60] ss:$16 sps:$4 sm:$0xff]  }
 0xaa4   : > { %5353 = vmatpush1.bf16.msra.mxu1 %v7267_v22  ;;  %5282 = vmatpush1.bf16.msra.mxu0 %v7270_v4 }
 0xaa5   : > { %v9467_v41 = vadd.f32 %v7500_v63, %v4866_v34  ;;  %5354 = vmatprep.subr.bf16.mxu1 %v7275_v39  ;;  %5283 = vmatprep.subr.bf16.mxu0 %v7278_v26  ;;  %v7284_v34 = vld [vmem:[#allocation19 + $0x44] ss:$16 sps:$4 sm:$0xff]   ;;  %v7287_v63 = vld [vmem:[#allocation19 + $0x4c] ss:$16 sps:$4 sm:$0xff]  }
 0xaa7   : > { %4891 = vadd.xlane.f32.xlu1 %v9467_v41 }
 0xaa8   : > { %5355 = vmatpush1.bf16.msra.mxu1 %v7273_v31  ;;  %5284 = vmatpush1.bf16.msra.mxu0 %v7276_v5 }
 0xaa9   : > { %5356 = vmatprep.subr.bf16.mxu1 %v7281_v19  ;;  %5285 = vmatprep.subr.bf16.mxu0 %v7284_v34  ;;  %v9948_v19 = vld [vmem:[#allocation40_spill] sm:$0xff] }
 0xaaa   : > { %v5032_v5 = vrot.slane %v9948_v19, %v9944_v61 }
 0xaac   : > { %5357 = vmatpush1.bf16.msra.mxu1 %v7279_v43 }
 0xaad   : > { %5358 = vmatprep.subr.bf16.mxu1 %v7287_v63 }
 0xb14   : > { %v4878_v27 = vpop.xlane.xlu0 %4877 }
 0xb15   : > { %v4893_v45 = vmul.f32 0.0078125, %v4878_v27  ;;  %v7282_v27 = vld [vmem:[#allocation19 + $0x40] ss:$16 sps:$4 sm:$0xff]  }
 0xb16   : > { %5286 = vmatpush1.bf16.msra.mxu0 %v7282_v27 }
 0xb17   : > { %v9471_v11 = vsub.f32 %v9425_v47, %v4893_v45  ;;  %v7285_v45 = vld [vmem:[#allocation19 + $0x48] ss:$16 sps:$4 sm:$0xff]  }
 0xb18   : > { %v4880_v25 = vpop.xlane.xlu1 %4879  ;;  %5359 = vmatpush1.bf16.msra.mxu1 %v7285_v45  ;;  %v9949_v45 = vld [vmem:[#allocation39_spill] sm:$0xff] }
 0xb19   : > { %v4894_v55 = vmul.f32 0.0078125, %v4880_v25  ;;  %v4909_v57 = vmul.f32 %v9471_v11, %v9471_v11  ;;  %v7290_v25 = vld [vmem:[#allocation19 + $0x24] ss:$16 sps:$4 sm:$0xff]  }
 0xb1a   : > { %5287 = vmatprep.subr.bf16.mxu0 %v7290_v25  ;;  %v4994_v25 = vadd.f32 1.0, %v9949_v45 }
 0xb1b   : > { %v9476_v7 = vsub.f32 %v9432_v23, %v4894_v55  ;;  %4917 = vadd.xlane.f32.xlu0 %v4909_v57  ;;  %v7293_v55 = vld [vmem:[#allocation19 + $0x2c] ss:$16 sps:$4 sm:$0xff]   ;;  %v7288_v57 = vld [vmem:[#allocation19 + $0x20] ss:$16 sps:$4 sm:$0xff]  }
 0xb1c   : > { %v4882_v18 = vpop.xlane.xlu0 %4881  ;;  %5360 = vmatprep.subr.bf16.mxu1 %v7293_v55  ;;  %5288 = vmatpush1.bf16.msra.mxu0 %v7288_v57 }
 0xb1d   : > { %v4895_v36 = vmul.f32 0.0078125, %v4882_v18  ;;  %v4910_v58 = vmul.f32 %v9476_v7, %v9476_v7  ;;  %v7291_v18 = vld [vmem:[#allocation19 + $0x28] ss:$16 sps:$4 sm:$0xff]  }
 0xb1e   : > { %5361 = vmatpush1.bf16.msra.mxu1 %v7291_v18 }
 0xb1f   : > { %v9481_v20 = vsub.f32 %v9439_v15, %v4895_v36  ;;  %4919 = vadd.xlane.f32.xlu1 %v4910_v58  ;;  %v7296_v36 = vld [vmem:[#allocation19 + $0x4] ss:$16 sps:$4 sm:$0xff]   ;;  %v7299_v58 = vld [vmem:[#allocation19 + $0xc] ss:$16 sps:$4 sm:$0xff]  }
 0xb20   : > { %v4884_v0 = vpop.xlane.xlu1 %4883  ;;  %5289 = vmatprep.subr.bf16.mxu0 %v7296_v36  ;;  %5362 = vmatprep.subr.bf16.mxu1 %v7299_v58 }
 0xb21   : > { %v4896_v28 = vmul.f32 0.0078125, %v4884_v0  ;;  %v4911_v1 = vmul.f32 %v9481_v20, %v9481_v20  ;;  %v7294_v0 = vld [vmem:[#allocation19] ss:$16 sps:$4 sm:$0xff]  }
 0xb22   : > { %5290 = vmatpush1.bf16.msra.mxu0 %v7294_v0 }
 0xb23   : > { %v9486_v51 = vsub.f32 %v9445_v49, %v4896_v28  ;;  %4921 = vadd.xlane.f32.xlu0 %v4911_v1  ;;  %v7297_v28 = vld [vmem:[#allocation19 + $0x8] ss:$16 sps:$4 sm:$0xff]  }
 0xb24   : > { %v4886_v35 = vpop.xlane.xlu0 %4885  ;;  %5363 = vmatpush1.bf16.msra.mxu1 %v7297_v28  ;;  %v7300_v1 = vld [vmem:[#allocation20 + $0x78] sm:$0xff]  }
 0xb25   : > { %v4897_v42 = vmul.f32 0.0078125, %v4886_v35  ;;  %v4912_v10 = vmul.f32 %v9486_v51, %v9486_v51  ;;  %v7301_v35 = vld [vmem:[#allocation20 + $0xf8] sm:$0xff]   ;;  %6563 = vmatprep.subr.bf16.mxu0 %v7300_v1 }
 0xb26   : > { %6603 = vmatprep.subr.bf16.mxu1 %v7301_v35 }
 0xb27   : > { %v9491_v54 = vsub.f32 %v9452_v2, %v4897_v42  ;;  %4923 = vadd.xlane.f32.xlu1 %v4912_v10 }
 0xb28   : > { %v4888_v32 = vpop.xlane.xlu1 %4887 }
 0xb29   : > { %v4898_v52 = vmul.f32 0.0078125, %v4888_v32  ;;  %v4913_v6 = vmul.f32 %v9491_v54, %v9491_v54 }
 0xb2b   : > { %v9496_v59 = vsub.f32 %v9458_v24, %v4898_v52  ;;  %4925 = vadd.xlane.f32.xlu0 %v4913_v6 }
 0xb2c   : > { %v4890_v56 = vpop.xlane.xlu0 %4889 }
 0xb2d   : > { %v4899_v44 = vmul.f32 0.0078125, %v4890_v56  ;;  %v4914_v53 = vmul.f32 %v9496_v59, %v9496_v59 }
 0xb2f   : > { %v9501_v33 = vsub.f32 %v9463_v16, %v4899_v44  ;;  %4927 = vadd.xlane.f32.xlu1 %v4914_v53 }
 0xb30   : > { %v4892_v13 = vpop.xlane.xlu1 %4891 }
 0xb31   : > { %v4900_v46 = vmul.f32 0.0078125, %v4892_v13  ;;  %v4915_v48 = vmul.f32 %v9501_v33, %v9501_v33  ;;  %v9947_v13 = vld [vmem:[#allocation37_spill] sm:$0xff] }
 0xb32   : > { %v4993_v14 = vadd.f32 1.0, %v9947_v13  ;;  %v1300_v35 = vcombine.high %v9947_v13, %v9947_v13 }
 0xb33   : > { %v9506_v8 = vsub.f32 %v9467_v41, %v4900_v46  ;;  %4929 = vadd.xlane.f32.xlu0 %v4915_v48  ;;  %v9514_v48 = vld [vmem:[#allocation14] ss:$0 sm:$0xff] }
 0xb35   : > { %v4916_v37 = vmul.f32 %v9506_v8, %v9506_v8 }
 0xb37   : > { %4931 = vadd.xlane.f32.xlu1 %v4916_v37  ;;  %v5004_v37 = vrot.slane %v4993_v14, %v9944_v61 }
 0xba4   : > { %v4918_v42 = vpop.xlane.xlu0 %4917 }
 0xba5   : > { %v4933_v10 = vmul.f32 0.0078125, %v4918_v42  ;;  %v5008_v42 = vrot.slane %v4994_v25, %v9944_v61 }
 0xba7   : > { %v4941_v32 = vadd.f32 1e-05, %v4933_v10 }
 0xba8   : > { %v4920_v30 = vpop.xlane.xlu1 %4919 }
 0xba9   : > { %7476 = vrsqrt.f32 %v4941_v32  ;;  %v4934_v40 = vmul.f32 0.0078125, %v4920_v30 }
 0xbab   : > { %v4942_v52 = vadd.f32 1e-05, %v4934_v40  ;;  %v9950_v40 = vld [vmem:[#allocation41_spill] sm:$0xff] }
 0xbac   : > { %v4922_v6 = vpop.xlane.xlu0 %4921 }
 0xbad   : > { %7478 = vrsqrt.f32 %v4942_v52  ;;  %v4935_v17 = vmul.f32 0.0078125, %v4922_v6  ;;  %v5036_v52 = vrot.slane %v9950_v40, %v9944_v61 }
 0xbaf   : > { %v4943_v38 = vadd.f32 1e-05, %v4935_v17 }
 0xbb0   : > { %v4924_v56 = vpop.xlane.xlu1 %4923 }
 0xbb1   : > { %7480 = vrsqrt.f32 %v4943_v38  ;;  %v4936_v9 = vmul.f32 0.0078125, %v4924_v56  ;;  %v7302_v56 = vld [vmem:[#allocation20 + $0x38] sm:$0xff]  }
 0xbb3   : > { %v4944_v60 = vadd.f32 1e-05, %v4936_v9  ;;  %v7303_v9 = vld [vmem:[#allocation20 + $0xb8] sm:$0xff]  }
 0xbb4   : > { %v4926_v44 = vpop.xlane.xlu0 %4925 }
 0xbb5   : > { %7482 = vrsqrt.f32 %v4944_v60  ;;  %v4937_v53 = vmul.f32 0.0078125, %v4926_v44  ;;  %v7304_v44 = vld [vmem:[#allocation20 + $0x70] sm:$0xff]  }
 0xbb6   : > { %v7477_v3 = vpop.eup %7476 }
 0xbb7   : > { %v4957_v29 = vmul.f32 %v7477_v3, %v9471_v11  ;;  %v4945_v46 = vadd.f32 1e-05, %v4937_v53  ;;  %v7305_v53 = vld [vmem:[#allocation20 + $0xf0] sm:$0xff]   ;;  %v4995_v3 = vadd.f32 1.0, %v1300_v35  ;;  %v7315_v35 = vld [vmem:[#allocation20 + $0xa0] sm:$0xff]  }
 0xbb8   : > { %v4928_v50 = vpop.xlane.xlu1 %4927 }
 0xbb9   : > { %v4971_v22 = vmul.f32 %v9510_v62, %v4957_v29  ;;  %7484 = vrsqrt.f32 %v4945_v46  ;;  %v4938_v12 = vmul.f32 0.0078125, %v4928_v50  ;;  %v1329_v29 = vcombine.high %v9948_v19, %v9948_v19 }
 0xbba   : > { %v7479_v39 = vpop.eup %7478 }
 0xbbb   : > { %v4985_v4 = vadd.f32 %v9514_v48, %v4971_v22  ;;  %v4958_v31 = vmul.f32 %v7479_v39, %v9476_v7  ;;  %v4946_v26 = vadd.f32 1e-05, %v4938_v12  ;;  %v7306_v22 = vld [vmem:[#allocation20 + $0x30] sm:$0xff]   ;;  %v1301_v39 = vcombine.high %v9949_v45, %v9949_v45  ;;  %v7311_v45 = vld [vmem:[#allocation20 + $0xa8] sm:$0xff]  }
 0xbbc   : > { %v4930_v11 = vpop.xlane.xlu0 %4929  ;;  %v7307_v12 = vld [vmem:[#allocation20 + $0xb0] sm:$0xff]  }
 0xbbd   : > { %v4972_v43 = vmul.f32 %v9510_v62, %v4958_v31  ;;  %7486 = vrsqrt.f32 %v4946_v26  ;;  %v4939_v34 = vmul.f32 0.0078125, %v4930_v11  ;;  %v5021_v63 = vmul.f32 %v5004_v37, %v4985_v4  ;;  %v7309_v4 = vld [vmem:[#allocation20 + $0xe8] sm:$0xff]  }
 0xbbe   : > { %v7481_v27 = vpop.eup %7480  ;;  %v5012_v31 = vrot.slane %v4995_v3, %v9944_v61  ;;  %v5040_v11 = vrot.slane %v1329_v29, %v9944_v61  ;;  %v7320_v3 = vld [vmem:[#allocation20 + $0x50] sm:$0xff]   ;;  %v7325_v29 = vld [vmem:[#allocation20 + $0xc8] sm:$0xff]  }
 0xbbf   : > { %v4986_v55 = vadd.f32 %v9514_v48, %v4972_v43  ;;  %v4959_v57 = vmul.f32 %v7481_v27, %v9481_v20  ;;  %v4947_v18 = vadd.f32 1e-05, %v4939_v34  ;;  %v5049_v36 = vadd.f32 %v5032_v5, %v5021_v63  ;;  %v7310_v27 = vld [vmem:[#allocation20 + $0x28] sm:$0xff]  }
 0xbc0   : > { %v4932_v7 = vpop.xlane.xlu1 %4931 }
 0xbc1   : > { %7488 = vrsqrt.f32 %v4947_v18  ;;  %v4940_v58 = vmul.f32 0.0078125, %v4932_v7  ;;  %v5022_v0 = vmul.f32 %v5004_v37, %v4986_v55  ;;  %v4973_v28 = vmul.f32 %v9510_v62, %v4959_v57  ;;  %v7308_v37 = vld [vmem:[#allocation20 + $0x68] sm:$0xff]   ;;  %v7312_v55 = vld [vmem:[#allocation20 + $0x60] sm:$0xff]  }
 0xbc2   : > { %v7483_v1 = vpop.eup %7482  ;;  %v7313_v57 = vld [vmem:[#allocation20 + $0xe0] sm:$0xff]   ;;  %v4996_v18 = vadd.f32 1.0, %v1301_v39  ;;  %v5093_v39 = vld [vmem:[%s9951_s16] sm:$0xf] }
 0xbc3   : > { %v4960_v10 = vmul.f32 %v7483_v1, %v9486_v51  ;;  %v4948_v32 = vadd.f32 1e-05, %v4940_v58  ;;  %v5050_v30 = vadd.f32 %v5032_v5, %v5022_v0  ;;  %v4987_v20 = vadd.f32 %v9514_v48, %v4973_v28  ;;  %v7314_v1 = vld [vmem:[#allocation20 + $0x20] sm:$0xff]  }
 0xbc4   : > { %v1330_v58 = vcombine.high %v9950_v40, %v9950_v40 }
 0xbc5   : > { %7490 = vrsqrt.f32 %v4948_v32  ;;  %v5057_v6 = vpack.c.bf16 %v5050_v30, %v5049_v36  ;;  %v4974_v17 = vmul.f32 %v9510_v62, %v4960_v10  ;;  %v5023_v38 = vmul.f32 %v5008_v42, %v4987_v20  ;;  %v7317_v10 = vld [vmem:[#allocation20 + $0xd8] sm:$0xff]  }
 0xbc6   : > { %v7485_v60 = vpop.eup %7484  ;;  %v5016_v32 = vrot.slane %v4996_v18, %v9944_v61 }
 0xbc7   : > { %v4961_v51 = vmul.f32 %v7485_v60, %v9491_v54  ;;  %5308 = vmatmul.mubr.bf16.vlgmr.msra.gmra.mxu0 %v5057_v6  ;;  %5381 = vmatmul.mubr.bf16.vlgmr.msra.gmra.mxu1 %v5057_v6  ;;  %v4988_v13 = vadd.f32 %v9514_v48, %v4974_v17  ;;  %v5051_v14 = vadd.f32 %v5036_v52, %v5023_v38 }
 0xbc8   : > { %5317 = vmatprep.mubr.bf16.mxu0 %v9942_v21  ;;  %5390 = vmatprep.mubr.bf16.mxu1 %v9942_v21 }
 0xbc9   : > { %v5024_v46 = vmul.f32 %v5008_v42, %v4988_v13  ;;  %v4975_v50 = vmul.f32 %v9510_v62, %v4961_v51  ;;  %6564 = vmatpush3.bf16.msra.mxu0 %v7302_v56  ;;  %6604 = vmatpush3.bf16.msra.mxu1 %v7303_v9  ;;  %v7316_v42 = vld [vmem:[#allocation20 + $0x58] sm:$0xff]   ;;  %v7321_v51 = vld [vmem:[#allocation20 + $0xd0] sm:$0xff]  }
 0xbca   : > { %v7487_v54 = vpop.eup %7486  ;;  %6565 = vmatprep.subr.bf16.mxu0 %v7304_v44  ;;  %6605 = vmatprep.subr.bf16.mxu1 %v7305_v53  ;;  %v7318_v56 = vld [vmem:[#allocation20 + $0x18] sm:$0xff]   ;;  %v7322_v13 = vld [vmem:[#allocation20 + $0x10] sm:$0xff]  }
 0xbcb   : > { %v4962_v26 = vmul.f32 %v7487_v54, %v9496_v59  ;;  %v5052_v19 = vadd.f32 %v5036_v52, %v5024_v46  ;;  %v4989_v5 = vadd.f32 %v9514_v48, %v4975_v50  ;;  %v5044_v52 = vrot.slane %v1330_v58, %v9944_v61  ;;  %v7319_v9 = vld [vmem:[#allocation20 + $0x98] sm:$0xff]   ;;  %v7326_v46 = vld [vmem:[#allocation20 + $0x8] sm:$0xff]   ;;  %v7331_v54 = vld [vmem:[#allocation20 + $0x80] sm:$0xff]  }
 0xbcc   : > { %v7327_v50 = vld [vmem:[#allocation20 + $0x88] sm:$0xff]  }
 0xbcd   : > { %v5058_v43 = vpack.c.bf16 %v5052_v19, %v5051_v14  ;;  %v4976_v34 = vmul.f32 %v9510_v62, %v4962_v26  ;;  %v5025_v63 = vmul.f32 %v5012_v31, %v4989_v5  ;;  %6566 = vmatpush3.bf16.msra.mxu0 %v7306_v22  ;;  %6606 = vmatpush3.bf16.msra.mxu1 %v7307_v12  ;;  %v7323_v14 = vld [vmem:[#allocation20 + $0x90] sm:$0xff]   ;;  %v7329_v22 = vld [vmem:[#allocation20 + $0xc0] sm:$0xff]   ;;  %v9953_v19 = vld [vmem:[#allocation33_spill] sm:$0xff] }
 0xbce   : > { %v7489_v25 = vpop.eup %7488  ;;  %6567 = vmatprep.subr.bf16.mxu0 %v7308_v37  ;;  %6607 = vmatprep.subr.bf16.mxu1 %v7309_v4  ;;  %v7330_v12 = vld [vmem:[#allocation20] sm:$0xff]   ;;  %v9571_v5 = vrot.slane %v5093_v39, %v9953_v19 }
 0xbcf   : > { %v4963_v59 = vmul.f32 %v7489_v25, %v9501_v33  ;;  %5318 = vmatmul.mubr.bf16.gmra.mxu0 %v5058_v43  ;;  %5391 = vmatmul.mubr.bf16.gmra.mxu1 %v5058_v43  ;;  %v4990_v36 = vadd.f32 %v9514_v48, %v4976_v34  ;;  %v5053_v7 = vadd.f32 %v5040_v11, %v5025_v63  ;;  %v9954_v43 = vld [vmem:[#allocation32_spill] sm:$0xff] }
 0xbd0   : > { %5327 = vmatprep.mubr.bf16.mxu0 %v9942_v21  ;;  %5400 = vmatprep.mubr.bf16.mxu1 %v9942_v21  ;;  %v9577_v34 = vrot.slane %v5093_v39, %v9954_v43 }
 0xbd1   : > { %v5026_v0 = vmul.f32 %v5012_v31, %v4990_v36  ;;  %v4977_v28 = vmul.f32 %v9510_v62, %v4963_v59  ;;  %6568 = vmatpush3.bf16.msra.mxu0 %v7310_v27  ;;  %6608 = vmatpush3.bf16.msra.mxu1 %v7311_v45  ;;  %v9952_v31 = vld [vmem:[#allocation35_spill] sm:$0xff] }
 0xbd2   : > { %v7491_v33 = vpop.eup %7490  ;;  %6569 = vmatprep.subr.bf16.mxu0 %v7312_v55  ;;  %6609 = vmatprep.subr.bf16.mxu1 %v7313_v57  ;;  %v9568_v26 = vrot.slane %v5093_v39, %v9952_v31 }
 0xbd3   : > { %v4964_v30 = vmul.f32 %v7491_v33, %v9506_v8  ;;  %v5054_v20 = vadd.f32 %v5040_v11, %v5026_v0  ;;  %v4991_v40 = vadd.f32 %v9514_v48, %v4977_v28  ;;  %v9574_v11 = vrot.slane %v5093_v39, %v9944_v61 }
 0xbd5   : > { %v5059_v6 = vpack.c.bf16 %v5054_v20, %v5053_v7  ;;  %v4978_v17 = vmul.f32 %v9510_v62, %v4964_v30  ;;  %v5027_v38 = vmul.f32 %v5016_v32, %v4991_v40  ;;  %6570 = vmatpush3.bf16.msra.mxu0 %v7314_v1  ;;  %6610 = vmatpush3.bf16.msra.mxu1 %v7315_v35 }
 0xbd6   : > { %6571 = vmatprep.subr.bf16.mxu0 %v7316_v42  ;;  %6611 = vmatprep.subr.bf16.mxu1 %v7317_v10 }
 0xbd7   : > { %5328 = vmatmul.mubr.bf16.gmra.mxu0 %v5059_v6  ;;  %5401 = vmatmul.mubr.bf16.gmra.mxu1 %v5059_v6  ;;  %v4992_v60 = vadd.f32 %v9514_v48, %v4978_v17  ;;  %v5055_v8 = vadd.f32 %v5044_v52, %v5027_v38  ;;  %v7324_v48 = vld [vmem:[#allocation20 + $0x48] sm:$0xff]  }
 0xbd8   : > { %5337 = vmatprep.mubr.bf16.mxu0 %v9942_v21  ;;  %5410 = vmatprep.mubr.bf16.mxu1 %v9942_v21  ;;  %v7328_v21 = vld [vmem:[#allocation20 + $0x40] sm:$0xff]  }
 0xbd9   : > { %v5028_v44 = vmul.f32 %v5016_v32, %v4992_v60  ;;  %6572 = vmatpush3.bf16.msra.mxu0 %v7318_v56  ;;  %6612 = vmatpush3.bf16.msra.mxu1 %v7319_v9 }
 0xbda   : > { %6573 = vmatprep.subr.bf16.mxu0 %v7320_v3  ;;  %6613 = vmatprep.subr.bf16.mxu1 %v7321_v51 }
 0xbdb   : > { %v5056_v62 = vadd.f32 %v5044_v52, %v5028_v44 }
 0xbdd   : > { %v5060_v53 = vpack.c.bf16 %v5056_v62, %v5055_v8  ;;  %6574 = vmatpush3.bf16.msra.mxu0 %v7322_v13  ;;  %6614 = vmatpush3.bf16.msra.mxu1 %v7323_v14 }
 0xbde   : > { %6575 = vmatprep.subr.bf16.mxu0 %v7324_v48  ;;  %6615 = vmatprep.subr.bf16.mxu1 %v7325_v29 }
 0xbdf   : > { %5338 = vmatmul.mubr.bf16.gmra.mxu0 %v5060_v53  ;;  %5411 = vmatmul.mubr.bf16.gmra.mxu1 %v5060_v53 }
 0xbe1   : > { %6576 = vmatpush3.bf16.msra.mxu0 %v7326_v46  ;;  %6616 = vmatpush3.bf16.msra.mxu1 %v7327_v50 }
 0xbe2   : > { %6577 = vmatprep.subr.bf16.mxu0 %v7328_v21  ;;  %6617 = vmatprep.subr.bf16.mxu1 %v7329_v22 }
 0xbe5   : > { %6578 = vmatpush3.bf16.msra.mxu0 %v7330_v12  ;;  %6618 = vmatpush3.bf16.msra.mxu1 %v7331_v54 }
 0xc87   : > { %v5309_v37 = vpop.f32.mrf.mxu0  ;;  %v5382_v4 = vpop.f32.mrf.mxu1 }
 0xc88   : > { %v5310_v36 = vadd.f32 %v5309_v37, %v9574_v11  ;;  %v5383_v7 = vadd.f32 %v5382_v4, %v9577_v34 }
 0xc89   : > { %v5311_v63 = vpop.f32.mrf.mxu0  ;;  %v5384_v27 = vpop.f32.mrf.mxu1 }
 0xc8a   : > { %v5312_v55 = vadd.f32 %v5311_v63, %v9568_v26  ;;  %v5385_v57 = vadd.f32 %v5384_v27, %v9571_v5  ;;  %v5421_v52 = vmax.f32 %v5310_v36, 0.0  ;;  %v5423_v6 = vmax.f32 %v5383_v7, 0.0 }
 0xc8b   : > { %v5313_v45 = vpop.f32.mrf.mxu0  ;;  %v5386_v25 = vpop.f32.mrf.mxu1 }
 0xc8c   : > { %v5314_v18 = vadd.f32 %v5313_v45, %v9574_v11  ;;  %v5387_v59 = vadd.f32 %v5386_v25, %v9577_v34  ;;  %v5422_v32 = vmax.f32 %v5312_v55, 0.0  ;;  %v5424_v30 = vmax.f32 %v5385_v57, 0.0 }
 0xc8d   : > { %v5315_v58 = vpop.f32.mrf.mxu0  ;;  %v5388_v0 = vpop.f32.mrf.mxu1 }
 0xc8e   : > { %v5316_v28 = vadd.f32 %v5315_v58, %v9568_v26  ;;  %v5389_v1 = vadd.f32 %v5388_v0, %v9571_v5  ;;  %v5425_v35 = vmax.f32 %v5314_v18, 0.0  ;;  %v5427_v33 = vmax.f32 %v5387_v59, 0.0 }
 0xc8f   : > { %v5319_v42 = vpop.f32.mrf.mxu0  ;;  %v5392_v10 = vpop.f32.mrf.mxu1 }
 0xc90   : > { %v5426_v20 = vmax.f32 %v5316_v28, 0.0  ;;  %v5428_v40 = vmax.f32 %v5389_v1, 0.0  ;;  %v5453_v60 = vpack.c.bf16 %v5425_v35, %v5421_v52  ;;  %v5455_v8 = vpack.c.bf16 %v5427_v33, %v5423_v6 }
 0xc91   : > { %v5321_v17 = vpop.f32.mrf.mxu0  ;;  %v5394_v38 = vpop.f32.mrf.mxu1  ;;  %v5320_v14 = vadd.f32 %v5319_v42, %v9574_v11  ;;  %v5393_v48 = vadd.f32 %v5392_v10, %v9577_v34 }
 0xc92   : > { %v5454_v56 = vpack.c.bf16 %v5426_v20, %v5422_v32  ;;  %v5456_v9 = vpack.c.bf16 %v5428_v40, %v5424_v30  ;;  %v5322_v44 = vadd.f32 %v5321_v17, %v9568_v26  ;;  %v5395_v3 = vadd.f32 %v5394_v38, %v9571_v5 }
 0xc93   : > { %v5323_v62 = vpop.f32.mrf.mxu0  ;;  %v5396_v53 = vpop.f32.mrf.mxu1  ;;  %v5429_v43 = vmax.f32 %v5320_v14, 0.0  ;;  %v5431_v63 = vmax.f32 %v5393_v48, 0.0 }
 0xc94   : > { %v5324_v51 = vadd.f32 %v5323_v62, %v9574_v11  ;;  %v5397_v13 = vadd.f32 %v5396_v53, %v9577_v34  ;;  %5764 = vmatprep.mubr.bf16.mxu0 %v5454_v56  ;;  %5829 = vmatprep.mubr.bf16.mxu1 %v5456_v9  ;;  %v5430_v37 = vmax.f32 %v5322_v44, 0.0  ;;  %v5432_v4 = vmax.f32 %v5395_v3, 0.0 }
 0xc95   : > { %v5325_v29 = vpop.f32.mrf.mxu0  ;;  %v5398_v46 = vpop.f32.mrf.mxu1  ;;  %5765 = vmatmul.mubr.bf16.vlgmr.msra.gmra.mxu0 %v5453_v60  ;;  %5830 = vmatmul.mubr.bf16.vlgmr.msra.gmra.mxu1 %v5455_v8 }
 0xc96   : > { %v5326_v50 = vadd.f32 %v5325_v29, %v9568_v26  ;;  %v5399_v21 = vadd.f32 %v5398_v46, %v9571_v5  ;;  %v5433_v22 = vmax.f32 %v5324_v51, 0.0  ;;  %v5435_v12 = vmax.f32 %v5397_v13, 0.0 }
 0xc97   : > { %v5329_v54 = vpop.f32.mrf.mxu0  ;;  %v5402_v39 = vpop.f32.mrf.mxu1 }
 0xc98   : > { %v5434_v31 = vmax.f32 %v5326_v50, 0.0  ;;  %v5436_v19 = vmax.f32 %v5399_v21, 0.0  ;;  %v5457_v57 = vpack.c.bf16 %v5433_v22, %v5429_v43  ;;  %v5459_v18 = vpack.c.bf16 %v5435_v12, %v5431_v63 }
 0xc99   : > { %v5331_v27 = vpop.f32.mrf.mxu0  ;;  %v5404_v45 = vpop.f32.mrf.mxu1  ;;  %v5330_v1 = vadd.f32 %v5329_v54, %v9574_v11  ;;  %v5403_v35 = vadd.f32 %v5402_v39, %v9577_v34 }
 0xc9a   : > { %v5458_v25 = vpack.c.bf16 %v5434_v31, %v5430_v37  ;;  %v5460_v55 = vpack.c.bf16 %v5436_v19, %v5432_v4  ;;  %v5332_v59 = vadd.f32 %v5331_v27, %v9568_v26  ;;  %v5405_v58 = vadd.f32 %v5404_v45, %v9571_v5 }
 0xc9b   : > { %v5333_v36 = vpop.f32.mrf.mxu0  ;;  %v5406_v7 = vpop.f32.mrf.mxu1  ;;  %v5437_v9 = vmax.f32 %v5330_v1, 0.0  ;;  %v5439_v60 = vmax.f32 %v5403_v35, 0.0 }
 0xc9c   : > { %v5334_v0 = vadd.f32 %v5333_v36, %v9574_v11  ;;  %v5407_v28 = vadd.f32 %v5406_v7, %v9577_v34  ;;  %5772 = vmatprep.mubr.bf16.mxu0 %v5458_v25  ;;  %5837 = vmatprep.mubr.bf16.mxu1 %v5460_v55  ;;  %v5438_v6 = vmax.f32 %v5332_v59, 0.0  ;;  %v5440_v17 = vmax.f32 %v5405_v58, 0.0 }
 0xc9d   : > { %v5335_v33 = vpop.f32.mrf.mxu0  ;;  %v5408_v42 = vpop.f32.mrf.mxu1  ;;  %5773 = vmatmul.mubr.bf16.gmra.mxu0 %v5457_v57  ;;  %5838 = vmatmul.mubr.bf16.gmra.mxu1 %v5459_v18 }
 0xc9e   : > { %v5336_v10 = vadd.f32 %v5335_v33, %v9568_v26  ;;  %v5409_v32 = vadd.f32 %v5408_v42, %v9571_v5  ;;  %v5441_v30 = vmax.f32 %v5334_v0, 0.0  ;;  %v5443_v20 = vmax.f32 %v5407_v28, 0.0 }
 0xc9f   : > { %v5339_v40 = vpop.f32.mrf.mxu0  ;;  %v5412_v52 = vpop.f32.mrf.mxu1 }
 0xca0   : > { %v5442_v38 = vmax.f32 %v5336_v10, 0.0  ;;  %v5444_v56 = vmax.f32 %v5409_v32, 0.0  ;;  %v5461_v3 = vpack.c.bf16 %v5441_v30, %v5437_v9  ;;  %v5463_v51 = vpack.c.bf16 %v5443_v20, %v5439_v60  ;;  %v9956_v10 = vld [vmem:[#allocation42_spill] sm:$0xff] }
 0xca1   : > { %v5341_v8 = vpop.f32.mrf.mxu0  ;;  %v5414_v44 = vpop.f32.mrf.mxu1  ;;  %v5340_v21 = vadd.f32 %v5339_v40, %v9574_v11  ;;  %v5413_v22 = vadd.f32 %v5412_v52, %v9577_v34  ;;  %v5865_v32 = vrot.slane %v9956_v10, %v9944_v61 }
 0xca2   : > { %v5462_v62 = vpack.c.bf16 %v5442_v38, %v5438_v6  ;;  %v5464_v53 = vpack.c.bf16 %v5444_v56, %v5440_v17  ;;  %v5342_v13 = vadd.f32 %v5341_v8, %v9568_v26  ;;  %v5415_v29 = vadd.f32 %v5414_v44, %v9571_v5 }
 0xca3   : > { %v5343_v14 = vpop.f32.mrf.mxu0  ;;  %v5416_v48 = vpop.f32.mrf.mxu1  ;;  %v5445_v45 = vmax.f32 %v5340_v21, 0.0  ;;  %v5447_v25 = vmax.f32 %v5413_v22, 0.0 }
 0xca4   : > { %v5344_v46 = vadd.f32 %v5343_v14, %v9574_v11  ;;  %v5417_v50 = vadd.f32 %v5416_v48, %v9577_v34  ;;  %5780 = vmatprep.mubr.bf16.mxu0 %v5462_v62  ;;  %5845 = vmatprep.mubr.bf16.mxu1 %v5464_v53  ;;  %v5446_v19 = vmax.f32 %v5342_v13, 0.0  ;;  %v5448_v43 = vmax.f32 %v5415_v29, 0.0 }
 0xca5   : > { %v5345_v12 = vpop.f32.mrf.mxu0  ;;  %v5418_v54 = vpop.f32.mrf.mxu1  ;;  %5781 = vmatmul.mubr.bf16.gmra.mxu0 %v5461_v3  ;;  %5846 = vmatmul.mubr.bf16.gmra.mxu1 %v5463_v51 }
 0xca6   : > { %v5346_v39 = vadd.f32 %v5345_v12, %v9568_v26  ;;  %v5419_v37 = vadd.f32 %v5418_v54, %v9571_v5  ;;  %v5449_v4 = vmax.f32 %v5344_v46, 0.0  ;;  %v5451_v31 = vmax.f32 %v5417_v50, 0.0  ;;  %v9614_v5 = vld [vmem:[%s9955_s10] ss:$0 sm:$0xff] }
 0xca8   : > { %v5450_v63 = vmax.f32 %v5346_v39, 0.0  ;;  %v5452_v27 = vmax.f32 %v5419_v37, 0.0  ;;  %v5465_v57 = vpack.c.bf16 %v5449_v4, %v5445_v45  ;;  %v5467_v34 = vpack.c.bf16 %v5451_v31, %v5447_v25 }
 0xca9   : > { %v1354_v31 = vcombine.high %v9956_v10, %v9956_v10 }
 0xcaa   : > { %v5466_v55 = vpack.c.bf16 %v5450_v63, %v5446_v19  ;;  %v5468_v11 = vpack.c.bf16 %v5452_v27, %v5448_v43 }
 0xcac   : > { %5788 = vmatprep.mubr.bf16.mxu0 %v5466_v55  ;;  %5853 = vmatprep.mubr.bf16.mxu1 %v5468_v11 }
 0xcad   : > { %5789 = vmatmul.mubr.bf16.gmra.mxu0 %v5465_v57  ;;  %5854 = vmatmul.mubr.bf16.gmra.mxu1 %v5467_v34 }
 0xd55   : > { %v6579_v18 = vpop.f32.mrf.mxu0  ;;  %v6619_v26 = vpop.f32.mrf.mxu1 }
 0xd57   : > { %v6580_v59 = vpop.f32.mrf.mxu0  ;;  %v6620_v36 = vpop.f32.mrf.mxu1 }
 0xd58   : > { %v6581_v7 = vadd.f32 %v6580_v59, %v6579_v18  ;;  %v6621_v1 = vadd.f32 %v6620_v36, %v6619_v26  ;;  %v5873_v26 = vrot.slane %v1354_v31, %v9944_v61 }
 0xd59   : > { %v6582_v58 = vpop.f32.mrf.mxu0  ;;  %v6622_v0 = vpop.f32.mrf.mxu1 }
 0xd5a   : > { %v5767_v28 = vadd.f32 %v6581_v7, %v9614_v5 }
 0xd5b   : > { %v6583_v35 = vpop.f32.mrf.mxu0  ;;  %v6623_v33 = vpop.f32.mrf.mxu1 }
 0xd5c   : > { %v5832_v42 = vadd.f32 %v6621_v1, %v5767_v28  ;;  %v6584_v30 = vadd.f32 %v6583_v35, %v6582_v58  ;;  %v6624_v17 = vadd.f32 %v6623_v33, %v6622_v0 }
 0xd5d   : > { %v6585_v20 = vpop.f32.mrf.mxu0  ;;  %v6625_v40 = vpop.f32.mrf.mxu1 }
 0xd5e   : > { %v5882_v52 = vmul.f32 %v5865_v32, %v5832_v42  ;;  %v5770_v6 = vadd.f32 %v6584_v30, %v9614_v5 }
 0xd5f   : > { %v6586_v38 = vpop.f32.mrf.mxu0  ;;  %v6626_v56 = vpop.f32.mrf.mxu1 }
 0xd60   : > { %v5890_v9 = vadd.f32 %v5882_v52, %v9425_v47  ;;  %v5835_v60 = vadd.f32 %v6624_v17, %v5770_v6  ;;  %v6587_v8 = vadd.f32 %v6586_v38, %v6585_v20  ;;  %v6627_v51 = vadd.f32 %v6626_v56, %v6625_v40  ;;  %v9957_v47 = vld [vmem:[#allocation43_spill] sm:$0xff] }
 0xd61   : > { %v6588_v44 = vpop.f32.mrf.mxu0  ;;  %v6628_v62 = vpop.f32.mrf.mxu1  ;;  %v5869_v46 = vrot.slane %v9957_v47, %v9944_v61 }
 0xd62   : > { %5898 = vst [vmem:[%s9623_s14] sm:$0xff] %v5890_v9  ;;  %v5883_v53 = vmul.f32 %v5865_v32, %v5835_v60  ;;  %v5775_v3 = vadd.f32 %v6587_v8, %v9614_v5 }
 0xd63   : > { %v6589_v13 = vpop.f32.mrf.mxu0  ;;  %v6629_v14 = vpop.f32.mrf.mxu1 }
 0xd64   : > { %v5891_v48 = vadd.f32 %v5883_v53, %v9432_v23  ;;  %v5840_v29 = vadd.f32 %v6627_v51, %v5775_v3  ;;  %v6590_v50 = vadd.f32 %v6589_v13, %v6588_v44  ;;  %v6630_v39 = vadd.f32 %v6629_v14, %v6628_v62 }
 0xd65   : > { %v6591_v21 = vpop.f32.mrf.mxu0  ;;  %v6631_v22 = vpop.f32.mrf.mxu1 }
 0xd66   : > { %5899 = vst [vmem:[%s9623_s14 + $0x8] sm:$0xff] %v5891_v48  ;;  %v5884_v12 = vmul.f32 %v5869_v46, %v5840_v29  ;;  %v5778_v54 = vadd.f32 %v6590_v50, %v9614_v5 }
 0xd67   : > { %v6592_v37 = vpop.f32.mrf.mxu0  ;;  %v6632_v4 = vpop.f32.mrf.mxu1 }
 0xd68   : > { %v5892_v23 = vadd.f32 %v5884_v12, %v9439_v15  ;;  %v5843_v19 = vadd.f32 %v6630_v39, %v5778_v54  ;;  %v6593_v43 = vadd.f32 %v6592_v37, %v6591_v21  ;;  %v6633_v55 = vadd.f32 %v6632_v4, %v6631_v22 }
 0xd69   : > { %v6594_v63 = vpop.f32.mrf.mxu0  ;;  %v6634_v27 = vpop.f32.mrf.mxu1 }
 0xd6a   : > { %5900 = vst [vmem:[%s9623_s14 + $0x10] sm:$0xff] %v5892_v23  ;;  %v5885_v45 = vmul.f32 %v5869_v46, %v5843_v19  ;;  %v5783_v25 = vadd.f32 %v6593_v43, %v9614_v5 }
 0xd6b   : > { %v6595_v11 = vpop.f32.mrf.mxu0  ;;  %v6635_v57 = vpop.f32.mrf.mxu1 }
 0xd6c   : > { %v5893_v34 = vadd.f32 %v5885_v45, %v9445_v49  ;;  %v5848_v18 = vadd.f32 %v6633_v55, %v5783_v25  ;;  %v6596_v59 = vadd.f32 %v6595_v11, %v6594_v63  ;;  %v6636_v0 = vadd.f32 %v6635_v57, %v6634_v27 }
 0xd6d   : > { %v6597_v15 = vpop.f32.mrf.mxu0  ;;  %v6637_v36 = vpop.f32.mrf.mxu1  ;;  %v1355_v49 = vcombine.high %v9957_v47, %v9957_v47 }
 0xd6e   : > { %5901 = vst [vmem:[%s9623_s14 + $0x18] sm:$0xff] %v5893_v34  ;;  %v5886_v7 = vmul.f32 %v5873_v26, %v5848_v18  ;;  %v5786_v58 = vadd.f32 %v6596_v59, %v9614_v5 }
 0xd6f   : > { %v6598_v28 = vpop.f32.mrf.mxu0  ;;  %v6638_v1 = vpop.f32.mrf.mxu1  ;;  %v5877_v38 = vrot.slane %v1355_v49, %v9944_v61 }
 0xd70   : > { %v5894_v35 = vadd.f32 %v5886_v7, %v9452_v2  ;;  %v5851_v33 = vadd.f32 %v6636_v0, %v5786_v58  ;;  %v6599_v42 = vadd.f32 %v6598_v28, %v6597_v15  ;;  %v6639_v40 = vadd.f32 %v6638_v1, %v6637_v36 }
 0xd71   : > { %v6600_v10 = vpop.f32.mrf.mxu0  ;;  %v6640_v32 = vpop.f32.mrf.mxu1 }
 0xd72   : > { %5902 = vst [vmem:[%s9623_s14 + $0x20] sm:$0xff] %v5894_v35  ;;  %v5887_v30 = vmul.f32 %v5873_v26, %v5851_v33  ;;  %v5791_v20 = vadd.f32 %v6599_v42, %v9614_v5 }
 0xd73   : > { %v6601_v52 = vpop.f32.mrf.mxu0  ;;  %v6641_v6 = vpop.f32.mrf.mxu1 }
 0xd74   : > { %v5895_v2 = vadd.f32 %v5887_v30, %v9458_v24  ;;  %v5856_v17 = vadd.f32 %v6639_v40, %v5791_v20  ;;  %v6602_v56 = vadd.f32 %v6601_v52, %v6600_v10  ;;  %v6642_v8 = vadd.f32 %v6641_v6, %v6640_v32 }
 0xd76   : > { %5903 = vst [vmem:[%s9623_s14 + $0x28] sm:$0xff] %v5895_v2  ;;  %v5888_v9 = vmul.f32 %v5877_v38, %v5856_v17  ;;  %v5794_v60 = vadd.f32 %v6602_v56, %v9614_v5 }
 0xd78   : > { %v5896_v44 = vadd.f32 %v5888_v9, %v9463_v16  ;;  %v5859_v62 = vadd.f32 %v6642_v8, %v5794_v60 }
 0xd7a   : > { %5904 = vst [vmem:[%s9623_s14 + $0x30] sm:$0xff] %v5896_v44  ;;  %v5889_v53 = vmul.f32 %v5877_v38, %v5859_v62 }
 0xd7c   : > { %v5897_v61 = vadd.f32 %v5889_v53, %v9467_v41 }
 0xd7e   : > { %5905 = vst [vmem:[%s9623_s14 + $0x38] sm:$0xff] %v5897_v61 }
 0xd7f   : > { %7830 = shalt.err (!%p7827_p1)
}
 0xd80   : > { %s7831_s25 = scalar_lea.hbm %s9657_s7, 1024  ;;  %s7835_s16 = scalar_lea.hbm %s9958_s4, 2048 }
 0xd81   : > { %p7832_p6 = scmp.ne.s32.totalorder %s9657_s7, %s7831_s25  ;;  %p7836_p3 = scmp.lt.s32.totalorder %s9657_s7, %s9958_s4 }
 0xd82   : > { %p7837_p4 = scmp.lt.s32.totalorder %s7835_s16, %s7831_s25 }
 0xd83   : > { %p7833_p5 = pnand %p7832_p6, %p9959_p7 }
 0xd84   : > { %p7838_p0 = por %p7837_p4, %p7836_p3 }
 0xd85   : > { %p7834_p8 = pneg %p7833_p5 }
 0xd87   : > { %p7839_p11 = pnand %p7838_p0, %p7834_p8 }
 0xd89   : > { %7842 = shalt.err (!%p7839_p11)
}
 0xd8a   : > { %s7939_s10 = smov 128   ;;  %s7940_s14 = smov 8  }
 0xd8b   : > { %6879 = dma.vmem_to_hbm [thread:$0]  (%p9959_p7), %s9659_s28, 1024, %s9657_s7, %s5907_s20, %s7939_s10, %s7939_s10, %s7940_s14  }
 0xd8c PF: > { %s5936_s15 = sand.u32 1, %s7897_s21   ;;  %p9960_p2 = scmp.ne.s32.totalorder %s9802_s2, 0 }
 0xd8d   : > { %p9961_p9 = scmp.ge.s32.totalorder %s7909_s24, 2  ;;  %s5937_s0 = scalar_lea.sflag [#allocation4], %s5936_s15 }
 0xd8f   : > { %p6920_p10 = pnand %p9961_p9, %p9960_p2 }
 0xd91   : > { %p6921_p12 = pneg %p6920_p10 }
 0xd93   : > { %7892 = dma.done.wait (%p6921_p12), %s5937_s0, 1024  }
 0xd94   : > { %7894 = vsyncadd (%p6921_p12), %s5937_s0, 4294966272  ;;  %p37_p13 = scmp.ge.s32.totalorder %s8158_s19, 4   ;;  %s9962_s21 = smov %s7901_s22 }
 0xd95   : > { %s9963_s22 = smov %s7905_s23  ;;  %s9964_s23 = smov %s8169_s17 }
 0xd96   : > { %s9965_s24 = smov %s8158_s19  ;;  %39 = sbr.rel (!%p37_p13) target bundleno = 27 (0x1b), region = 182 }
 0xd9b   :  { %5942 = vsyncpa [#allocation3], 1 }
 0xd9c   :  { %5944 = vsyncpa [#allocation3 + $0x1], 1 }
 0xd9d   :  { %5945 = vsyncpa [#allocation6], 1 }
 0xd9e   :  { %5947 = vsyncpa [#allocation6 + $0x1], 1 }
 0xd9f   :  { %5948 = vsyncpa [#allocation9], 1 }
 0xda0   :  { %5949 = vsyncpa [#allocation12], 1 }
 0xda1   :  { %5950 = vsyncpa [#allocation15], 1 }
 0xda2   :  { %5951 = vsyncpa [#allocation18], 1 }
 0xda3   :  { %5952 = vsyncpa [#allocation21], 1 }
 0xda4   :  { %5953 = vsyncpa [#allocation4], 1 }
 0xda5   :  { %5955 = vsyncpa [#allocation4 + $0x1], 1 }

</bundles_post_ra>
